<compile_context>
chip_gen: v7x
topology: tpu7x:2x2x1
jax: 0.10.0
libtpu: 0.0.40
codegen_flags: <defaults>
</compile_context>

<pallas_src>
import functools

import jax
import jax.numpy as jnp
from jax.experimental import pallas as pl
from jax.experimental.pallas import tpu as pltpu

# ----------------------------- model config ---------------------------------
IMG_SIZE = (1, 64, 64)   # (n_chan, 64, 64) -- VAE requires 64x64 images
LATENT_DIM = 8
HID_CH = 8               # conv hidden channels (Burgess uses 32)
HID_DIM = 32             # FC hidden dim (Burgess uses 256)
BATCH = 2
KSIZE = 4                # all (transposed) convs are k=4, stride=2, pad=1

_MAX_TILE_M = 2048       # lane-tile for the conv GEMMs (whole-M if smaller)


# ------------------------- Pallas kernels -----------------------------------
def _conv_gemm_kernel(w_ref, p_ref, b_ref, o_ref, *, activation):
    """out(Cout, tm) = W(Cout, K) @ P(K, tm) + b(Cout, 1), fused activation.

    The big spatial dim (B*Ho*Wo) is the lane axis -> unmasked, lane-dense
    stores; the per-channel bias broadcasts along lanes for free.
    """
    acc = jnp.dot(w_ref[...], p_ref[...], preferred_element_type=jnp.float32)
    acc = acc + b_ref[...]
    if activation == "relu":
        acc = jnp.maximum(acc, 0.0)
    elif activation == "sigmoid":
        acc = jax.nn.sigmoid(acc)
    o_ref[...] = acc.astype(o_ref.dtype)


def _pick_tile_m(M):
    if M <= _MAX_TILE_M:
        return M
    for cand in (2048, 1024, 512, 256, 128):
        if M % cand == 0:
            return cand
    return M


def conv_gemm(w_mat, patches_t, bias, activation="relu"):
    """w_mat:(Cout,K) @ patches_t:(K,M) + bias:(Cout,), fused act, via Pallas."""
    c_out, K = w_mat.shape
    K2, M = patches_t.shape
    assert K == K2
    tm = _pick_tile_m(M)
    kernel = functools.partial(_conv_gemm_kernel, activation=activation)
    return pl.pallas_call(
        kernel,
        out_shape=jax.ShapeDtypeStruct((c_out, M), jnp.float32),
        grid=(M // tm,),
        in_specs=[
            pl.BlockSpec((c_out, K), lambda i: (0, 0)),
            pl.BlockSpec((K, tm), lambda i: (0, i)),
            pl.BlockSpec((c_out, 1), lambda i: (0, 0)),
        ],
        out_specs=pl.BlockSpec((c_out, tm), lambda i: (0, i)),
        compiler_params=pltpu.CompilerParams(dimension_semantics=("parallel",)),
    )(w_mat, patches_t, bias.reshape(c_out, 1))


def _encoder_head_kernel(h_ref, w1_ref, b1_ref, w2_ref, b2_ref,
                         w3m_ref, b3m_ref, w3v_ref, b3v_ref, eps_ref,
                         mean_ref, logvar_ref, z_ref):
    """Fused encoder FC chain (lin1->relu->lin2->relu->mu/logvar head) plus
    the reparameterization trick z = mean + exp(0.5*logvar)*eps."""
    h = jnp.dot(h_ref[...], w1_ref[...], preferred_element_type=jnp.float32)
    h = jnp.maximum(h + b1_ref[...], 0.0)
    h = jnp.dot(h, w2_ref[...], preferred_element_type=jnp.float32)
    h = jnp.maximum(h + b2_ref[...], 0.0)
    mean = jnp.dot(h, w3m_ref[...], preferred_element_type=jnp.float32) + b3m_ref[...]
    logvar = jnp.dot(h, w3v_ref[...], preferred_element_type=jnp.float32) + b3v_ref[...]
    mean_ref[...] = mean
    logvar_ref[...] = logvar
    z_ref[...] = mean + jnp.exp(0.5 * logvar) * eps_ref[...]


def _decoder_fc_kernel(z_ref, w1_ref, b1_ref, w2_ref, b2_ref, w3_ref, b3_ref,
                       o_ref):
    """Fused decoder FC chain: 3x (linear -> relu), output (B, HID_CH*16)."""
    h = jnp.dot(z_ref[...], w1_ref[...], preferred_element_type=jnp.float32)
    h = jnp.maximum(h + b1_ref[...], 0.0)
    h = jnp.dot(h, w2_ref[...], preferred_element_type=jnp.float32)
    h = jnp.maximum(h + b2_ref[...], 0.0)
    h = jnp.dot(h, w3_ref[...], preferred_element_type=jnp.float32)
    o_ref[...] = jnp.maximum(h + b3_ref[...], 0.0)


def _disc_head_kernel(h_ref, w_ref, b_ref, o_ref):
    """Discriminator head: linear -> sigmoid."""
    acc = jnp.dot(h_ref[...], w_ref[...], preferred_element_type=jnp.float32)
    o_ref[...] = jax.nn.sigmoid(acc + b_ref[...])


# --------------------------- conv glue (JAX) ---------------------------------
def _im2col_T(xpad, k, stride):
    """xpad: CBHW, already padded -> patches^T (C*k*k, B*Ho*Wo), Ho, Wo.

    Row ordering is (C, ki, kj) (matches PyTorch weight.reshape(Cout, -1));
    column ordering is (B, Ho, Wo).  Because the activation layout is CBHW,
    this needs no transpose at all (stack + reshape only).
    """
    C, B, Hp, Wp = xpad.shape
    Ho = (Hp - k) // stride + 1
    Wo = (Wp - k) // stride + 1
    taps = [xpad[:, :, di:di + stride * Ho:stride, dj:dj + stride * Wo:stride]
            for di in range(k) for dj in range(k)]        # each (C, B, Ho, Wo)
    pt = jnp.stack(taps, axis=1)                          # (C, k*k, B, Ho, Wo)
    return pt.reshape(C * k * k, B * Ho * Wo), Ho, Wo


def conv2d_cbhw(x, w, b, activation="relu"):
    """PyTorch Conv2d(k=4, stride=2, pad=1). x CBHW, w (Cout,Cin,4,4)."""
    c_out = w.shape[0]
    B = x.shape[1]
    xpad = jnp.pad(x, ((0, 0), (0, 0), (1, 1), (1, 1)))
    pt, Ho, Wo = _im2col_T(xpad, KSIZE, 2)
    out = conv_gemm(w.reshape(c_out, -1), pt, b, activation)   # (Cout, B*Ho*Wo)
    return out.reshape(c_out, B, Ho, Wo)


def _build_convt_subpixel_weight(w):
    """w (Cin,Cout,4,4) -> combined sub-pixel weight (4*Cout, Cin*9).

    Row block (po*2+pw)*Cout holds the 2x2 sub-kernel of output parity
    (po, pw) placed inside a 3x3 stride-1 window of the (pad=1) input; all
    other taps are structurally zero.  Derived from oh = 2*ih - 1 + kh.
    """
    c_in, c_out = w.shape[0], w.shape[1]
    kidx = ((3, 1), (2, 0))   # kernel index per (output parity, tap)
    w3 = jnp.zeros((2, 2, c_out, c_in, 3, 3), w.dtype)
    for po in range(2):
        for pw in range(2):
            for di in range(2):
                for dj in range(2):
                    w3 = w3.at[po, pw, :, :, po + di, pw + dj].set(
                        w[:, :, kidx[po][di], kidx[pw][dj]].T)
    return w3.reshape(4 * c_out, c_in * 9)


def conv_transpose2d_cbhw(x, w, b, activation="relu"):
    """PyTorch ConvTranspose2d(k=4, stride=2, pad=1). x CBHW, w (Cin,Cout,4,4).

    Implemented as ONE GEMM over 3x3 stride-1 patches of the pad(1) input
    against the 4-phase sub-pixel weight, then depth-to-space interleave.
    """
    c_in, B, H, W = x.shape
    c_out = w.shape[1]
    w3 = _build_convt_subpixel_weight(w)                     # (4*Cout, Cin*9)
    b4 = jnp.tile(b, 4)                                      # (4*Cout,)
    xpad = jnp.pad(x, ((0, 0), (0, 0), (1, 1), (1, 1)))
    pt, Ho, Wo = _im2col_T(xpad, 3, 1)                       # Ho=H, Wo=W
    out = conv_gemm(w3, pt, b4, activation)                  # (4*Cout, B*H*W)
    out = out.reshape(2, 2, c_out, B, H, W)
    out = out.transpose(2, 3, 4, 0, 5, 1)                    # (Cout,B,H,2,W,2)
    return out.reshape(c_out, B, 2 * H, 2 * W)


# --------------------------- parameters --------------------------------------
def init_params(key):
    ks = iter(jax.random.split(key, 64))

    def conv_w(cout, cin):
        return 0.1 * jax.random.normal(next(ks), (cout, cin, KSIZE, KSIZE), jnp.float32)

    def convT_w(cin, cout):
        return 0.1 * jax.random.normal(next(ks), (cin, cout, KSIZE, KSIZE), jnp.float32)

    def lin_w(din, dout):  # stored as (in, out) -> matmul directly
        return 0.1 * jax.random.normal(next(ks), (din, dout), jnp.float32)

    def bias(n):
        return 0.01 * jax.random.normal(next(ks), (n,), jnp.float32)

    nc = IMG_SIZE[0]
    flat = HID_CH * 4 * 4  # features after 4 stride-2 convs from 64x64 -> 4x4
    p = {}
    # Encoder (Burgess-style): 4 convs -> 2 FC -> mu/logvar head
    p["e_c1_w"], p["e_c1_b"] = conv_w(HID_CH, nc), bias(HID_CH)
    p["e_c2_w"], p["e_c2_b"] = conv_w(HID_CH, HID_CH), bias(HID_CH)
    p["e_c3_w"], p["e_c3_b"] = conv_w(HID_CH, HID_CH), bias(HID_CH)
    p["e_c4_w"], p["e_c4_b"] = conv_w(HID_CH, HID_CH), bias(HID_CH)
    p["e_l1_w"], p["e_l1_b"] = lin_w(flat, HID_DIM), bias(HID_DIM)
    p["e_l2_w"], p["e_l2_b"] = lin_w(HID_DIM, HID_DIM), bias(HID_DIM)
    p["e_l3_w"], p["e_l3_b"] = lin_w(HID_DIM, 2 * LATENT_DIM), bias(2 * LATENT_DIM)
    # Decoder: 3 FC -> reshape -> 4 transposed convs -> sigmoid
    p["d_l1_w"], p["d_l1_b"] = lin_w(LATENT_DIM, HID_DIM), bias(HID_DIM)
    p["d_l2_w"], p["d_l2_b"] = lin_w(HID_DIM, HID_DIM), bias(HID_DIM)
    p["d_l3_w"], p["d_l3_b"] = lin_w(HID_DIM, flat), bias(flat)
    p["d_t1_w"], p["d_t1_b"] = convT_w(HID_CH, HID_CH), bias(HID_CH)
    p["d_t2_w"], p["d_t2_b"] = convT_w(HID_CH, HID_CH), bias(HID_CH)
    p["d_t3_w"], p["d_t3_b"] = convT_w(HID_CH, HID_CH), bias(HID_CH)
    p["d_t4_w"], p["d_t4_b"] = convT_w(HID_CH, nc), bias(nc)
    # Discriminator: 4 convs -> FC -> sigmoid logit
    p["g_c1_w"], p["g_c1_b"] = conv_w(HID_CH, nc), bias(HID_CH)
    p["g_c2_w"], p["g_c2_b"] = conv_w(HID_CH, HID_CH), bias(HID_CH)
    p["g_c3_w"], p["g_c3_b"] = conv_w(HID_CH, HID_CH), bias(HID_CH)
    p["g_c4_w"], p["g_c4_b"] = conv_w(HID_CH, HID_CH), bias(HID_CH)
    p["g_l1_w"], p["g_l1_b"] = lin_w(flat, 1), bias(1)
    return p


# --------------------------- module forward ----------------------------------
def encoder_fwd(x_cbhw, eps, p):
    """Returns (mean, logvar, latent_sample)."""
    h = conv2d_cbhw(x_cbhw, p["e_c1_w"], p["e_c1_b"], "relu")   # 64 -> 32
    h = conv2d_cbhw(h, p["e_c2_w"], p["e_c2_b"], "relu")        # 32 -> 16
    h = conv2d_cbhw(h, p["e_c3_w"], p["e_c3_b"], "relu")        # 16 -> 8
    h = conv2d_cbhw(h, p["e_c4_w"], p["e_c4_b"], "relu")        # 8  -> 4
    B = h.shape[1]
    hf = h.transpose(1, 0, 2, 3).reshape(B, -1)   # PyTorch .view(B,-1) order
    w3, b3 = p["e_l3_w"], p["e_l3_b"]
    mean, logvar, z = pl.pallas_call(
        _encoder_head_kernel,
        out_shape=(jax.ShapeDtypeStruct((B, LATENT_DIM), jnp.float32),
                   jax.ShapeDtypeStruct((B, LATENT_DIM), jnp.float32),
                   jax.ShapeDtypeStruct((B, LATENT_DIM), jnp.float32)),
    )(hf,
      p["e_l1_w"], p["e_l1_b"].reshape(1, -1),
      p["e_l2_w"], p["e_l2_b"].reshape(1, -1),
      w3[:, :LATENT_DIM], b3[:LATENT_DIM].reshape(1, -1),
      w3[:, LATENT_DIM:], b3[LATENT_DIM:].reshape(1, -1),
      eps)
    return mean, logvar, z


def decoder_fwd(z, p):
    B = z.shape[0]
    h = pl.pallas_call(
        _decoder_fc_kernel,
        out_shape=jax.ShapeDtypeStruct((B, HID_CH * 16), jnp.float32),
    )(z,
      p["d_l1_w"], p["d_l1_b"].reshape(1, -1),
      p["d_l2_w"], p["d_l2_b"].reshape(1, -1),
      p["d_l3_w"], p["d_l3_b"].reshape(1, -1))
    h = h.reshape(B, HID_CH, 4, 4).transpose(1, 0, 2, 3)        # CBHW
    h = conv_transpose2d_cbhw(h, p["d_t1_w"], p["d_t1_b"], "relu")     # 4 -> 8
    h = conv_transpose2d_cbhw(h, p["d_t2_w"], p["d_t2_b"], "relu")     # 8 -> 16
    h = conv_transpose2d_cbhw(h, p["d_t3_w"], p["d_t3_b"], "relu")     # 16 -> 32
    h = conv_transpose2d_cbhw(h, p["d_t4_w"], p["d_t4_b"], "sigmoid")  # 32 -> 64
    return h                                                     # CBHW


def discriminator_fwd(x_cbhw, p):
    h = conv2d_cbhw(x_cbhw, p["g_c1_w"], p["g_c1_b"], "relu")
    h = conv2d_cbhw(h, p["g_c2_w"], p["g_c2_b"], "relu")
    h = conv2d_cbhw(h, p["g_c3_w"], p["g_c3_b"], "relu")
    h = conv2d_cbhw(h, p["g_c4_w"], p["g_c4_b"], "relu")
    B = h.shape[1]
    hf = h.transpose(1, 0, 2, 3).reshape(B, -1)
    return pl.pallas_call(
        _disc_head_kernel,
        out_shape=jax.ShapeDtypeStruct((B, 1), jnp.float32),
    )(hf, p["g_l1_w"], p["g_l1_b"].reshape(1, 1))


def vaegan_forward(x, p, eps):
    """Matches VAEGAN.forward: (recon, (mean, logvar), z, disc_real, disc_fake)."""
    batch_n = x.shape[0]
    x_cbhw = x.transpose(1, 0, 2, 3)                 # NCHW -> CBHW (once)
    mean, logvar, latent_sample = encoder_fwd(x_cbhw, eps, p)
    recon_cbhw = decoder_fwd(latent_sample, p)
    reconstruct = recon_cbhw.transpose(1, 0, 2, 3)   # back to NCHW for output
    # x.detach().requires_grad_() is autograd bookkeeping -> forward no-op.
    disc_x = jnp.concatenate([x_cbhw, recon_cbhw], axis=1)   # concat on batch
    disc_y = discriminator_fwd(disc_x, p)
    return (reconstruct, (mean, logvar), latent_sample,
            disc_y[:batch_n], disc_y[batch_n:])


# ------------------------------- main -----------------------------------------
if __name__ == "__main__":
    key = jax.random.PRNGKey(0)
    k_par, k_x, k_eps = jax.random.split(key, 3)

    params = init_params(k_par)
    x = jax.random.uniform(k_x, (BATCH,) + IMG_SIZE, jnp.float32)   # NCHW
    eps = jax.random.normal(k_eps, (BATCH, LATENT_DIM), jnp.float32)

    fwd = jax.jit(vaegan_forward)
    recon, (mean, logvar), z, d_real, d_fake = jax.block_until_ready(
        fwd(x, params, eps))

    assert recon.shape == (BATCH,) + IMG_SIZE
    assert mean.shape == (BATCH, LATENT_DIM) and logvar.shape == (BATCH, LATENT_DIM)
    assert z.shape == (BATCH, LATENT_DIM)
    assert d_real.shape == (BATCH, 1) and d_fake.shape == (BATCH, 1)
    print("KERNEL_OK")
</pallas_src>

<mosaic_0001>
module attributes {stable_mosaic.version = 11 : i64} {
  func.func @_conv_gemm_kernel(%arg0: i32, %arg1: memref<8x16xf32, #tpu.memory_space<vmem>>, %arg2: memref<16x2048xf32, #tpu.memory_space<vmem>>, %arg3: memref<8x1xf32, #tpu.memory_space<vmem>>, %arg4: memref<8x2048xf32, #tpu.memory_space<vmem>>) attributes {dimension_semantics = [#tpu.dimension_semantics<parallel>], iteration_bounds = array<i64: 1>, scalar_prefetch = 0 : i64, scratch_operands = 0 : i64, tpu.core_type = #tpu.core_type<tc>, window_params = [{pipeline_mode = #tpu.pipeline_mode<synchronous>, transform_indices = @transform_0, window_bounds = array<i64: 8, 16>}, {transform_indices = @transform_1, window_bounds = array<i64: 16, 2048>}, {pipeline_mode = #tpu.pipeline_mode<synchronous>, transform_indices = @transform_2, window_bounds = array<i64: 8, 1>}, {transform_indices = @transform_3, window_bounds = array<i64: 8, 2048>}]} {
    %c0 = arith.constant 0 : index
    %c0_0 = arith.constant 0 : index
    %0 = vector.load %arg1[%c0, %c0_0] : memref<8x16xf32, #tpu.memory_space<vmem>>, vector<8x16xf32>
    %c0_1 = arith.constant 0 : index
    %c0_2 = arith.constant 0 : index
    %1 = vector.load %arg2[%c0_1, %c0_2] : memref<16x2048xf32, #tpu.memory_space<vmem>>, vector<16x2048xf32>
    %cst = arith.constant dense<0.000000e+00> : vector<8x2048xf32>
    %2 = tpu.matmul %0, %1, %cst {dimension_numbers = #tpu.dot_dimension_numbers<[1], [0], [0], [1], [0, 0, 1, 1], [], []>} : vector<8x16xf32>, vector<16x2048xf32>, vector<8x2048xf32> -> vector<8x2048xf32>
    %c0_3 = arith.constant 0 : index
    %c0_4 = arith.constant 0 : index
    %3 = vector.load %arg3[%c0_3, %c0_4] : memref<8x1xf32, #tpu.memory_space<vmem>>, vector<8x1xf32>
    %4 = vector.broadcast %3 : vector<8x1xf32> to vector<8x2048xf32>
    %5 = arith.addf %2, %4 : vector<8x2048xf32>
    %cst_5 = arith.constant 0.000000e+00 : f32
    %6 = vector.broadcast %cst_5 : f32 to vector<8x2048xf32>
    %7 = arith.maximumf %5, %6 : vector<8x2048xf32>
    %c0_6 = arith.constant 0 : index
    %c0_7 = arith.constant 0 : index
    %8 = vector.load %arg4[%c0_6, %c0_7] : memref<8x2048xf32, #tpu.memory_space<vmem>>, vector<8x2048xf32>
    tpu.vector_store %arg4[%c0_6, %c0_7], %7 {strides = array<i32>} : memref<8x2048xf32, #tpu.memory_space<vmem>>, vector<8x2048xf32>,
    return
  }
  func.func @transform_0(%arg0: i32) -> (i32, i32) {
    %c0_i32 = arith.constant 0 : i32
    %c0_i32_0 = arith.constant 0 : i32
    %c0_i32_1 = arith.constant 0 : i32
    return %c0_i32, %c0_i32_0 : i32, i32
  }
  func.func @transform_1(%arg0: i32) -> (i32, i32) {
    %c0_i32 = arith.constant 0 : i32
    %c0_i32_0 = arith.constant 0 : i32
    return %c0_i32, %arg0 : i32, i32
  }
  func.func @transform_2(%arg0: i32) -> (i32, i32) {
    %c0_i32 = arith.constant 0 : i32
    %c0_i32_0 = arith.constant 0 : i32
    %c0_i32_1 = arith.constant 0 : i32
    return %c0_i32, %c0_i32_0 : i32, i32
  }
  func.func @transform_3(%arg0: i32) -> (i32, i32) {
    %c0_i32 = arith.constant 0 : i32
    %c0_i32_0 = arith.constant 0 : i32
    return %c0_i32, %arg0 : i32, i32
  }
}

module attributes {stable_mosaic.version = 11 : i64} {
  func.func @_conv_gemm_kernel(%arg0: i32, %arg1: memref<8x128xf32, #tpu.memory_space<vmem>>, %arg2: memref<128x512xf32, #tpu.memory_space<vmem>>, %arg3: memref<8x1xf32, #tpu.memory_space<vmem>>, %arg4: memref<8x512xf32, #tpu.memory_space<vmem>>) attributes {dimension_semantics = [#tpu.dimension_semantics<parallel>], iteration_bounds = array<i64: 1>, scalar_prefetch = 0 : i64, scratch_operands = 0 : i64, tpu.core_type = #tpu.core_type<tc>, window_params = [{pipeline_mode = #tpu.pipeline_mode<synchronous>, transform_indices = @transform_0, window_bounds = array<i64: 8, 128>}, {transform_indices = @transform_1, window_bounds = array<i64: 128, 512>}, {pipeline_mode = #tpu.pipeline_mode<synchronous>, transform_indices = @transform_2, window_bounds = array<i64: 8, 1>}, {transform_indices = @transform_3, window_bounds = array<i64: 8, 512>}]} {
    %c0 = arith.constant 0 : index
    %c0_0 = arith.constant 0 : index
    %0 = vector.load %arg1[%c0, %c0_0] : memref<8x128xf32, #tpu.memory_space<vmem>>, vector<8x128xf32>
    %c0_1 = arith.constant 0 : index
    %c0_2 = arith.constant 0 : index
    %1 = vector.load %arg2[%c0_1, %c0_2] : memref<128x512xf32, #tpu.memory_space<vmem>>, vector<128x512xf32>
    %cst = arith.constant dense<0.000000e+00> : vector<8x512xf32>
    %2 = tpu.matmul %0, %1, %cst {dimension_numbers = #tpu.dot_dimension_numbers<[1], [0], [0], [1], [0, 0, 1, 1], [], []>} : vector<8x128xf32>, vector<128x512xf32>, vector<8x512xf32> -> vector<8x512xf32>
    %c0_3 = arith.constant 0 : index
    %c0_4 = arith.constant 0 : index
    %3 = vector.load %arg3[%c0_3, %c0_4] : memref<8x1xf32, #tpu.memory_space<vmem>>, vector<8x1xf32>
    %4 = vector.broadcast %3 : vector<8x1xf32> to vector<8x512xf32>
    %5 = arith.addf %2, %4 : vector<8x512xf32>
    %cst_5 = arith.constant 0.000000e+00 : f32
    %6 = vector.broadcast %cst_5 : f32 to vector<8x512xf32>
    %7 = arith.maximumf %5, %6 : vector<8x512xf32>
    %c0_6 = arith.constant 0 : index
    %c0_7 = arith.constant 0 : index
    %8 = vector.load %arg4[%c0_6, %c0_7] : memref<8x512xf32, #tpu.memory_space<vmem>>, vector<8x512xf32>
    tpu.vector_store %arg4[%c0_6, %c0_7], %7 {strides = array<i32>} : memref<8x512xf32, #tpu.memory_space<vmem>>, vector<8x512xf32>,
    return
  }
  func.func @transform_0(%arg0: i32) -> (i32, i32) {
    %c0_i32 = arith.constant 0 : i32
    %c0_i32_0 = arith.constant 0 : i32
    %c0_i32_1 = arith.constant 0 : i32
    return %c0_i32, %c0_i32_0 : i32, i32
  }
  func.func @transform_1(%arg0: i32) -> (i32, i32) {
    %c0_i32 = arith.constant 0 : i32
    %c0_i32_0 = arith.constant 0 : i32
    return %c0_i32, %arg0 : i32, i32
  }
  func.func @transform_2(%arg0: i32) -> (i32, i32) {
    %c0_i32 = arith.constant 0 : i32
    %c0_i32_0 = arith.constant 0 : i32
    %c0_i32_1 = arith.constant 0 : i32
    return %c0_i32, %c0_i32_0 : i32, i32
  }
  func.func @transform_3(%arg0: i32) -> (i32, i32) {
    %c0_i32 = arith.constant 0 : i32
    %c0_i32_0 = arith.constant 0 : i32
    return %c0_i32, %arg0 : i32, i32
  }
}

module attributes {stable_mosaic.version = 11 : i64} {
  func.func @_conv_gemm_kernel(%arg0: i32, %arg1: memref<8x128xf32, #tpu.memory_space<vmem>>, %arg2: memref<128x128xf32, #tpu.memory_space<vmem>>, %arg3: memref<8x1xf32, #tpu.memory_space<vmem>>, %arg4: memref<8x128xf32, #tpu.memory_space<vmem>>) attributes {dimension_semantics = [#tpu.dimension_semantics<parallel>], iteration_bounds = array<i64: 1>, scalar_prefetch = 0 : i64, scratch_operands = 0 : i64, tpu.core_type = #tpu.core_type<tc>, window_params = [{pipeline_mode = #tpu.pipeline_mode<synchronous>, transform_indices = @transform_0, window_bounds = array<i64: 8, 128>}, {transform_indices = @transform_1, window_bounds = array<i64: 128, 128>}, {pipeline_mode = #tpu.pipeline_mode<synchronous>, transform_indices = @transform_2, window_bounds = array<i64: 8, 1>}, {transform_indices = @transform_3, window_bounds = array<i64: 8, 128>}]} {
    %c0 = arith.constant 0 : index
    %c0_0 = arith.constant 0 : index
    %0 = vector.load %arg1[%c0, %c0_0] : memref<8x128xf32, #tpu.memory_space<vmem>>, vector<8x128xf32>
    %c0_1 = arith.constant 0 : index
    %c0_2 = arith.constant 0 : index
    %1 = vector.load %arg2[%c0_1, %c0_2] : memref<128x128xf32, #tpu.memory_space<vmem>>, vector<128x128xf32>
    %cst = arith.constant dense<0.000000e+00> : vector<8x128xf32>
    %2 = tpu.matmul %0, %1, %cst {dimension_numbers = #tpu.dot_dimension_numbers<[1], [0], [0], [1], [0, 0, 1, 1], [], []>} : vector<8x128xf32>, vector<128x128xf32>, vector<8x128xf32> -> vector<8x128xf32>
    %c0_3 = arith.constant 0 : index
    %c0_4 = arith.constant 0 : index
    %3 = vector.load %arg3[%c0_3, %c0_4] : memref<8x1xf32, #tpu.memory_space<vmem>>, vector<8x1xf32>
    %4 = vector.broadcast %3 : vector<8x1xf32> to vector<8x128xf32>
    %5 = arith.addf %2, %4 : vector<8x128xf32>
    %cst_5 = arith.constant 0.000000e+00 : f32
    %6 = vector.broadcast %cst_5 : f32 to vector<8x128xf32>
    %7 = arith.maximumf %5, %6 : vector<8x128xf32>
    %c0_6 = arith.constant 0 : index
    %c0_7 = arith.constant 0 : index
    %8 = vector.load %arg4[%c0_6, %c0_7] : memref<8x128xf32, #tpu.memory_space<vmem>>, vector<8x128xf32>
    tpu.vector_store %arg4[%c0_6, %c0_7], %7 {strides = array<i32>} : memref<8x128xf32, #tpu.memory_space<vmem>>, vector<8x128xf32>,
    return
  }
  func.func @transform_0(%arg0: i32) -> (i32, i32) {
    %c0_i32 = arith.constant 0 : i32
    %c0_i32_0 = arith.constant 0 : i32
    %c0_i32_1 = arith.constant 0 : i32
    return %c0_i32, %c0_i32_0 : i32, i32
  }
  func.func @transform_1(%arg0: i32) -> (i32, i32) {
    %c0_i32 = arith.constant 0 : i32
    %c0_i32_0 = arith.constant 0 : i32
    return %c0_i32, %arg0 : i32, i32
  }
  func.func @transform_2(%arg0: i32) -> (i32, i32) {
    %c0_i32 = arith.constant 0 : i32
    %c0_i32_0 = arith.constant 0 : i32
    %c0_i32_1 = arith.constant 0 : i32
    return %c0_i32, %c0_i32_0 : i32, i32
  }
  func.func @transform_3(%arg0: i32) -> (i32, i32) {
    %c0_i32 = arith.constant 0 : i32
    %c0_i32_0 = arith.constant 0 : i32
    return %c0_i32, %arg0 : i32, i32
  }
}

module attributes {stable_mosaic.version = 11 : i64} {
  func.func @_conv_gemm_kernel(%arg0: i32, %arg1: memref<8x128xf32, #tpu.memory_space<vmem>>, %arg2: memref<128x32xf32, #tpu.memory_space<vmem>>, %arg3: memref<8x1xf32, #tpu.memory_space<vmem>>, %arg4: memref<8x32xf32, #tpu.memory_space<vmem>>) attributes {dimension_semantics = [#tpu.dimension_semantics<parallel>], iteration_bounds = array<i64: 1>, scalar_prefetch = 0 : i64, scratch_operands = 0 : i64, tpu.core_type = #tpu.core_type<tc>, window_params = [{pipeline_mode = #tpu.pipeline_mode<synchronous>, transform_indices = @transform_0, window_bounds = array<i64: 8, 128>}, {transform_indices = @transform_1, window_bounds = array<i64: 128, 32>}, {pipeline_mode = #tpu.pipeline_mode<synchronous>, transform_indices = @transform_2, window_bounds = array<i64: 8, 1>}, {transform_indices = @transform_3, window_bounds = array<i64: 8, 32>}]} {
    %c0 = arith.constant 0 : index
    %c0_0 = arith.constant 0 : index
    %0 = vector.load %arg1[%c0, %c0_0] : memref<8x128xf32, #tpu.memory_space<vmem>>, vector<8x128xf32>
    %c0_1 = arith.constant 0 : index
    %c0_2 = arith.constant 0 : index
    %1 = vector.load %arg2[%c0_1, %c0_2] : memref<128x32xf32, #tpu.memory_space<vmem>>, vector<128x32xf32>
    %cst = arith.constant dense<0.000000e+00> : vector<8x32xf32>
    %2 = tpu.matmul %0, %1, %cst {dimension_numbers = #tpu.dot_dimension_numbers<[1], [0], [0], [1], [0, 0, 1, 1], [], []>} : vector<8x128xf32>, vector<128x32xf32>, vector<8x32xf32> -> vector<8x32xf32>
    %c0_3 = arith.constant 0 : index
    %c0_4 = arith.constant 0 : index
    %3 = vector.load %arg3[%c0_3, %c0_4] : memref<8x1xf32, #tpu.memory_space<vmem>>, vector<8x1xf32>
    %4 = vector.broadcast %3 : vector<8x1xf32> to vector<8x32xf32>
    %5 = arith.addf %2, %4 : vector<8x32xf32>
    %cst_5 = arith.constant 0.000000e+00 : f32
    %6 = vector.broadcast %cst_5 : f32 to vector<8x32xf32>
    %7 = arith.maximumf %5, %6 : vector<8x32xf32>
    %c0_6 = arith.constant 0 : index
    %c0_7 = arith.constant 0 : index
    %8 = vector.load %arg4[%c0_6, %c0_7] : memref<8x32xf32, #tpu.memory_space<vmem>>, vector<8x32xf32>
    tpu.vector_store %arg4[%c0_6, %c0_7], %7 {strides = array<i32>} : memref<8x32xf32, #tpu.memory_space<vmem>>, vector<8x32xf32>,
    return
  }
  func.func @transform_0(%arg0: i32) -> (i32, i32) {
    %c0_i32 = arith.constant 0 : i32
    %c0_i32_0 = arith.constant 0 : i32
    %c0_i32_1 = arith.constant 0 : i32
    return %c0_i32, %c0_i32_0 : i32, i32
  }
  func.func @transform_1(%arg0: i32) -> (i32, i32) {
    %c0_i32 = arith.constant 0 : i32
    %c0_i32_0 = arith.constant 0 : i32
    return %c0_i32, %arg0 : i32, i32
  }
  func.func @transform_2(%arg0: i32) -> (i32, i32) {
    %c0_i32 = arith.constant 0 : i32
    %c0_i32_0 = arith.constant 0 : i32
    %c0_i32_1 = arith.constant 0 : i32
    return %c0_i32, %c0_i32_0 : i32, i32
  }
  func.func @transform_3(%arg0: i32) -> (i32, i32) {
    %c0_i32 = arith.constant 0 : i32
    %c0_i32_0 = arith.constant 0 : i32
    return %c0_i32, %arg0 : i32, i32
  }
}

module attributes {stable_mosaic.version = 11 : i64} {
  func.func @_encoder_head_kernel(%arg0: memref<2x128xf32, #tpu.memory_space<vmem>>, %arg1: memref<128x32xf32, #tpu.memory_space<vmem>>, %arg2: memref<1x32xf32, #tpu.memory_space<vmem>>, %arg3: memref<32x32xf32, #tpu.memory_space<vmem>>, %arg4: memref<1x32xf32, #tpu.memory_space<vmem>>, %arg5: memref<32x8xf32, #tpu.memory_space<vmem>>, %arg6: memref<1x8xf32, #tpu.memory_space<vmem>>, %arg7: memref<32x8xf32, #tpu.memory_space<vmem>>, %arg8: memref<1x8xf32, #tpu.memory_space<vmem>>, %arg9: memref<2x8xf32, #tpu.memory_space<vmem>>, %arg10: memref<2x8xf32, #tpu.memory_space<vmem>>, %arg11: memref<2x8xf32, #tpu.memory_space<vmem>>, %arg12: memref<2x8xf32, #tpu.memory_space<vmem>>) attributes {dimension_semantics = [], scalar_prefetch = 0 : i64, scratch_operands = 0 : i64, tpu.core_type = #tpu.core_type<tc>} {
    %c0 = arith.constant 0 : index
    %c0_0 = arith.constant 0 : index
    %0 = vector.load %arg0[%c0, %c0_0] : memref<2x128xf32, #tpu.memory_space<vmem>>, vector<2x128xf32>
    %c0_1 = arith.constant 0 : index
    %c0_2 = arith.constant 0 : index
    %1 = vector.load %arg1[%c0_1, %c0_2] : memref<128x32xf32, #tpu.memory_space<vmem>>, vector<128x32xf32>
    %cst = arith.constant dense<0.000000e+00> : vector<2x32xf32>
    %2 = tpu.matmul %0, %1, %cst {dimension_numbers = #tpu.dot_dimension_numbers<[1], [0], [0], [1], [0, 0, 1, 1], [], []>} : vector<2x128xf32>, vector<128x32xf32>, vector<2x32xf32> -> vector<2x32xf32>
    %c0_3 = arith.constant 0 : index
    %c0_4 = arith.constant 0 : index
    %3 = vector.load %arg2[%c0_3, %c0_4] : memref<1x32xf32, #tpu.memory_space<vmem>>, vector<1x32xf32>
    %4 = vector.broadcast %3 : vector<1x32xf32> to vector<2x32xf32>
    %5 = arith.addf %2, %4 : vector<2x32xf32>
    %cst_5 = arith.constant 0.000000e+00 : f32
    %6 = vector.broadcast %cst_5 : f32 to vector<2x32xf32>
    %7 = arith.maximumf %5, %6 : vector<2x32xf32>
    %c0_6 = arith.constant 0 : index
    %c0_7 = arith.constant 0 : index
    %8 = vector.load %arg3[%c0_6, %c0_7] : memref<32x32xf32, #tpu.memory_space<vmem>>, vector<32x32xf32>
    %cst_8 = arith.constant dense<0.000000e+00> : vector<2x32xf32>
    %9 = tpu.matmul %7, %8, %cst_8 {dimension_numbers = #tpu.dot_dimension_numbers<[1], [0], [0], [1], [0, 0, 1, 1], [], []>} : vector<2x32xf32>, vector<32x32xf32>, vector<2x32xf32> -> vector<2x32xf32>
    %c0_9 = arith.constant 0 : index
    %c0_10 = arith.constant 0 : index
    %10 = vector.load %arg4[%c0_9, %c0_10] : memref<1x32xf32, #tpu.memory_space<vmem>>, vector<1x32xf32>
    %11 = vector.broadcast %10 : vector<1x32xf32> to vector<2x32xf32>
    %12 = arith.addf %9, %11 : vector<2x32xf32>
    %cst_11 = arith.constant 0.000000e+00 : f32
    %13 = vector.broadcast %cst_11 : f32 to vector<2x32xf32>
    %14 = arith.maximumf %12, %13 : vector<2x32xf32>
    %c0_12 = arith.constant 0 : index
    %c0_13 = arith.constant 0 : index
    %15 = vector.load %arg5[%c0_12, %c0_13] : memref<32x8xf32, #tpu.memory_space<vmem>>, vector<32x8xf32>
    %cst_14 = arith.constant dense<0.000000e+00> : vector<2x8xf32>
    %16 = tpu.matmul %14, %15, %cst_14 {dimension_numbers = #tpu.dot_dimension_numbers<[1], [0], [0], [1], [0, 0, 1, 1], [], []>} : vector<2x32xf32>, vector<32x8xf32>, vector<2x8xf32> -> vector<2x8xf32>
    %c0_15 = arith.constant 0 : index
    %c0_16 = arith.constant 0 : index
    %17 = vector.load %arg6[%c0_15, %c0_16] : memref<1x8xf32, #tpu.memory_space<vmem>>, vector<1x8xf32>
    %18 = vector.broadcast %17 : vector<1x8xf32> to vector<2x8xf32>
    %19 = arith.addf %16, %18 : vector<2x8xf32>
    %c0_17 = arith.constant 0 : index
    %c0_18 = arith.constant 0 : index
    %20 = vector.load %arg7[%c0_17, %c0_18] : memref<32x8xf32, #tpu.memory_space<vmem>>, vector<32x8xf32>
    %cst_19 = arith.constant dense<0.000000e+00> : vector<2x8xf32>
    %21 = tpu.matmul %14, %20, %cst_19 {dimension_numbers = #tpu.dot_dimension_numbers<[1], [0], [0], [1], [0, 0, 1, 1], [], []>} : vector<2x32xf32>, vector<32x8xf32>, vector<2x8xf32> -> vector<2x8xf32>
    %c0_20 = arith.constant 0 : index
    %c0_21 = arith.constant 0 : index
    %22 = vector.load %arg8[%c0_20, %c0_21] : memref<1x8xf32, #tpu.memory_space<vmem>>, vector<1x8xf32>
    %23 = vector.broadcast %22 : vector<1x8xf32> to vector<2x8xf32>
    %24 = arith.addf %21, %23 : vector<2x8xf32>
    %c0_22 = arith.constant 0 : index
    %c0_23 = arith.constant 0 : index
    %25 = vector.load %arg10[%c0_22, %c0_23] : memref<2x8xf32, #tpu.memory_space<vmem>>, vector<2x8xf32>
    tpu.vector_store %arg10[%c0_22, %c0_23], %19 {strides = array<i32>} : memref<2x8xf32, #tpu.memory_space<vmem>>, vector<2x8xf32>,
    %c0_24 = arith.constant 0 : index
    %c0_25 = arith.constant 0 : index
    %26 = vector.load %arg11[%c0_24, %c0_25] : memref<2x8xf32, #tpu.memory_space<vmem>>, vector<2x8xf32>
    tpu.vector_store %arg11[%c0_24, %c0_25], %24 {strides = array<i32>} : memref<2x8xf32, #tpu.memory_space<vmem>>, vector<2x8xf32>,
    %cst_26 = arith.constant 5.000000e-01 : f32
    %27 = vector.broadcast %cst_26 : f32 to vector<2x8xf32>
    %28 = arith.mulf %27, %24 : vector<2x8xf32>
    %29 = math.exp %28 : vector<2x8xf32>
    %c0_27 = arith.constant 0 : index
    %c0_28 = arith.constant 0 : index
    %30 = vector.load %arg9[%c0_27, %c0_28] : memref<2x8xf32, #tpu.memory_space<vmem>>, vector<2x8xf32>
    %31 = arith.mulf %29, %30 : vector<2x8xf32>
    %32 = arith.addf %19, %31 : vector<2x8xf32>
    %c0_29 = arith.constant 0 : index
    %c0_30 = arith.constant 0 : index
    %33 = vector.load %arg12[%c0_29, %c0_30] : memref<2x8xf32, #tpu.memory_space<vmem>>, vector<2x8xf32>
    tpu.vector_store %arg12[%c0_29, %c0_30], %32 {strides = array<i32>} : memref<2x8xf32, #tpu.memory_space<vmem>>, vector<2x8xf32>,
    return
  }
}

module attributes {stable_mosaic.version = 11 : i64} {
  func.func @_decoder_fc_kernel(%arg0: memref<2x8xf32, #tpu.memory_space<vmem>>, %arg1: memref<8x32xf32, #tpu.memory_space<vmem>>, %arg2: memref<1x32xf32, #tpu.memory_space<vmem>>, %arg3: memref<32x32xf32, #tpu.memory_space<vmem>>, %arg4: memref<1x32xf32, #tpu.memory_space<vmem>>, %arg5: memref<32x128xf32, #tpu.memory_space<vmem>>, %arg6: memref<1x128xf32, #tpu.memory_space<vmem>>, %arg7: memref<2x128xf32, #tpu.memory_space<vmem>>) attributes {dimension_semantics = [], scalar_prefetch = 0 : i64, scratch_operands = 0 : i64, tpu.core_type = #tpu.core_type<tc>} {
    %c0 = arith.constant 0 : index
    %c0_0 = arith.constant 0 : index
    %0 = vector.load %arg0[%c0, %c0_0] : memref<2x8xf32, #tpu.memory_space<vmem>>, vector<2x8xf32>
    %c0_1 = arith.constant 0 : index
    %c0_2 = arith.constant 0 : index
    %1 = vector.load %arg1[%c0_1, %c0_2] : memref<8x32xf32, #tpu.memory_space<vmem>>, vector<8x32xf32>
    %cst = arith.constant dense<0.000000e+00> : vector<2x32xf32>
    %2 = tpu.matmul %0, %1, %cst {dimension_numbers = #tpu.dot_dimension_numbers<[1], [0], [0], [1], [0, 0, 1, 1], [], []>} : vector<2x8xf32>, vector<8x32xf32>, vector<2x32xf32> -> vector<2x32xf32>
    %c0_3 = arith.constant 0 : index
    %c0_4 = arith.constant 0 : index
    %3 = vector.load %arg2[%c0_3, %c0_4] : memref<1x32xf32, #tpu.memory_space<vmem>>, vector<1x32xf32>
    %4 = vector.broadcast %3 : vector<1x32xf32> to vector<2x32xf32>
    %5 = arith.addf %2, %4 : vector<2x32xf32>
    %cst_5 = arith.constant 0.000000e+00 : f32
    %6 = vector.broadcast %cst_5 : f32 to vector<2x32xf32>
    %7 = arith.maximumf %5, %6 : vector<2x32xf32>
    %c0_6 = arith.constant 0 : index
    %c0_7 = arith.constant 0 : index
    %8 = vector.load %arg3[%c0_6, %c0_7] : memref<32x32xf32, #tpu.memory_space<vmem>>, vector<32x32xf32>
    %cst_8 = arith.constant dense<0.000000e+00> : vector<2x32xf32>
    %9 = tpu.matmul %7, %8, %cst_8 {dimension_numbers = #tpu.dot_dimension_numbers<[1], [0], [0], [1], [0, 0, 1, 1], [], []>} : vector<2x32xf32>, vector<32x32xf32>, vector<2x32xf32> -> vector<2x32xf32>
    %c0_9 = arith.constant 0 : index
    %c0_10 = arith.constant 0 : index
    %10 = vector.load %arg4[%c0_9, %c0_10] : memref<1x32xf32, #tpu.memory_space<vmem>>, vector<1x32xf32>
    %11 = vector.broadcast %10 : vector<1x32xf32> to vector<2x32xf32>
    %12 = arith.addf %9, %11 : vector<2x32xf32>
    %cst_11 = arith.constant 0.000000e+00 : f32
    %13 = vector.broadcast %cst_11 : f32 to vector<2x32xf32>
    %14 = arith.maximumf %12, %13 : vector<2x32xf32>
    %c0_12 = arith.constant 0 : index
    %c0_13 = arith.constant 0 : index
    %15 = vector.load %arg5[%c0_12, %c0_13] : memref<32x128xf32, #tpu.memory_space<vmem>>, vector<32x128xf32>
    %cst_14 = arith.constant dense<0.000000e+00> : vector<2x128xf32>
    %16 = tpu.matmul %14, %15, %cst_14 {dimension_numbers = #tpu.dot_dimension_numbers<[1], [0], [0], [1], [0, 0, 1, 1], [], []>} : vector<2x32xf32>, vector<32x128xf32>, vector<2x128xf32> -> vector<2x128xf32>
    %c0_15 = arith.constant 0 : index
    %c0_16 = arith.constant 0 : index
    %17 = vector.load %arg6[%c0_15, %c0_16] : memref<1x128xf32, #tpu.memory_space<vmem>>, vector<1x128xf32>
    %18 = vector.broadcast %17 : vector<1x128xf32> to vector<2x128xf32>
    %19 = arith.addf %16, %18 : vector<2x128xf32>
    %cst_17 = arith.constant 0.000000e+00 : f32
    %20 = vector.broadcast %cst_17 : f32 to vector<2x128xf32>
    %21 = arith.maximumf %19, %20 : vector<2x128xf32>
    %c0_18 = arith.constant 0 : index
    %c0_19 = arith.constant 0 : index
    %22 = vector.load %arg7[%c0_18, %c0_19] : memref<2x128xf32, #tpu.memory_space<vmem>>, vector<2x128xf32>
    tpu.vector_store %arg7[%c0_18, %c0_19], %21 {strides = array<i32>} : memref<2x128xf32, #tpu.memory_space<vmem>>, vector<2x128xf32>,
    return
  }
}

module attributes {stable_mosaic.version = 11 : i64} {
  func.func @_conv_gemm_kernel(%arg0: i32, %arg1: memref<32x72xf32, #tpu.memory_space<vmem>>, %arg2: memref<72x32xf32, #tpu.memory_space<vmem>>, %arg3: memref<32x1xf32, #tpu.memory_space<vmem>>, %arg4: memref<32x32xf32, #tpu.memory_space<vmem>>) attributes {dimension_semantics = [#tpu.dimension_semantics<parallel>], iteration_bounds = array<i64: 1>, scalar_prefetch = 0 : i64, scratch_operands = 0 : i64, tpu.core_type = #tpu.core_type<tc>, window_params = [{pipeline_mode = #tpu.pipeline_mode<synchronous>, transform_indices = @transform_0, window_bounds = array<i64: 32, 72>}, {transform_indices = @transform_1, window_bounds = array<i64: 72, 32>}, {pipeline_mode = #tpu.pipeline_mode<synchronous>, transform_indices = @transform_2, window_bounds = array<i64: 32, 1>}, {transform_indices = @transform_3, window_bounds = array<i64: 32, 32>}]} {
    %c0 = arith.constant 0 : index
    %c0_0 = arith.constant 0 : index
    %0 = vector.load %arg1[%c0, %c0_0] : memref<32x72xf32, #tpu.memory_space<vmem>>, vector<32x72xf32>
    %c0_1 = arith.constant 0 : index
    %c0_2 = arith.constant 0 : index
    %1 = vector.load %arg2[%c0_1, %c0_2] : memref<72x32xf32, #tpu.memory_space<vmem>>, vector<72x32xf32>
    %cst = arith.constant dense<0.000000e+00> : vector<32x32xf32>
    %2 = tpu.matmul %0, %1, %cst {dimension_numbers = #tpu.dot_dimension_numbers<[1], [0], [0], [1], [0, 0, 1, 1], [], []>} : vector<32x72xf32>, vector<72x32xf32>, vector<32x32xf32> -> vector<32x32xf32>
    %c0_3 = arith.constant 0 : index
    %c0_4 = arith.constant 0 : index
    %3 = vector.load %arg3[%c0_3, %c0_4] : memref<32x1xf32, #tpu.memory_space<vmem>>, vector<32x1xf32>
    %4 = vector.broadcast %3 : vector<32x1xf32> to vector<32x32xf32>
    %5 = arith.addf %2, %4 : vector<32x32xf32>
    %cst_5 = arith.constant 0.000000e+00 : f32
    %6 = vector.broadcast %cst_5 : f32 to vector<32x32xf32>
    %7 = arith.maximumf %5, %6 : vector<32x32xf32>
    %c0_6 = arith.constant 0 : index
    %c0_7 = arith.constant 0 : index
    %8 = vector.load %arg4[%c0_6, %c0_7] : memref<32x32xf32, #tpu.memory_space<vmem>>, vector<32x32xf32>
    tpu.vector_store %arg4[%c0_6, %c0_7], %7 {strides = array<i32>} : memref<32x32xf32, #tpu.memory_space<vmem>>, vector<32x32xf32>,
    return
  }
  func.func @transform_0(%arg0: i32) -> (i32, i32) {
    %c0_i32 = arith.constant 0 : i32
    %c0_i32_0 = arith.constant 0 : i32
    %c0_i32_1 = arith.constant 0 : i32
    return %c0_i32, %c0_i32_0 : i32, i32
  }
  func.func @transform_1(%arg0: i32) -> (i32, i32) {
    %c0_i32 = arith.constant 0 : i32
    %c0_i32_0 = arith.constant 0 : i32
    return %c0_i32, %arg0 : i32, i32
  }
  func.func @transform_2(%arg0: i32) -> (i32, i32) {
    %c0_i32 = arith.constant 0 : i32
    %c0_i32_0 = arith.constant 0 : i32
    %c0_i32_1 = arith.constant 0 : i32
    return %c0_i32, %c0_i32_0 : i32, i32
  }
  func.func @transform_3(%arg0: i32) -> (i32, i32) {
    %c0_i32 = arith.constant 0 : i32
    %c0_i32_0 = arith.constant 0 : i32
    return %c0_i32, %arg0 : i32, i32
  }
}

module attributes {stable_mosaic.version = 11 : i64} {
  func.func @_conv_gemm_kernel(%arg0: i32, %arg1: memref<32x72xf32, #tpu.memory_space<vmem>>, %arg2: memref<72x128xf32, #tpu.memory_space<vmem>>, %arg3: memref<32x1xf32, #tpu.memory_space<vmem>>, %arg4: memref<32x128xf32, #tpu.memory_space<vmem>>) attributes {dimension_semantics = [#tpu.dimension_semantics<parallel>], iteration_bounds = array<i64: 1>, scalar_prefetch = 0 : i64, scratch_operands = 0 : i64, tpu.core_type = #tpu.core_type<tc>, window_params = [{pipeline_mode = #tpu.pipeline_mode<synchronous>, transform_indices = @transform_0, window_bounds = array<i64: 32, 72>}, {transform_indices = @transform_1, window_bounds = array<i64: 72, 128>}, {pipeline_mode = #tpu.pipeline_mode<synchronous>, transform_indices = @transform_2, window_bounds = array<i64: 32, 1>}, {transform_indices = @transform_3, window_bounds = array<i64: 32, 128>}]} {
    %c0 = arith.constant 0 : index
    %c0_0 = arith.constant 0 : index
    %0 = vector.load %arg1[%c0, %c0_0] : memref<32x72xf32, #tpu.memory_space<vmem>>, vector<32x72xf32>
    %c0_1 = arith.constant 0 : index
    %c0_2 = arith.constant 0 : index
    %1 = vector.load %arg2[%c0_1, %c0_2] : memref<72x128xf32, #tpu.memory_space<vmem>>, vector<72x128xf32>
    %cst = arith.constant dense<0.000000e+00> : vector<32x128xf32>
    %2 = tpu.matmul %0, %1, %cst {dimension_numbers = #tpu.dot_dimension_numbers<[1], [0], [0], [1], [0, 0, 1, 1], [], []>} : vector<32x72xf32>, vector<72x128xf32>, vector<32x128xf32> -> vector<32x128xf32>
    %c0_3 = arith.constant 0 : index
    %c0_4 = arith.constant 0 : index
    %3 = vector.load %arg3[%c0_3, %c0_4] : memref<32x1xf32, #tpu.memory_space<vmem>>, vector<32x1xf32>
    %4 = vector.broadcast %3 : vector<32x1xf32> to vector<32x128xf32>
    %5 = arith.addf %2, %4 : vector<32x128xf32>
    %cst_5 = arith.constant 0.000000e+00 : f32
    %6 = vector.broadcast %cst_5 : f32 to vector<32x128xf32>
    %7 = arith.maximumf %5, %6 : vector<32x128xf32>
    %c0_6 = arith.constant 0 : index
    %c0_7 = arith.constant 0 : index
    %8 = vector.load %arg4[%c0_6, %c0_7] : memref<32x128xf32, #tpu.memory_space<vmem>>, vector<32x128xf32>
    tpu.vector_store %arg4[%c0_6, %c0_7], %7 {strides = array<i32>} : memref<32x128xf32, #tpu.memory_space<vmem>>, vector<32x128xf32>,
    return
  }
  func.func @transform_0(%arg0: i32) -> (i32, i32) {
    %c0_i32 = arith.constant 0 : i32
    %c0_i32_0 = arith.constant 0 : i32
    %c0_i32_1 = arith.constant 0 : i32
    return %c0_i32, %c0_i32_0 : i32, i32
  }
  func.func @transform_1(%arg0: i32) -> (i32, i32) {
    %c0_i32 = arith.constant 0 : i32
    %c0_i32_0 = arith.constant 0 : i32
    return %c0_i32, %arg0 : i32, i32
  }
  func.func @transform_2(%arg0: i32) -> (i32, i32) {
    %c0_i32 = arith.constant 0 : i32
    %c0_i32_0 = arith.constant 0 : i32
    %c0_i32_1 = arith.constant 0 : i32
    return %c0_i32, %c0_i32_0 : i32, i32
  }
  func.func @transform_3(%arg0: i32) -> (i32, i32) {
    %c0_i32 = arith.constant 0 : i32
    %c0_i32_0 = arith.constant 0 : i32
    return %c0_i32, %arg0 : i32, i32
  }
}

module attributes {stable_mosaic.version = 11 : i64} {
  func.func @_conv_gemm_kernel(%arg0: i32, %arg1: memref<32x72xf32, #tpu.memory_space<vmem>>, %arg2: memref<72x512xf32, #tpu.memory_space<vmem>>, %arg3: memref<32x1xf32, #tpu.memory_space<vmem>>, %arg4: memref<32x512xf32, #tpu.memory_space<vmem>>) attributes {dimension_semantics = [#tpu.dimension_semantics<parallel>], iteration_bounds = array<i64: 1>, scalar_prefetch = 0 : i64, scratch_operands = 0 : i64, tpu.core_type = #tpu.core_type<tc>, window_params = [{pipeline_mode = #tpu.pipeline_mode<synchronous>, transform_indices = @transform_0, window_bounds = array<i64: 32, 72>}, {transform_indices = @transform_1, window_bounds = array<i64: 72, 512>}, {pipeline_mode = #tpu.pipeline_mode<synchronous>, transform_indices = @transform_2, window_bounds = array<i64: 32, 1>}, {transform_indices = @transform_3, window_bounds = array<i64: 32, 512>}]} {
    %c0 = arith.constant 0 : index
    %c0_0 = arith.constant 0 : index
    %0 = vector.load %arg1[%c0, %c0_0] : memref<32x72xf32, #tpu.memory_space<vmem>>, vector<32x72xf32>
    %c0_1 = arith.constant 0 : index
    %c0_2 = arith.constant 0 : index
    %1 = vector.load %arg2[%c0_1, %c0_2] : memref<72x512xf32, #tpu.memory_space<vmem>>, vector<72x512xf32>
    %cst = arith.constant dense<0.000000e+00> : vector<32x512xf32>
    %2 = tpu.matmul %0, %1, %cst {dimension_numbers = #tpu.dot_dimension_numbers<[1], [0], [0], [1], [0, 0, 1, 1], [], []>} : vector<32x72xf32>, vector<72x512xf32>, vector<32x512xf32> -> vector<32x512xf32>
    %c0_3 = arith.constant 0 : index
    %c0_4 = arith.constant 0 : index
    %3 = vector.load %arg3[%c0_3, %c0_4] : memref<32x1xf32, #tpu.memory_space<vmem>>, vector<32x1xf32>
    %4 = vector.broadcast %3 : vector<32x1xf32> to vector<32x512xf32>
    %5 = arith.addf %2, %4 : vector<32x512xf32>
    %cst_5 = arith.constant 0.000000e+00 : f32
    %6 = vector.broadcast %cst_5 : f32 to vector<32x512xf32>
    %7 = arith.maximumf %5, %6 : vector<32x512xf32>
    %c0_6 = arith.constant 0 : index
    %c0_7 = arith.constant 0 : index
    %8 = vector.load %arg4[%c0_6, %c0_7] : memref<32x512xf32, #tpu.memory_space<vmem>>, vector<32x512xf32>
    tpu.vector_store %arg4[%c0_6, %c0_7], %7 {strides = array<i32>} : memref<32x512xf32, #tpu.memory_space<vmem>>, vector<32x512xf32>,
    return
  }
  func.func @transform_0(%arg0: i32) -> (i32, i32) {
    %c0_i32 = arith.constant 0 : i32
    %c0_i32_0 = arith.constant 0 : i32
    %c0_i32_1 = arith.constant 0 : i32
    return %c0_i32, %c0_i32_0 : i32, i32
  }
  func.func @transform_1(%arg0: i32) -> (i32, i32) {
    %c0_i32 = arith.constant 0 : i32
    %c0_i32_0 = arith.constant 0 : i32
    return %c0_i32, %arg0 : i32, i32
  }
  func.func @transform_2(%arg0: i32) -> (i32, i32) {
    %c0_i32 = arith.constant 0 : i32
    %c0_i32_0 = arith.constant 0 : i32
    %c0_i32_1 = arith.constant 0 : i32
    return %c0_i32, %c0_i32_0 : i32, i32
  }
  func.func @transform_3(%arg0: i32) -> (i32, i32) {
    %c0_i32 = arith.constant 0 : i32
    %c0_i32_0 = arith.constant 0 : i32
    return %c0_i32, %arg0 : i32, i32
  }
}

module attributes {stable_mosaic.version = 11 : i64} {
  func.func @_conv_gemm_kernel(%arg0: i32, %arg1: memref<4x72xf32, #tpu.memory_space<vmem>>, %arg2: memref<72x2048xf32, #tpu.memory_space<vmem>>, %arg3: memref<4x1xf32, #tpu.memory_space<vmem>>, %arg4: memref<4x2048xf32, #tpu.memory_space<vmem>>) attributes {dimension_semantics = [#tpu.dimension_semantics<parallel>], iteration_bounds = array<i64: 1>, scalar_prefetch = 0 : i64, scratch_operands = 0 : i64, tpu.core_type = #tpu.core_type<tc>, window_params = [{pipeline_mode = #tpu.pipeline_mode<synchronous>, transform_indices = @transform_0, window_bounds = array<i64: 4, 72>}, {transform_indices = @transform_1, window_bounds = array<i64: 72, 2048>}, {pipeline_mode = #tpu.pipeline_mode<synchronous>, transform_indices = @transform_2, window_bounds = array<i64: 4, 1>}, {transform_indices = @transform_3, window_bounds = array<i64: 4, 2048>}]} {
    %c0 = arith.constant 0 : index
    %c0_0 = arith.constant 0 : index
    %0 = vector.load %arg1[%c0, %c0_0] : memref<4x72xf32, #tpu.memory_space<vmem>>, vector<4x72xf32>
    %c0_1 = arith.constant 0 : index
    %c0_2 = arith.constant 0 : index
    %1 = vector.load %arg2[%c0_1, %c0_2] : memref<72x2048xf32, #tpu.memory_space<vmem>>, vector<72x2048xf32>
    %cst = arith.constant dense<0.000000e+00> : vector<4x2048xf32>
    %2 = tpu.matmul %0, %1, %cst {dimension_numbers = #tpu.dot_dimension_numbers<[1], [0], [0], [1], [0, 0, 1, 1], [], []>} : vector<4x72xf32>, vector<72x2048xf32>, vector<4x2048xf32> -> vector<4x2048xf32>
    %c0_3 = arith.constant 0 : index
    %c0_4 = arith.constant 0 : index
    %3 = vector.load %arg3[%c0_3, %c0_4] : memref<4x1xf32, #tpu.memory_space<vmem>>, vector<4x1xf32>
    %4 = vector.broadcast %3 : vector<4x1xf32> to vector<4x2048xf32>
    %5 = arith.addf %2, %4 : vector<4x2048xf32>
    %6 = arith.negf %5 : vector<4x2048xf32>
    %7 = math.exp %6 : vector<4x2048xf32>
    %cst_5 = arith.constant 1.000000e+00 : f32
    %8 = vector.broadcast %cst_5 : f32 to vector<4x2048xf32>
    %9 = arith.addf %8, %7 : vector<4x2048xf32>
    %10 = arith.divf %8, %9 : vector<4x2048xf32>
    %c0_6 = arith.constant 0 : index
    %c0_7 = arith.constant 0 : index
    %11 = vector.load %arg4[%c0_6, %c0_7] : memref<4x2048xf32, #tpu.memory_space<vmem>>, vector<4x2048xf32>
    tpu.vector_store %arg4[%c0_6, %c0_7], %10 {strides = array<i32>} : memref<4x2048xf32, #tpu.memory_space<vmem>>, vector<4x2048xf32>,
    return
  }
  func.func @transform_0(%arg0: i32) -> (i32, i32) {
    %c0_i32 = arith.constant 0 : i32
    %c0_i32_0 = arith.constant 0 : i32
    %c0_i32_1 = arith.constant 0 : i32
    return %c0_i32, %c0_i32_0 : i32, i32
  }
  func.func @transform_1(%arg0: i32) -> (i32, i32) {
    %c0_i32 = arith.constant 0 : i32
    %c0_i32_0 = arith.constant 0 : i32
    return %c0_i32, %arg0 : i32, i32
  }
  func.func @transform_2(%arg0: i32) -> (i32, i32) {
    %c0_i32 = arith.constant 0 : i32
    %c0_i32_0 = arith.constant 0 : i32
    %c0_i32_1 = arith.constant 0 : i32
    return %c0_i32, %c0_i32_0 : i32, i32
  }
  func.func @transform_3(%arg0: i32) -> (i32, i32) {
    %c0_i32 = arith.constant 0 : i32
    %c0_i32_0 = arith.constant 0 : i32
    return %c0_i32, %arg0 : i32, i32
  }
}

module attributes {stable_mosaic.version = 11 : i64} {
  func.func @_conv_gemm_kernel(%arg0: i32, %arg1: memref<8x16xf32, #tpu.memory_space<vmem>>, %arg2: memref<16x2048xf32, #tpu.memory_space<vmem>>, %arg3: memref<8x1xf32, #tpu.memory_space<vmem>>, %arg4: memref<8x2048xf32, #tpu.memory_space<vmem>>) attributes {dimension_semantics = [#tpu.dimension_semantics<parallel>], iteration_bounds = array<i64: 2>, scalar_prefetch = 0 : i64, scratch_operands = 0 : i64, tpu.core_type = #tpu.core_type<tc>, window_params = [{pipeline_mode = #tpu.pipeline_mode<synchronous>, transform_indices = @transform_0, window_bounds = array<i64: 8, 16>}, {transform_indices = @transform_1, window_bounds = array<i64: 16, 2048>}, {pipeline_mode = #tpu.pipeline_mode<synchronous>, transform_indices = @transform_2, window_bounds = array<i64: 8, 1>}, {transform_indices = @transform_3, window_bounds = array<i64: 8, 2048>}]} {
    %c0 = arith.constant 0 : index
    %c0_0 = arith.constant 0 : index
    %0 = vector.load %arg1[%c0, %c0_0] : memref<8x16xf32, #tpu.memory_space<vmem>>, vector<8x16xf32>
    %c0_1 = arith.constant 0 : index
    %c0_2 = arith.constant 0 : index
    %1 = vector.load %arg2[%c0_1, %c0_2] : memref<16x2048xf32, #tpu.memory_space<vmem>>, vector<16x2048xf32>
    %cst = arith.constant dense<0.000000e+00> : vector<8x2048xf32>
    %2 = tpu.matmul %0, %1, %cst {dimension_numbers = #tpu.dot_dimension_numbers<[1], [0], [0], [1], [0, 0, 1, 1], [], []>} : vector<8x16xf32>, vector<16x2048xf32>, vector<8x2048xf32> -> vector<8x2048xf32>
    %c0_3 = arith.constant 0 : index
    %c0_4 = arith.constant 0 : index
    %3 = vector.load %arg3[%c0_3, %c0_4] : memref<8x1xf32, #tpu.memory_space<vmem>>, vector<8x1xf32>
    %4 = vector.broadcast %3 : vector<8x1xf32> to vector<8x2048xf32>
    %5 = arith.addf %2, %4 : vector<8x2048xf32>
    %cst_5 = arith.constant 0.000000e+00 : f32
    %6 = vector.broadcast %cst_5 : f32 to vector<8x2048xf32>
    %7 = arith.maximumf %5, %6 : vector<8x2048xf32>
    %c0_6 = arith.constant 0 : index
    %c0_7 = arith.constant 0 : index
    %8 = vector.load %arg4[%c0_6, %c0_7] : memref<8x2048xf32, #tpu.memory_space<vmem>>, vector<8x2048xf32>
    tpu.vector_store %arg4[%c0_6, %c0_7], %7 {strides = array<i32>} : memref<8x2048xf32, #tpu.memory_space<vmem>>, vector<8x2048xf32>,
    return
  }
  func.func @transform_0(%arg0: i32) -> (i32, i32) {
    %c0_i32 = arith.constant 0 : i32
    %c0_i32_0 = arith.constant 0 : i32
    %c0_i32_1 = arith.constant 0 : i32
    return %c0_i32, %c0_i32_0 : i32, i32
  }
  func.func @transform_1(%arg0: i32) -> (i32, i32) {
    %c0_i32 = arith.constant 0 : i32
    %c0_i32_0 = arith.constant 0 : i32
    return %c0_i32, %arg0 : i32, i32
  }
  func.func @transform_2(%arg0: i32) -> (i32, i32) {
    %c0_i32 = arith.constant 0 : i32
    %c0_i32_0 = arith.constant 0 : i32
    %c0_i32_1 = arith.constant 0 : i32
    return %c0_i32, %c0_i32_0 : i32, i32
  }
  func.func @transform_3(%arg0: i32) -> (i32, i32) {
    %c0_i32 = arith.constant 0 : i32
    %c0_i32_0 = arith.constant 0 : i32
    return %c0_i32, %arg0 : i32, i32
  }
}

module attributes {stable_mosaic.version = 11 : i64} {
  func.func @_conv_gemm_kernel(%arg0: i32, %arg1: memref<8x128xf32, #tpu.memory_space<vmem>>, %arg2: memref<128x1024xf32, #tpu.memory_space<vmem>>, %arg3: memref<8x1xf32, #tpu.memory_space<vmem>>, %arg4: memref<8x1024xf32, #tpu.memory_space<vmem>>) attributes {dimension_semantics = [#tpu.dimension_semantics<parallel>], iteration_bounds = array<i64: 1>, scalar_prefetch = 0 : i64, scratch_operands = 0 : i64, tpu.core_type = #tpu.core_type<tc>, window_params = [{pipeline_mode = #tpu.pipeline_mode<synchronous>, transform_indices = @transform_0, window_bounds = array<i64: 8, 128>}, {transform_indices = @transform_1, window_bounds = array<i64: 128, 1024>}, {pipeline_mode = #tpu.pipeline_mode<synchronous>, transform_indices = @transform_2, window_bounds = array<i64: 8, 1>}, {transform_indices = @transform_3, window_bounds = array<i64: 8, 1024>}]} {
    %c0 = arith.constant 0 : index
    %c0_0 = arith.constant 0 : index
    %0 = vector.load %arg1[%c0, %c0_0] : memref<8x128xf32, #tpu.memory_space<vmem>>, vector<8x128xf32>
    %c0_1 = arith.constant 0 : index
    %c0_2 = arith.constant 0 : index
    %1 = vector.load %arg2[%c0_1, %c0_2] : memref<128x1024xf32, #tpu.memory_space<vmem>>, vector<128x1024xf32>
    %cst = arith.constant dense<0.000000e+00> : vector<8x1024xf32>
    %2 = tpu.matmul %0, %1, %cst {dimension_numbers = #tpu.dot_dimension_numbers<[1], [0], [0], [1], [0, 0, 1, 1], [], []>} : vector<8x128xf32>, vector<128x1024xf32>, vector<8x1024xf32> -> vector<8x1024xf32>
    %c0_3 = arith.constant 0 : index
    %c0_4 = arith.constant 0 : index
    %3 = vector.load %arg3[%c0_3, %c0_4] : memref<8x1xf32, #tpu.memory_space<vmem>>, vector<8x1xf32>
    %4 = vector.broadcast %3 : vector<8x1xf32> to vector<8x1024xf32>
    %5 = arith.addf %2, %4 : vector<8x1024xf32>
    %cst_5 = arith.constant 0.000000e+00 : f32
    %6 = vector.broadcast %cst_5 : f32 to vector<8x1024xf32>
    %7 = arith.maximumf %5, %6 : vector<8x1024xf32>
    %c0_6 = arith.constant 0 : index
    %c0_7 = arith.constant 0 : index
    %8 = vector.load %arg4[%c0_6, %c0_7] : memref<8x1024xf32, #tpu.memory_space<vmem>>, vector<8x1024xf32>
    tpu.vector_store %arg4[%c0_6, %c0_7], %7 {strides = array<i32>} : memref<8x1024xf32, #tpu.memory_space<vmem>>, vector<8x1024xf32>,
    return
  }
  func.func @transform_0(%arg0: i32) -> (i32, i32) {
    %c0_i32 = arith.constant 0 : i32
    %c0_i32_0 = arith.constant 0 : i32
    %c0_i32_1 = arith.constant 0 : i32
    return %c0_i32, %c0_i32_0 : i32, i32
  }
  func.func @transform_1(%arg0: i32) -> (i32, i32) {
    %c0_i32 = arith.constant 0 : i32
    %c0_i32_0 = arith.constant 0 : i32
    return %c0_i32, %arg0 : i32, i32
  }
  func.func @transform_2(%arg0: i32) -> (i32, i32) {
    %c0_i32 = arith.constant 0 : i32
    %c0_i32_0 = arith.constant 0 : i32
    %c0_i32_1 = arith.constant 0 : i32
    return %c0_i32, %c0_i32_0 : i32, i32
  }
  func.func @transform_3(%arg0: i32) -> (i32, i32) {
    %c0_i32 = arith.constant 0 : i32
    %c0_i32_0 = arith.constant 0 : i32
    return %c0_i32, %arg0 : i32, i32
  }
}

module attributes {stable_mosaic.version = 11 : i64} {
  func.func @_conv_gemm_kernel(%arg0: i32, %arg1: memref<8x128xf32, #tpu.memory_space<vmem>>, %arg2: memref<128x256xf32, #tpu.memory_space<vmem>>, %arg3: memref<8x1xf32, #tpu.memory_space<vmem>>, %arg4: memref<8x256xf32, #tpu.memory_space<vmem>>) attributes {dimension_semantics = [#tpu.dimension_semantics<parallel>], iteration_bounds = array<i64: 1>, scalar_prefetch = 0 : i64, scratch_operands = 0 : i64, tpu.core_type = #tpu.core_type<tc>, window_params = [{pipeline_mode = #tpu.pipeline_mode<synchronous>, transform_indices = @transform_0, window_bounds = array<i64: 8, 128>}, {transform_indices = @transform_1, window_bounds = array<i64: 128, 256>}, {pipeline_mode = #tpu.pipeline_mode<synchronous>, transform_indices = @transform_2, window_bounds = array<i64: 8, 1>}, {transform_indices = @transform_3, window_bounds = array<i64: 8, 256>}]} {
    %c0 = arith.constant 0 : index
    %c0_0 = arith.constant 0 : index
    %0 = vector.load %arg1[%c0, %c0_0] : memref<8x128xf32, #tpu.memory_space<vmem>>, vector<8x128xf32>
    %c0_1 = arith.constant 0 : index
    %c0_2 = arith.constant 0 : index
    %1 = vector.load %arg2[%c0_1, %c0_2] : memref<128x256xf32, #tpu.memory_space<vmem>>, vector<128x256xf32>
    %cst = arith.constant dense<0.000000e+00> : vector<8x256xf32>
    %2 = tpu.matmul %0, %1, %cst {dimension_numbers = #tpu.dot_dimension_numbers<[1], [0], [0], [1], [0, 0, 1, 1], [], []>} : vector<8x128xf32>, vector<128x256xf32>, vector<8x256xf32> -> vector<8x256xf32>
    %c0_3 = arith.constant 0 : index
    %c0_4 = arith.constant 0 : index
    %3 = vector.load %arg3[%c0_3, %c0_4] : memref<8x1xf32, #tpu.memory_space<vmem>>, vector<8x1xf32>
    %4 = vector.broadcast %3 : vector<8x1xf32> to vector<8x256xf32>
    %5 = arith.addf %2, %4 : vector<8x256xf32>
    %cst_5 = arith.constant 0.000000e+00 : f32
    %6 = vector.broadcast %cst_5 : f32 to vector<8x256xf32>
    %7 = arith.maximumf %5, %6 : vector<8x256xf32>
    %c0_6 = arith.constant 0 : index
    %c0_7 = arith.constant 0 : index
    %8 = vector.load %arg4[%c0_6, %c0_7] : memref<8x256xf32, #tpu.memory_space<vmem>>, vector<8x256xf32>
    tpu.vector_store %arg4[%c0_6, %c0_7], %7 {strides = array<i32>} : memref<8x256xf32, #tpu.memory_space<vmem>>, vector<8x256xf32>,
    return
  }
  func.func @transform_0(%arg0: i32) -> (i32, i32) {
    %c0_i32 = arith.constant 0 : i32
    %c0_i32_0 = arith.constant 0 : i32
    %c0_i32_1 = arith.constant 0 : i32
    return %c0_i32, %c0_i32_0 : i32, i32
  }
  func.func @transform_1(%arg0: i32) -> (i32, i32) {
    %c0_i32 = arith.constant 0 : i32
    %c0_i32_0 = arith.constant 0 : i32
    return %c0_i32, %arg0 : i32, i32
  }
  func.func @transform_2(%arg0: i32) -> (i32, i32) {
    %c0_i32 = arith.constant 0 : i32
    %c0_i32_0 = arith.constant 0 : i32
    %c0_i32_1 = arith.constant 0 : i32
    return %c0_i32, %c0_i32_0 : i32, i32
  }
  func.func @transform_3(%arg0: i32) -> (i32, i32) {
    %c0_i32 = arith.constant 0 : i32
    %c0_i32_0 = arith.constant 0 : i32
    return %c0_i32, %arg0 : i32, i32
  }
}

module attributes {stable_mosaic.version = 11 : i64} {
  func.func @_conv_gemm_kernel(%arg0: i32, %arg1: memref<8x128xf32, #tpu.memory_space<vmem>>, %arg2: memref<128x64xf32, #tpu.memory_space<vmem>>, %arg3: memref<8x1xf32, #tpu.memory_space<vmem>>, %arg4: memref<8x64xf32, #tpu.memory_space<vmem>>) attributes {dimension_semantics = [#tpu.dimension_semantics<parallel>], iteration_bounds = array<i64: 1>, scalar_prefetch = 0 : i64, scratch_operands = 0 : i64, tpu.core_type = #tpu.core_type<tc>, window_params = [{pipeline_mode = #tpu.pipeline_mode<synchronous>, transform_indices = @transform_0, window_bounds = array<i64: 8, 128>}, {transform_indices = @transform_1, window_bounds = array<i64: 128, 64>}, {pipeline_mode = #tpu.pipeline_mode<synchronous>, transform_indices = @transform_2, window_bounds = array<i64: 8, 1>}, {transform_indices = @transform_3, window_bounds = array<i64: 8, 64>}]} {
    %c0 = arith.constant 0 : index
    %c0_0 = arith.constant 0 : index
    %0 = vector.load %arg1[%c0, %c0_0] : memref<8x128xf32, #tpu.memory_space<vmem>>, vector<8x128xf32>
    %c0_1 = arith.constant 0 : index
    %c0_2 = arith.constant 0 : index
    %1 = vector.load %arg2[%c0_1, %c0_2] : memref<128x64xf32, #tpu.memory_space<vmem>>, vector<128x64xf32>
    %cst = arith.constant dense<0.000000e+00> : vector<8x64xf32>
    %2 = tpu.matmul %0, %1, %cst {dimension_numbers = #tpu.dot_dimension_numbers<[1], [0], [0], [1], [0, 0, 1, 1], [], []>} : vector<8x128xf32>, vector<128x64xf32>, vector<8x64xf32> -> vector<8x64xf32>
    %c0_3 = arith.constant 0 : index
    %c0_4 = arith.constant 0 : index
    %3 = vector.load %arg3[%c0_3, %c0_4] : memref<8x1xf32, #tpu.memory_space<vmem>>, vector<8x1xf32>
    %4 = vector.broadcast %3 : vector<8x1xf32> to vector<8x64xf32>
    %5 = arith.addf %2, %4 : vector<8x64xf32>
    %cst_5 = arith.constant 0.000000e+00 : f32
    %6 = vector.broadcast %cst_5 : f32 to vector<8x64xf32>
    %7 = arith.maximumf %5, %6 : vector<8x64xf32>
    %c0_6 = arith.constant 0 : index
    %c0_7 = arith.constant 0 : index
    %8 = vector.load %arg4[%c0_6, %c0_7] : memref<8x64xf32, #tpu.memory_space<vmem>>, vector<8x64xf32>
    tpu.vector_store %arg4[%c0_6, %c0_7], %7 {strides = array<i32>} : memref<8x64xf32, #tpu.memory_space<vmem>>, vector<8x64xf32>,
    return
  }
  func.func @transform_0(%arg0: i32) -> (i32, i32) {
    %c0_i32 = arith.constant 0 : i32
    %c0_i32_0 = arith.constant 0 : i32
    %c0_i32_1 = arith.constant 0 : i32
    return %c0_i32, %c0_i32_0 : i32, i32
  }
  func.func @transform_1(%arg0: i32) -> (i32, i32) {
    %c0_i32 = arith.constant 0 : i32
    %c0_i32_0 = arith.constant 0 : i32
    return %c0_i32, %arg0 : i32, i32
  }
  func.func @transform_2(%arg0: i32) -> (i32, i32) {
    %c0_i32 = arith.constant 0 : i32
    %c0_i32_0 = arith.constant 0 : i32
    %c0_i32_1 = arith.constant 0 : i32
    return %c0_i32, %c0_i32_0 : i32, i32
  }
  func.func @transform_3(%arg0: i32) -> (i32, i32) {
    %c0_i32 = arith.constant 0 : i32
    %c0_i32_0 = arith.constant 0 : i32
    return %c0_i32, %arg0 : i32, i32
  }
}

module attributes {stable_mosaic.version = 11 : i64} {
  func.func @_disc_head_kernel(%arg0: memref<4x128xf32, #tpu.memory_space<vmem>>, %arg1: memref<128x1xf32, #tpu.memory_space<vmem>>, %arg2: memref<1x1xf32, #tpu.memory_space<vmem>>, %arg3: memref<4x1xf32, #tpu.memory_space<vmem>>) attributes {dimension_semantics = [], scalar_prefetch = 0 : i64, scratch_operands = 0 : i64, tpu.core_type = #tpu.core_type<tc>} {
    %c0 = arith.constant 0 : index
    %c0_0 = arith.constant 0 : index
    %0 = vector.load %arg0[%c0, %c0_0] : memref<4x128xf32, #tpu.memory_space<vmem>>, vector<4x128xf32>
    %c0_1 = arith.constant 0 : index
    %c0_2 = arith.constant 0 : index
    %1 = vector.load %arg1[%c0_1, %c0_2] : memref<128x1xf32, #tpu.memory_space<vmem>>, vector<128x1xf32>
    %cst = arith.constant dense<0.000000e+00> : vector<4x1xf32>
    %2 = tpu.matmul %0, %1, %cst {dimension_numbers = #tpu.dot_dimension_numbers<[1], [0], [0], [1], [0, 0, 1, 1], [], []>} : vector<4x128xf32>, vector<128x1xf32>, vector<4x1xf32> -> vector<4x1xf32>
    %c0_3 = arith.constant 0 : index
    %c0_4 = arith.constant 0 : index
    %3 = vector.load %arg2[%c0_3, %c0_4] : memref<1x1xf32, #tpu.memory_space<vmem>>, vector<1x1xf32>
    %4 = vector.broadcast %3 : vector<1x1xf32> to vector<4x1xf32>
    %5 = arith.addf %2, %4 : vector<4x1xf32>
    %6 = arith.negf %5 : vector<4x1xf32>
    %7 = math.exp %6 : vector<4x1xf32>
    %cst_5 = arith.constant 1.000000e+00 : f32
    %8 = vector.broadcast %cst_5 : f32 to vector<4x1xf32>
    %9 = arith.addf %8, %7 : vector<4x1xf32>
    %10 = arith.divf %8, %9 : vector<4x1xf32>
    %c0_6 = arith.constant 0 : index
    %c0_7 = arith.constant 0 : index
    %11 = vector.load %arg3[%c0_6, %c0_7] : memref<4x1xf32, #tpu.memory_space<vmem>>, vector<4x1xf32>
    tpu.vector_store %arg3[%c0_6, %c0_7], %10 {strides = array<i32>} : memref<4x1xf32, #tpu.memory_space<vmem>>, vector<4x1xf32>,
    return
  }
}

</mosaic_0001>

<bundles_post_ra>
// kernel: vaegan_forward.15
= control target key start
LH: loop header
LB: loop body
LE: loop exit
PB: predicated region body
PF: predicated region fallthrough
CT: control target
= control target key end

     0   :  { %v704_v3 = vmov 0.0   ;;  %v705_v8 = vmov 0   ;;  %vm53_vm0 = vcmask 130048   ;;  %s902_s1 = inlined_call_operand.vmem [shape: f32[16,2048], index: 1, kind: input, shape index: {}]   ;;  %s903_s0 = inlined_call_operand.vmem [shape: f32[8,16], index: 0, kind: input, shape index: {}]   ;;  %s904_s2 = inlined_call_operand.vmem [shape: f32[8,1], index: 2, kind: input, shape index: {}]   ;;  %s905_s3 = inlined_call_operand.vmem [shape: f32[8,2048], index: 3, kind: output, shape index: {}]  }
   0x1   :  { %v16_v0 = vld [vmem:[%s902_s1 + $0x8] sm:$0xff]  ;;  %v18_v2 = vld [vmem:[%s902_s1 + $0x18] sm:$0xff]  ;;  %121 = vmatprep.mubr.f32.mxu0 %v704_v3  ;;  %192 = vmatprep.mubr.f32.mxu1 %v704_v3  ;;  %v15_v6 = vld [vmem:[%s902_s1] sm:$0xff] }
   0x2   :  { %v32_v1 = vld [vmem:[%s902_s1 + $0x88] sm:$0xff]  ;;  %v34_v5 = vld [vmem:[%s902_s1 + $0x98] sm:$0xff]  ;;  %v31_v7 = vld [vmem:[%s902_s1 + $0x80] sm:$0xff]  ;;  %703 = vset.pattern.permute.xlu0 %v705_v8 }
   0x3   :  { %v669_v4 = vpack.c.bf16 %v32_v1, %v16_v0  ;;  %v673_v9 = vpack.c.bf16 %v34_v5, %v18_v2  ;;  %v671_v10 = vpack.c.bf16 %v31_v7, %v15_v6  ;;  %v17_v11 = vld [vmem:[%s902_s1 + $0x10] sm:$0xff]  ;;  %v755_v13 = vld [vmem:[%s903_s0] sm:$0xff]  ;;  %v20_v15 = vld [vmem:[%s902_s1 + $0x28] sm:$0xff] }
   0x4   :  { %v33_v12 = vld [vmem:[%s902_s1 + $0x90] sm:$0xff]  ;;  %v36_v16 = vld [vmem:[%s902_s1 + $0xa8] sm:$0xff]  ;;  %v22_v17 = vld [vmem:[%s902_s1 + $0x38] sm:$0xff] }
   0x5   :  { %670 = vmatprep.subr.bf16.mxu0 %v669_v4  ;;  %v675_v14 = vpack.c.bf16 %v33_v12, %v17_v11  ;;  %674 = vmatprep.subr.bf16.mxu1 %v673_v9  ;;  %v677_v18 = vpack.c.bf16 %v36_v16, %v20_v15  ;;  %v38_v19 = vld [vmem:[%s902_s1 + $0xb8] sm:$0xff]  ;;  %v19_v20 = vld [vmem:[%s902_s1 + $0x20] sm:$0xff]  ;;  %v21_v24 = vld [vmem:[%s902_s1 + $0x30] sm:$0xff] }
   0x6   :  { %672 = vmatpush1.bf16.msra.mxu0 %v671_v10  ;;  %v35_v21 = vld [vmem:[%s902_s1 + $0xa0] sm:$0xff]  ;;  %v681_v22 = vpack.c.bf16 %v38_v19, %v22_v17  ;;  %v37_v25 = vld [vmem:[%s902_s1 + $0xb0] sm:$0xff]  ;;  %v24_v26 = vld [vmem:[%s902_s1 + $0x48] sm:$0xff] }
   0x7   :  { %676 = vmatpush1.bf16.msra.mxu1 %v675_v14  ;;  %v679_v23 = vpack.c.bf16 %v35_v21, %v19_v20  ;;  %678 = vmatprep.subr.bf16.mxu0 %v677_v18  ;;  %v683_v27 = vpack.c.bf16 %v37_v25, %v21_v24  ;;  %v40_v28 = vld [vmem:[%s902_s1 + $0xc8] sm:$0xff]  ;;  %v26_v29 = vld [vmem:[%s902_s1 + $0x58] sm:$0xff]  ;;  %v23_v33 = vld [vmem:[%s902_s1 + $0x40] sm:$0xff] }
   0x8   :  { %v42_v30 = vld [vmem:[%s902_s1 + $0xd8] sm:$0xff]  ;;  %682 = vmatprep.subr.bf16.mxu1 %v681_v22  ;;  %v685_v31 = vpack.c.bf16 %v40_v28, %v24_v26  ;;  %v39_v34 = vld [vmem:[%s902_s1 + $0xc0] sm:$0xff]  ;;  %v25_v35 = vld [vmem:[%s902_s1 + $0x50] sm:$0xff] }
   0x9   :  { %661 = vmatmul.mubr.msk.f32.vlgmr.msra.gmra.mrb[0].mxu0 %vm53_vm0, %v755_v13  ;;  %v689_v32 = vpack.c.bf16 %v42_v30, %v26_v29  ;;  %v687_v36 = vpack.c.bf16 %v39_v34, %v23_v33  ;;  %v41_v37 = vld [vmem:[%s902_s1 + $0xd0] sm:$0xff]  ;;  %v28_v38 = vld [vmem:[%s902_s1 + $0x68] sm:$0xff]  ;;  %v30_v41 = vld [vmem:[%s902_s1 + $0x78] sm:$0xff] }
   0xa   :  { %662 = vmatmul.mubr.msk.f32.vlgmr.msra.gmra.mrb[0].mxu1 %vm53_vm0, %v755_v13  ;;  %680 = vmatpush1.bf16.msra.mxu0 %v679_v23  ;;  %v44_v39 = vld [vmem:[%s902_s1 + $0xe8] sm:$0xff]  ;;  %v691_v40 = vpack.c.bf16 %v41_v37, %v25_v35  ;;  %v46_v42 = vld [vmem:[%s902_s1 + $0xf8] sm:$0xff]  ;;  %v27_v43 = vld [vmem:[%s902_s1 + $0x60] sm:$0xff] }
   0xb   :  { %684 = vmatpush1.bf16.msra.mxu1 %v683_v27  ;;  %263 = vmatprep.mubr.f32.mxu0 %v704_v3  ;;  %v693_v44 = vpack.c.bf16 %v44_v39, %v28_v38  ;;  %v43_v45 = vld [vmem:[%s902_s1 + $0xe0] sm:$0xff]  ;;  %v29_v46 = vld [vmem:[%s902_s1 + $0x70] sm:$0xff]  ;;  %v697_v48 = vpack.c.bf16 %v46_v42, %v30_v41 }
   0xc   :  { %334 = vmatprep.mubr.f32.mxu1 %v704_v3  ;;  %686 = vmatprep.subr.bf16.mxu0 %v685_v31  ;;  %v45_v47 = vld [vmem:[%s902_s1 + $0xf0] sm:$0xff]  ;;  %v695_v49 = vpack.c.bf16 %v43_v45, %v27_v43  ;;  %v47_v51 = vld [vmem:[%s904_s2] sm:$0xff] }
   0xd   :  { %663 = vmatmul.mubr.msk.f32.vlgmr.msra.gmra.mrb[2].mxu0 %vm53_vm0, %v755_v13  ;;  %690 = vmatprep.subr.bf16.mxu1 %v689_v32  ;;  %v699_v50 = vpack.c.bf16 %v45_v47, %v29_v46 }
   0xe   :  { %664 = vmatmul.mubr.msk.f32.vlgmr.msra.gmra.mrb[2].mxu1 %vm53_vm0, %v755_v13  ;;  %688 = vmatpush1.bf16.msra.mxu0 %v687_v36 }
   0xf   :  { %692 = vmatpush1.bf16.msra.mxu1 %v691_v40  ;;  %405 = vmatprep.mubr.f32.mxu0 %v704_v3 }
  0x10   :  { %476 = vmatprep.mubr.f32.mxu1 %v704_v3  ;;  %694 = vmatprep.subr.bf16.mxu0 %v693_v44 }
  0x11   :  { %665 = vmatmul.mubr.msk.f32.vlgmr.msra.gmra.mrb[4].mxu0 %vm53_vm0, %v755_v13  ;;  %698 = vmatprep.subr.bf16.mxu1 %v697_v48 }
  0x12   :  { %666 = vmatmul.mubr.msk.f32.vlgmr.msra.gmra.mrb[4].mxu1 %vm53_vm0, %v755_v13  ;;  %696 = vmatpush1.bf16.msra.mxu0 %v695_v49 }
  0x13   :  { %700 = vmatpush1.bf16.msra.mxu1 %v699_v50  ;;  %547 = vmatprep.mubr.f32.mxu0 %v704_v3 }
  0x14   :  { %618 = vmatprep.mubr.f32.mxu1 %v704_v3  ;;  %50 = vperm.xlu0 %703, %v47_v51  }
  0x15   :  { %667 = vmatmul.mubr.msk.f32.vlgmr.msra.gmra.mrb[6].mxu0 %vm53_vm0, %v755_v13 }
  0x16   :  { %668 = vmatmul.mubr.msk.f32.vlgmr.msra.gmra.mrb[6].mxu1 %vm53_vm0, %v755_v13 }
  0x93   :  { %v51_v52 = vpop.permute.xlu0 %50 }
  0xdc   :  { %v123_v53 = vpop.f32.mrb[0].mxu0 }
  0xdd   :  { %v194_v54 = vpop.f32.mrb[0].mxu1  ;;  %v124_v55 = vadd.f32 %v123_v53, %v51_v52  ;;  %v125_v56 = vpop.f32.mrb[1].mxu0 }
  0xde   :  { %v195_v57 = vadd.f32 %v194_v54, %v51_v52  ;;  %v126_v58 = vadd.f32 %v125_v56, %v51_v52  ;;  %v196_v59 = vpop.f32.mrb[1].mxu1 }
  0xdf   :  { %v625_v60 = vmax.f32 %v124_v55, 0.0  ;;  %v197_v61 = vadd.f32 %v196_v59, %v51_v52 }
  0xe0   :  { %v627_v62 = vmax.f32 %v195_v57, 0.0  ;;  %v626_v63 = vmax.f32 %v126_v58, 0.0  ;;  %v265_v0 = vpop.f32.mrb[2].mxu0 }
  0xe1   :  { %641 = vst [vmem:[%s905_s3] sm:$0xff] %v625_v60  ;;  %v628_v1 = vmax.f32 %v197_v61, 0.0  ;;  %v266_v2 = vadd.f32 %v265_v0, %v51_v52  ;;  %v336_v3 = vpop.f32.mrb[2].mxu1  ;;  %v267_v4 = vpop.f32.mrb[3].mxu0 }
  0xe2   :  { %643 = vst [vmem:[%s905_s3 + $0x10] sm:$0xff] %v627_v62  ;;  %642 = vst [vmem:[%s905_s3 + $0x8] sm:$0xff] %v626_v63  ;;  %v337_v5 = vadd.f32 %v336_v3, %v51_v52  ;;  %v268_v6 = vadd.f32 %v267_v4, %v51_v52  ;;  %v338_v7 = vpop.f32.mrb[3].mxu1 }
  0xe3   :  { %644 = vst [vmem:[%s905_s3 + $0x18] sm:$0xff] %v628_v1  ;;  %v629_v8 = vmax.f32 %v266_v2, 0.0  ;;  %v339_v9 = vadd.f32 %v338_v7, %v51_v52 }
  0xe4   :  { %v631_v10 = vmax.f32 %v337_v5, 0.0  ;;  %v630_v11 = vmax.f32 %v268_v6, 0.0  ;;  %v407_v12 = vpop.f32.mrb[4].mxu0 }
  0xe5   :  { %645 = vst [vmem:[%s905_s3 + $0x20] sm:$0xff] %v629_v8  ;;  %v632_v13 = vmax.f32 %v339_v9, 0.0  ;;  %v408_v14 = vadd.f32 %v407_v12, %v51_v52  ;;  %v478_v15 = vpop.f32.mrb[4].mxu1  ;;  %v409_v16 = vpop.f32.mrb[5].mxu0 }
  0xe6   :  { %647 = vst [vmem:[%s905_s3 + $0x30] sm:$0xff] %v631_v10  ;;  %646 = vst [vmem:[%s905_s3 + $0x28] sm:$0xff] %v630_v11  ;;  %v479_v17 = vadd.f32 %v478_v15, %v51_v52  ;;  %v410_v18 = vadd.f32 %v409_v16, %v51_v52  ;;  %v480_v19 = vpop.f32.mrb[5].mxu1 }
  0xe7   :  { %648 = vst [vmem:[%s905_s3 + $0x38] sm:$0xff] %v632_v13  ;;  %v633_v20 = vmax.f32 %v408_v14, 0.0  ;;  %v481_v21 = vadd.f32 %v480_v19, %v51_v52 }
  0xe8   :  { %v635_v22 = vmax.f32 %v479_v17, 0.0  ;;  %v634_v23 = vmax.f32 %v410_v18, 0.0  ;;  %v549_v24 = vpop.f32.mrb[6].mxu0 }
  0xe9   :  { %649 = vst [vmem:[%s905_s3 + $0x40] sm:$0xff] %v633_v20  ;;  %v636_v25 = vmax.f32 %v481_v21, 0.0  ;;  %v550_v26 = vadd.f32 %v549_v24, %v51_v52  ;;  %v620_v27 = vpop.f32.mrb[6].mxu1  ;;  %v551_v28 = vpop.f32.mrb[7].mxu0 }
  0xea   :  { %651 = vst [vmem:[%s905_s3 + $0x50] sm:$0xff] %v635_v22  ;;  %650 = vst [vmem:[%s905_s3 + $0x48] sm:$0xff] %v634_v23  ;;  %v621_v29 = vadd.f32 %v620_v27, %v51_v52  ;;  %v552_v30 = vadd.f32 %v551_v28, %v51_v52  ;;  %v622_v31 = vpop.f32.mrb[7].mxu1 }
  0xeb   :  { %652 = vst [vmem:[%s905_s3 + $0x58] sm:$0xff] %v636_v25  ;;  %v637_v32 = vmax.f32 %v550_v26, 0.0  ;;  %v623_v33 = vadd.f32 %v622_v31, %v51_v52 }
  0xec   :  { %v639_v34 = vmax.f32 %v621_v29, 0.0  ;;  %v638_v35 = vmax.f32 %v552_v30, 0.0 }
  0xed   :  { %653 = vst [vmem:[%s905_s3 + $0x60] sm:$0xff] %v637_v32  ;;  %v640_v36 = vmax.f32 %v623_v33, 0.0 }
  0xee   :  { %655 = vst [vmem:[%s905_s3 + $0x70] sm:$0xff] %v639_v34  ;;  %654 = vst [vmem:[%s905_s3 + $0x68] sm:$0xff] %v638_v35 }
  0xef   :  { %656 = vst [vmem:[%s905_s3 + $0x78] sm:$0xff] %v640_v36 }

// kernel: vaegan_forward.16
= control target key start
LH: loop header
LB: loop body
LE: loop exit
PB: predicated region body
PF: predicated region fallthrough
CT: control target
= control target key end

     0   :  { %v306_v3 = vmov 0.0   ;;  %v307_v8 = vmov 0   ;;  %s538_s1 = inlined_call_operand.vmem [shape: f32[128,512], index: 1, kind: input, shape index: {}]   ;;  %s539_s2 = inlined_call_operand.vmem [shape: f32[8,1], index: 2, kind: input, shape index: {}]   ;;  %s540_s0 = inlined_call_operand.vmem [shape: f32[8,128], index: 0, kind: input, shape index: {}]   ;;  %s541_s3 = inlined_call_operand.vmem [shape: f32[8,512], index: 3, kind: output, shape index: {}]  }
   0x1   :  { %v16_v0 = vld [vmem:[%s538_s1 + $0x8] sm:$0xff]  ;;  %v18_v2 = vld [vmem:[%s538_s1 + $0x18] sm:$0xff]  ;;  %149 = vmatprep.mubr.f32.mxu0 %v306_v3  ;;  %220 = vmatprep.mubr.f32.mxu1 %v306_v3  ;;  %v15_v6 = vld [vmem:[%s538_s1] sm:$0xff] }
   0x2   :  { %v20_v1 = vld [vmem:[%s538_s1 + $0x28] sm:$0xff]  ;;  %v22_v5 = vld [vmem:[%s538_s1 + $0x38] sm:$0xff]  ;;  %v19_v7 = vld [vmem:[%s538_s1 + $0x20] sm:$0xff]  ;;  %305 = vset.pattern.permute.xlu0 %v307_v8 }
   0x3   :  { %v239_v4 = vpack.c.bf16 %v20_v1, %v16_v0  ;;  %v271_v9 = vpack.c.bf16 %v22_v5, %v18_v2  ;;  %v241_v10 = vpack.c.bf16 %v19_v7, %v15_v6  ;;  %v17_v11 = vld [vmem:[%s538_s1 + $0x10] sm:$0xff]  ;;  %v24_v13 = vld [vmem:[%s538_s1 + $0x48] sm:$0xff]  ;;  %v26_v16 = vld [vmem:[%s538_s1 + $0x58] sm:$0xff] }
   0x4   :  { %v21_v12 = vld [vmem:[%s538_s1 + $0x30] sm:$0xff]  ;;  %v28_v15 = vld [vmem:[%s538_s1 + $0x68] sm:$0xff]  ;;  %v30_v17 = vld [vmem:[%s538_s1 + $0x78] sm:$0xff] }
   0x5   :  { %240 = vmatprep.subr.bf16.mxu0 %v239_v4  ;;  %v273_v14 = vpack.c.bf16 %v21_v12, %v17_v11  ;;  %272 = vmatprep.subr.bf16.mxu1 %v271_v9  ;;  %v243_v18 = vpack.c.bf16 %v28_v15, %v24_v13  ;;  %v275_v19 = vpack.c.bf16 %v30_v17, %v26_v16  ;;  %v23_v20 = vld [vmem:[%s538_s1 + $0x40] sm:$0xff]  ;;  %v25_v22 = vld [vmem:[%s538_s1 + $0x50] sm:$0xff]  ;;  %v32_v25 = vld [vmem:[%s538_s1 + $0x88] sm:$0xff] }
   0x6   :  { %242 = vmatpush1.bf16.msra.mxu0 %v241_v10  ;;  %v27_v21 = vld [vmem:[%s538_s1 + $0x60] sm:$0xff]  ;;  %v29_v24 = vld [vmem:[%s538_s1 + $0x70] sm:$0xff]  ;;  %v36_v26 = vld [vmem:[%s538_s1 + $0xa8] sm:$0xff] }
   0x7   :  { %274 = vmatpush1.bf16.msra.mxu1 %v273_v14  ;;  %v245_v23 = vpack.c.bf16 %v27_v21, %v23_v20  ;;  %244 = vmatprep.subr.bf16.mxu0 %v243_v18  ;;  %v277_v27 = vpack.c.bf16 %v29_v24, %v25_v22  ;;  %v247_v28 = vpack.c.bf16 %v36_v26, %v32_v25  ;;  %v34_v29 = vld [vmem:[%s538_s1 + $0x98] sm:$0xff]  ;;  %v31_v31 = vld [vmem:[%s538_s1 + $0x80] sm:$0xff]  ;;  %v33_v34 = vld [vmem:[%s538_s1 + $0x90] sm:$0xff] }
   0x8   :  { %276 = vmatprep.subr.bf16.mxu1 %v275_v19  ;;  %v38_v30 = vld [vmem:[%s538_s1 + $0xb8] sm:$0xff]  ;;  %v35_v33 = vld [vmem:[%s538_s1 + $0xa0] sm:$0xff]  ;;  %v37_v35 = vld [vmem:[%s538_s1 + $0xb0] sm:$0xff] }
   0x9   :  { %v279_v32 = vpack.c.bf16 %v38_v30, %v34_v29  ;;  %v249_v36 = vpack.c.bf16 %v35_v33, %v31_v31  ;;  %v40_v37 = vld [vmem:[%s538_s1 + $0xc8] sm:$0xff]  ;;  %v42_v39 = vld [vmem:[%s538_s1 + $0xd8] sm:$0xff]  ;;  %v281_v40 = vpack.c.bf16 %v37_v35, %v33_v34  ;;  %v39_v43 = vld [vmem:[%s538_s1 + $0xc0] sm:$0xff] }
   0xa   :  { %246 = vmatpush1.bf16.msra.mxu0 %v245_v23  ;;  %v44_v38 = vld [vmem:[%s538_s1 + $0xe8] sm:$0xff]  ;;  %v46_v42 = vld [vmem:[%s538_s1 + $0xf8] sm:$0xff]  ;;  %v43_v44 = vld [vmem:[%s538_s1 + $0xe0] sm:$0xff] }
   0xb   :  { %278 = vmatpush1.bf16.msra.mxu1 %v277_v27  ;;  %248 = vmatprep.subr.bf16.mxu0 %v247_v28  ;;  %v251_v41 = vpack.c.bf16 %v44_v38, %v40_v37  ;;  %v283_v45 = vpack.c.bf16 %v46_v42, %v42_v39  ;;  %v41_v46 = vld [vmem:[%s538_s1 + $0xd0] sm:$0xff]  ;;  %v48_v48 = vld [vmem:[%s538_s1 + $0x108] sm:$0xff]  ;;  %v50_v50 = vld [vmem:[%s538_s1 + $0x118] sm:$0xff]  ;;  %v253_v52 = vpack.c.bf16 %v43_v44, %v39_v43 }
   0xc   :  { %280 = vmatprep.subr.bf16.mxu1 %v279_v32  ;;  %v45_v47 = vld [vmem:[%s538_s1 + $0xf0] sm:$0xff]  ;;  %v52_v49 = vld [vmem:[%s538_s1 + $0x128] sm:$0xff]  ;;  %v54_v51 = vld [vmem:[%s538_s1 + $0x138] sm:$0xff] }
   0xd   :  { %v285_v53 = vpack.c.bf16 %v45_v47, %v41_v46  ;;  %v255_v54 = vpack.c.bf16 %v52_v49, %v48_v48  ;;  %v47_v55 = vld [vmem:[%s538_s1 + $0x100] sm:$0xff]  ;;  %v49_v57 = vld [vmem:[%s538_s1 + $0x110] sm:$0xff]  ;;  %v287_v58 = vpack.c.bf16 %v54_v51, %v50_v50  ;;  %v56_v60 = vld [vmem:[%s538_s1 + $0x148] sm:$0xff] }
   0xe   :  { %250 = vmatpush1.bf16.msra.mxu0 %v249_v36  ;;  %v51_v56 = vld [vmem:[%s538_s1 + $0x120] sm:$0xff]  ;;  %v53_v59 = vld [vmem:[%s538_s1 + $0x130] sm:$0xff]  ;;  %v60_v61 = vld [vmem:[%s538_s1 + $0x168] sm:$0xff] }
   0xf   :  { %282 = vmatpush1.bf16.msra.mxu1 %v281_v40  ;;  %252 = vmatprep.subr.bf16.mxu0 %v251_v41  ;;  %v58_v62 = vld [vmem:[%s538_s1 + $0x158] sm:$0xff]  ;;  %v257_v0 = vpack.c.bf16 %v51_v56, %v47_v55  ;;  %v289_v1 = vpack.c.bf16 %v53_v59, %v49_v57  ;;  %v259_v2 = vpack.c.bf16 %v60_v61, %v56_v60  ;;  %v55_v3 = vld [vmem:[%s538_s1 + $0x140] sm:$0xff]  ;;  %v57_v5 = vld [vmem:[%s538_s1 + $0x150] sm:$0xff] }
  0x10   :  { %284 = vmatprep.subr.bf16.mxu1 %v283_v45  ;;  %v62_v63 = vld [vmem:[%s538_s1 + $0x178] sm:$0xff]  ;;  %v59_v4 = vld [vmem:[%s538_s1 + $0x160] sm:$0xff]  ;;  %v61_v7 = vld [vmem:[%s538_s1 + $0x170] sm:$0xff] }
  0x11   :  { %v291_v6 = vpack.c.bf16 %v62_v63, %v58_v62  ;;  %v64_v8 = vld [vmem:[%s538_s1 + $0x188] sm:$0xff]  ;;  %v66_v10 = vld [vmem:[%s538_s1 + $0x198] sm:$0xff]  ;;  %v261_v12 = vpack.c.bf16 %v59_v4, %v55_v3  ;;  %v63_v13 = vld [vmem:[%s538_s1 + $0x180] sm:$0xff]  ;;  %v293_v14 = vpack.c.bf16 %v61_v7, %v57_v5 }
  0x12   :  { %254 = vmatpush1.bf16.msra.mxu0 %v253_v52  ;;  %v68_v9 = vld [vmem:[%s538_s1 + $0x1a8] sm:$0xff]  ;;  %v70_v11 = vld [vmem:[%s538_s1 + $0x1b8] sm:$0xff]  ;;  %v67_v16 = vld [vmem:[%s538_s1 + $0x1a0] sm:$0xff] }
  0x13   :  { %286 = vmatpush1.bf16.msra.mxu1 %v285_v53  ;;  %256 = vmatprep.subr.bf16.mxu0 %v255_v54  ;;  %v263_v15 = vpack.c.bf16 %v68_v9, %v64_v8  ;;  %v65_v17 = vld [vmem:[%s538_s1 + $0x190] sm:$0xff]  ;;  %v79_v18 = vld [vmem:[%s539_s2] sm:$0xff]  ;;  %v295_v19 = vpack.c.bf16 %v70_v11, %v66_v10  ;;  %v72_v21 = vld [vmem:[%s538_s1 + $0x1c8] sm:$0xff]  ;;  %v265_v25 = vpack.c.bf16 %v67_v16, %v63_v13 }
  0x14   :  { %288 = vmatprep.subr.bf16.mxu1 %v287_v58  ;;  %v69_v20 = vld [vmem:[%s538_s1 + $0x1b0] sm:$0xff]  ;;  %v76_v22 = vld [vmem:[%s538_s1 + $0x1e8] sm:$0xff]  ;;  %82 = vperm.xlu0 %305, %v79_v18   ;;  %v74_v23 = vld [vmem:[%s538_s1 + $0x1d8] sm:$0xff] }
  0x15   :  { %v78_v24 = vld [vmem:[%s538_s1 + $0x1f8] sm:$0xff]  ;;  %v297_v26 = vpack.c.bf16 %v69_v20, %v65_v17  ;;  %v267_v27 = vpack.c.bf16 %v76_v22, %v72_v21  ;;  %v71_v28 = vld [vmem:[%s538_s1 + $0x1c0] sm:$0xff]  ;;  %v73_v31 = vld [vmem:[%s538_s1 + $0x1d0] sm:$0xff] }
  0x16   :  { %258 = vmatpush1.bf16.msra.mxu0 %v257_v0  ;;  %v75_v29 = vld [vmem:[%s538_s1 + $0x1e0] sm:$0xff]  ;;  %v299_v30 = vpack.c.bf16 %v78_v24, %v74_v23  ;;  %v77_v32 = vld [vmem:[%s538_s1 + $0x1f0] sm:$0xff] }
  0x17   :  { %290 = vmatpush1.bf16.msra.mxu1 %v289_v1  ;;  %260 = vmatprep.subr.bf16.mxu0 %v259_v2  ;;  %v269_v33 = vpack.c.bf16 %v75_v29, %v71_v28  ;;  %v301_v34 = vpack.c.bf16 %v77_v32, %v73_v31  ;;  %v14_v35 = vld [vmem:[%s540_s0] sm:$0xff] }
  0x18   :  { %292 = vmatprep.subr.bf16.mxu1 %v291_v6 }
  0x1a   :  { %262 = vmatpush1.bf16.msra.mxu0 %v261_v12 }
  0x1b   :  { %294 = vmatpush1.bf16.msra.mxu1 %v293_v14  ;;  %264 = vmatprep.subr.bf16.mxu0 %v263_v15 }
  0x1c   :  { %296 = vmatprep.subr.bf16.mxu1 %v295_v19 }
  0x1e   :  { %266 = vmatpush1.bf16.msra.mxu0 %v265_v25 }
  0x1f   :  { %298 = vmatpush1.bf16.msra.mxu1 %v297_v26  ;;  %268 = vmatprep.subr.bf16.mxu0 %v267_v27 }
  0x20   :  { %300 = vmatprep.subr.bf16.mxu1 %v299_v30 }
  0x22   :  { %270 = vmatpush1.bf16.msra.mxu0 %v269_v33 }
  0x23   :  { %302 = vmatpush1.bf16.msra.mxu1 %v301_v34 }
  0x25   :  { %150 = vmatmul.mubr.f32.vlgmr.msra.gmra.mrb[0].mxu0 %v14_v35 }
  0x26   :  { %221 = vmatmul.mubr.f32.vlgmr.msra.gmra.mrb[0].mxu1 %v14_v35 }
  0x93   :  { %v83_v36 = vpop.permute.xlu0 %82 }
  0xf8   :  { %v151_v37 = vpop.f32.mrb[0].mxu0 }
  0xf9   :  { %v152_v38 = vadd.f32 %v151_v37, %v83_v36  ;;  %v222_v39 = vpop.f32.mrb[0].mxu1  ;;  %v153_v40 = vpop.f32.mrb[1].mxu0 }
  0xfa   :  { %v223_v41 = vadd.f32 %v222_v39, %v83_v36  ;;  %v154_v42 = vadd.f32 %v153_v40, %v83_v36  ;;  %v224_v43 = vpop.f32.mrb[1].mxu1 }
  0xfb   :  { %v227_v44 = vmax.f32 %v152_v38, 0.0  ;;  %v225_v45 = vadd.f32 %v224_v43, %v83_v36 }
  0xfc   :  { %v229_v46 = vmax.f32 %v223_v41, 0.0  ;;  %v228_v47 = vmax.f32 %v154_v42, 0.0 }
  0xfd   :  { %231 = vst [vmem:[%s541_s3] sm:$0xff] %v227_v44  ;;  %v230_v48 = vmax.f32 %v225_v45, 0.0 }
  0xfe   :  { %233 = vst [vmem:[%s541_s3 + $0x10] sm:$0xff] %v229_v46  ;;  %232 = vst [vmem:[%s541_s3 + $0x8] sm:$0xff] %v228_v47 }
  0xff   :  { %234 = vst [vmem:[%s541_s3 + $0x18] sm:$0xff] %v230_v48 }

// kernel: vaegan_forward.17
= control target key start
LH: loop header
LB: loop body
LE: loop exit
PB: predicated region body
PF: predicated region fallthrough
CT: control target
= control target key end

     0   :  { %v194_v0 = vmov 0.0|0.0   ;;  %vm195_vm0 = vmmov 0   ;;  %v196_v4 = vmov 0.0   ;;  %v197_v7 = vmov 0   ;;  %s275_s1 = inlined_call_operand.vmem [shape: f32[128,128], index: 1, kind: input, shape index: {}]   ;;  %s276_s2 = inlined_call_operand.vmem [shape: f32[8,1], index: 2, kind: input, shape index: {}]   ;;  %s277_s0 = inlined_call_operand.vmem [shape: f32[8,128], index: 0, kind: input, shape index: {}]   ;;  %s278_s3 = inlined_call_operand.vmem [shape: f32[8,128], index: 3, kind: output, shape index: {}]  }
   0x1   :  { %165 = vmatprep.subr.bf16.mxu0 %v194_v0  ;;  %v15_v1 = vld [vmem:[%s275_s1] sm:$0xff]  ;;  %v16_v2 = vld [vmem:[%s275_s1 + $0x8] sm:$0xff]  ;;  %v17_v3 = vld [vmem:[%s275_s1 + $0x10] sm:$0xff]  ;;  %162 = vmatprep.mubr.msk.f32.mxu0 %vm195_vm0, %v196_v4 }
   0x2   :  { %v166_v5 = vpack.c.bf16 %v16_v2, %v15_v1  ;;  %v18_v6 = vld [vmem:[%s275_s1 + $0x18] sm:$0xff]  ;;  %193 = vset.pattern.permute.xlu0 %v197_v7  ;;  %v19_v9 = vld [vmem:[%s275_s1 + $0x20] sm:$0xff]  ;;  %v20_v10 = vld [vmem:[%s275_s1 + $0x28] sm:$0xff] }
   0x3   :  { %v169_v8 = vpack.c.bf16 %v18_v6, %v17_v3  ;;  %v31_v11 = vld [vmem:[%s276_s2] sm:$0xff]  ;;  %v172_v12 = vpack.c.bf16 %v20_v10, %v19_v9  ;;  %v21_v13 = vld [vmem:[%s275_s1 + $0x30] sm:$0xff]  ;;  %v22_v14 = vld [vmem:[%s275_s1 + $0x38] sm:$0xff] }
   0x4   :  { %167 = vmatpush3.bf16.msra.mxu0 %v166_v5  ;;  %34 = vperm.xlu0 %193, %v31_v11   ;;  %v175_v15 = vpack.c.bf16 %v22_v14, %v21_v13  ;;  %v23_v16 = vld [vmem:[%s275_s1 + $0x40] sm:$0xff]  ;;  %v24_v17 = vld [vmem:[%s275_s1 + $0x48] sm:$0xff]  ;;  %v25_v19 = vld [vmem:[%s275_s1 + $0x50] sm:$0xff] }
   0x5   :  { %168 = vmatprep.subr.bf16.mxu0 %v194_v0  ;;  %v178_v18 = vpack.c.bf16 %v24_v17, %v23_v16  ;;  %v26_v20 = vld [vmem:[%s275_s1 + $0x58] sm:$0xff]  ;;  %v27_v22 = vld [vmem:[%s275_s1 + $0x60] sm:$0xff]  ;;  %v28_v23 = vld [vmem:[%s275_s1 + $0x68] sm:$0xff] }
   0x6   :  { %v181_v21 = vpack.c.bf16 %v26_v20, %v25_v19  ;;  %v184_v24 = vpack.c.bf16 %v28_v23, %v27_v22  ;;  %v29_v25 = vld [vmem:[%s275_s1 + $0x70] sm:$0xff]  ;;  %v30_v26 = vld [vmem:[%s275_s1 + $0x78] sm:$0xff]  ;;  %v14_v28 = vld [vmem:[%s277_s0] sm:$0xff] }
   0x7   :  { %v187_v27 = vpack.c.bf16 %v30_v26, %v29_v25 }
   0x8   :  { %170 = vmatpush3.bf16.msra.mxu0 %v169_v8 }
   0x9   :  { %171 = vmatprep.subr.bf16.mxu0 %v194_v0 }
   0xc   :  { %173 = vmatpush3.bf16.msra.mxu0 %v172_v12 }
   0xd   :  { %174 = vmatprep.subr.bf16.mxu0 %v194_v0 }
  0x10   :  { %176 = vmatpush3.bf16.msra.mxu0 %v175_v15 }
  0x11   :  { %177 = vmatprep.subr.bf16.mxu0 %v194_v0 }
  0x14   :  { %179 = vmatpush3.bf16.msra.mxu0 %v178_v18 }
  0x15   :  { %180 = vmatprep.subr.bf16.mxu0 %v194_v0 }
  0x18   :  { %182 = vmatpush3.bf16.msra.mxu0 %v181_v21 }
  0x19   :  { %183 = vmatprep.subr.bf16.mxu0 %v194_v0 }
  0x1c   :  { %185 = vmatpush3.bf16.msra.mxu0 %v184_v24 }
  0x1d   :  { %186 = vmatprep.subr.bf16.mxu0 %v194_v0 }
  0x20   :  { %188 = vmatpush3.bf16.msra.mxu0 %v187_v27 }
  0x23   :  { %163 = vmatmul.mubr.f32.vlgmr.msra.gmra.mrb[0].mxu0 %v14_v28 }
  0x83   :  { %v35_v29 = vpop.permute.xlu0 %34 }
  0xf6   :  { %v103_v30 = vpop.f32.mrb[0].mxu0 }
  0xf7   :  { %v104_v31 = vadd.f32 %v103_v30, %v35_v29  ;;  %v164_v32 = vpop.f32.mrb[1].mxu0 }
  0xf9   :  { %v107_v33 = vmax.f32 %v104_v31, 0.0 }
  0xfb   :  { %108 = vst [vmem:[%s278_s3] sm:$0xff] %v107_v33 }

// kernel: vaegan_forward.18
= control target key start
LH: loop header
LB: loop body
LE: loop exit
PB: predicated region body
PF: predicated region fallthrough
CT: control target
= control target key end

     0   :  { %v195_v0 = vmov 0.0|0.0   ;;  %vm196_vm0 = vmmov 0   ;;  %v197_v4 = vmov 0.0   ;;  %v198_v7 = vmov 0   ;;  %s276_s1 = inlined_call_operand.vmem [shape: f32[128,32], index: 1, kind: input, shape index: {}]   ;;  %s277_s2 = inlined_call_operand.vmem [shape: f32[8,1], index: 2, kind: input, shape index: {}]   ;;  %s278_s0 = inlined_call_operand.vmem [shape: f32[8,128], index: 0, kind: input, shape index: {}]   ;;  %s279_s3 = inlined_call_operand.vmem [shape: f32[8,32], index: 3, kind: output, shape index: {}]  }
   0x1   :  { %166 = vmatprep.subr.bf16.mxu0 %v195_v0  ;;  %v15_v1 = vld [vmem:[%s276_s1] sm:$0xff]  ;;  %v16_v2 = vld [vmem:[%s276_s1 + $0x8] sm:$0xff]  ;;  %v17_v3 = vld [vmem:[%s276_s1 + $0x10] sm:$0xff]  ;;  %163 = vmatprep.mubr.msk.f32.mxu0 %vm196_vm0, %v197_v4  ;;  %vm108_vm1 = vcmask 261120  }
   0x2   :  { %v167_v5 = vpack.c.bf16 %v16_v2, %v15_v1  ;;  %v18_v6 = vld [vmem:[%s276_s1 + $0x18] sm:$0xff]  ;;  %194 = vset.pattern.permute.xlu0 %v198_v7  ;;  %v19_v9 = vld [vmem:[%s276_s1 + $0x20] sm:$0xff]  ;;  %v20_v10 = vld [vmem:[%s276_s1 + $0x28] sm:$0xff] }
   0x3   :  { %v170_v8 = vpack.c.bf16 %v18_v6, %v17_v3  ;;  %v31_v11 = vld [vmem:[%s277_s2] sm:$0xff]  ;;  %v173_v12 = vpack.c.bf16 %v20_v10, %v19_v9  ;;  %v21_v13 = vld [vmem:[%s276_s1 + $0x30] sm:$0xff]  ;;  %v22_v14 = vld [vmem:[%s276_s1 + $0x38] sm:$0xff] }
   0x4   :  { %168 = vmatpush3.bf16.msra.mxu0 %v167_v5  ;;  %34 = vperm.xlu0 %194, %v31_v11   ;;  %v176_v15 = vpack.c.bf16 %v22_v14, %v21_v13  ;;  %v23_v16 = vld [vmem:[%s276_s1 + $0x40] sm:$0xff]  ;;  %v24_v17 = vld [vmem:[%s276_s1 + $0x48] sm:$0xff]  ;;  %v25_v19 = vld [vmem:[%s276_s1 + $0x50] sm:$0xff] }
   0x5   :  { %169 = vmatprep.subr.bf16.mxu0 %v195_v0  ;;  %v179_v18 = vpack.c.bf16 %v24_v17, %v23_v16  ;;  %v26_v20 = vld [vmem:[%s276_s1 + $0x58] sm:$0xff]  ;;  %v27_v22 = vld [vmem:[%s276_s1 + $0x60] sm:$0xff]  ;;  %v28_v23 = vld [vmem:[%s276_s1 + $0x68] sm:$0xff] }
   0x6   :  { %v182_v21 = vpack.c.bf16 %v26_v20, %v25_v19  ;;  %v185_v24 = vpack.c.bf16 %v28_v23, %v27_v22  ;;  %v29_v25 = vld [vmem:[%s276_s1 + $0x70] sm:$0xff]  ;;  %v30_v26 = vld [vmem:[%s276_s1 + $0x78] sm:$0xff]  ;;  %v14_v28 = vld [vmem:[%s278_s0] sm:$0xff] }
   0x7   :  { %v188_v27 = vpack.c.bf16 %v30_v26, %v29_v25 }
   0x8   :  { %171 = vmatpush3.bf16.msra.mxu0 %v170_v8 }
   0x9   :  { %172 = vmatprep.subr.bf16.mxu0 %v195_v0 }
   0xc   :  { %174 = vmatpush3.bf16.msra.mxu0 %v173_v12 }
   0xd   :  { %175 = vmatprep.subr.bf16.mxu0 %v195_v0 }
  0x10   :  { %177 = vmatpush3.bf16.msra.mxu0 %v176_v15 }
  0x11   :  { %178 = vmatprep.subr.bf16.mxu0 %v195_v0 }
  0x14   :  { %180 = vmatpush3.bf16.msra.mxu0 %v179_v18 }
  0x15   :  { %181 = vmatprep.subr.bf16.mxu0 %v195_v0 }
  0x18   :  { %183 = vmatpush3.bf16.msra.mxu0 %v182_v21 }
  0x19   :  { %184 = vmatprep.subr.bf16.mxu0 %v195_v0 }
  0x1c   :  { %186 = vmatpush3.bf16.msra.mxu0 %v185_v24 }
  0x1d   :  { %187 = vmatprep.subr.bf16.mxu0 %v195_v0 }
  0x20   :  { %189 = vmatpush3.bf16.msra.mxu0 %v188_v27 }
  0x23   :  { %164 = vmatmul.mubr.f32.vlgmr.msra.gmra.mrb[0].mxu0 %v14_v28 }
  0x83   :  { %v35_v29 = vpop.permute.xlu0 %34 }
  0xf6   :  { %v103_v30 = vpop.f32.mrb[0].mxu0 }
  0xf7   :  { %v104_v31 = vadd.f32 %v103_v30, %v35_v29  ;;  %v165_v32 = vpop.f32.mrb[1].mxu0 }
  0xf9   :  { %v107_v33 = vmax.f32 %v104_v31, 0.0 }
  0xfb   :  { %109 = vst.msk [vmem:[%s279_s3] sm:$0xff] %vm108_vm1, %v107_v33 }

// kernel: vaegan_forward.20
= control target key start
LH: loop header
LB: loop body
LE: loop exit
PB: predicated region body
PF: predicated region fallthrough
CT: control target
= control target key end

     0   :  { %vm35_vm0 = vcmask 64512   ;;  %v346_v0 = vmov 0.0   ;;  %vm347_vm1 = vmmov 0   ;;  %v348_v4 = vmov 0.0|0.0   ;;  %s431_s1 = inlined_call_operand.vmem [shape: f32[8,32], index: 1, kind: input, shape index: {}]   ;;  %s432_s0 = inlined_call_operand.vmem [shape: f32[2,8], index: 0, kind: input, shape index: {}]   ;;  %s433_s3 = inlined_call_operand.vmem [shape: f32[32,32], index: 3, kind: input, shape index: {}]   ;;  %s434_s5 = inlined_call_operand.vmem [shape: f32[32,128], index: 5, kind: input, shape index: {}]   ;;  %s435_s2 = inlined_call_operand.vmem [shape: f32[1,32], index: 2, kind: input, shape index: {}]   ;;  %s436_s4 = inlined_call_operand.vmem [shape: f32[1,32], index: 4, kind: input, shape index: {}]   ;;  %s437_s6 = inlined_call_operand.vmem [shape: f32[1,128], index: 6, kind: input, shape index: {}]   ;;  %s438_s7 = inlined_call_operand.vmem [shape: f32[2,128], index: 7, kind: output, shape index: {}]  }
   0x1   :  { %304 = vmatprep.subr.mxu0 %v346_v0  ;;  %v27_v1 = vld [vmem:[%s431_s1] sm:$0xff]  ;;  %306 = vmatprep.mubr.msk.f32.mxu0 %vm347_vm1, %v346_v0  ;;  %v111_v5 = vld [vmem:[%s433_s3 + $0x8] sm:$0xff]  ;;  %v112_v7 = vld [vmem:[%s433_s3 + $0x10] sm:$0xff]  ;;  %vm121_vm2 = vcmask 261120  }
   0x2   :  { %v26_v2 = vld [vmem:[%s432_s0] sm:$0x3]  ;;  %305 = vmatpush3.msra.mxu0 %v27_v1  ;;  %331 = vmatprep.subr.bf16.mxu1 %v348_v4  ;;  %v113_v8 = vld [vmem:[%s433_s3 + $0x18] sm:$0xff]  ;;  %v197_v11 = vld [vmem:[%s434_s5 + $0x8] sm:$0xff] }
   0x3   :  { %v110_v3 = vld [vmem:[%s433_s3] sm:$0xff]  ;;  %307 = vmatmul.mubr.msk.f32.vlgmr.msra.gmra.mrb[0].mxu0 %vm35_vm0, %v26_v2  ;;  %317 = vmatprep.mubr.msk.f32.mxu1 %vm347_vm1, %v346_v0  ;;  %v335_v9 = vpack.c.bf16 %v113_v8, %v112_v7  ;;  %v198_v18 = vld [vmem:[%s434_s5 + $0x10] sm:$0xff]  ;;  %v199_v19 = vld [vmem:[%s434_s5 + $0x18] sm:$0xff] }
   0x4   :  { %v332_v6 = vpack.c.bf16 %v111_v5, %v110_v3  ;;  %337 = vmatprep.subr.bf16.mxu0 %v348_v4  ;;  %328 = vmatprep.mubr.msk.f32.mxu0 %vm347_vm1, %v346_v0  ;;  %v196_v10 = vld [vmem:[%s434_s5] sm:$0xff]  ;;  %v341_v20 = vpack.c.bf16 %v199_v19, %v198_v18 }
   0x5   :  { %v338_v12 = vpack.c.bf16 %v197_v11, %v196_v10  ;;  %v286_v13 = vld [vmem:[%s435_s2] ss:$0 sm:$0xff] }
   0x6   :  { %333 = vmatpush3.bf16.msra.mxu1 %v332_v6  ;;  %v288_v21 = vld [vmem:[%s436_s4] ss:$0 sm:$0xff] }
   0x7   :  { %334 = vmatprep.subr.bf16.mxu1 %v348_v4  ;;  %339 = vmatpush3.bf16.msra.mxu0 %v338_v12  ;;  %v290_v26 = vld [vmem:[%s437_s6] ss:$0 sm:$0xff] }
   0x8   :  { %340 = vmatprep.subr.bf16.mxu0 %v348_v4 }
   0xa   :  { %336 = vmatpush3.bf16.msra.mxu1 %v335_v9 }
   0xb   :  { %342 = vmatpush3.bf16.msra.mxu0 %v341_v20 }
  0xd6   :  { %v105_v14 = vpop.f32.mrb[0].mxu0 }
  0xd7   :  { %v106_v15 = vadd.f32 %v286_v13, %v105_v14  ;;  %v308_v16 = vpop.f32.mrb[1].mxu0 }
  0xd9   :  { %v109_v17 = vmax.f32 %v106_v15, 0.0 }
  0xdb   :  { %318 = vmatmul.mubr.msk.f32.vlgmr.msra.gmra.mrb[0].mxu1 %vm121_vm2, %v109_v17 }
 0x1ae   :  { %v191_v22 = vpop.f32.mrb[0].mxu1 }
 0x1af   :  { %v192_v23 = vadd.f32 %v288_v21, %v191_v22  ;;  %v319_v24 = vpop.f32.mrb[1].mxu1 }
 0x1b1   :  { %v195_v25 = vmax.f32 %v192_v23, 0.0 }
 0x1b3   :  { %329 = vmatmul.mubr.msk.f32.vlgmr.msra.gmra.mrb[2].mxu0 %vm121_vm2, %v195_v25 }
 0x286   :  { %v276_v27 = vpop.f32.mrb[2].mxu0 }
 0x287   :  { %v277_v28 = vadd.f32 %v290_v26, %v276_v27  ;;  %v330_v29 = vpop.f32.mrb[3].mxu0 }
 0x289   :  { %v280_v30 = vmax.f32 %v277_v28, 0.0 }
 0x28b   :  { %281 = vst [vmem:[%s438_s7] sm:$0x3] %v280_v30 }

// kernel: vaegan_forward.19
= control target key start
LH: loop header
LB: loop body
LE: loop exit
PB: predicated region body
PF: predicated region fallthrough
CT: control target
= control target key end

     0   :  { %18 = vsyncpa [#allocation3], 0  ;;  %v632_v3 = vmov 0.0|0.0   ;;  %vm633_vm0 = vmmov 0   ;;  %v634_v6 = vmov 0.0   ;;  %s859_s0 = inlined_call_operand.vmem [shape: f32[2,128], index: 0, kind: input, shape index: {}]   ;;  %s860_s1 = inlined_call_operand.vmem [shape: f32[128,32], index: 1, kind: input, shape index: {}]   ;;  %s861_s2 = inlined_call_operand.vmem [shape: f32[1,32], index: 2, kind: input, shape index: {}]   ;;  %s862_s3 = inlined_call_operand.vmem [shape: f32[32,32], index: 3, kind: input, shape index: {}]   ;;  %s863_s4 = inlined_call_operand.vmem [shape: f32[1,32], index: 4, kind: input, shape index: {}]   ;;  %s864_s5 = inlined_call_operand.vmem [shape: f32[32,8], index: 5, kind: input, shape index: {}]   ;;  %s865_s6 = inlined_call_operand.vmem [shape: f32[1,8], index: 6, kind: input, shape index: {}]   ;;  %s866_s7 = inlined_call_operand.vmem [shape: f32[32,8], index: 7, kind: input, shape index: {}]   ;;  %s867_s8 = inlined_call_operand.vmem [shape: f32[1,8], index: 8, kind: input, shape index: {}]   ;;  %s868_s9 = inlined_call_operand.vmem [shape: f32[2,8], index: 9, kind: input, shape index: {}]   ;;  %s869_s10 = inlined_call_operand.hbm [shape: f32[2,8], index: 10, kind: output, shape index: {0}]   ;;  %s870_s11 = inlined_call_operand.hbm [shape: f32[2,8], index: 11, kind: output, shape index: {1}]   ;;  %s871_s12 = inlined_call_operand.vmem [shape: f32[2,8], index: 12, kind: output, shape index: {2}]  }
   0x1   :  { %v41_v0 = vld [vmem:[%s860_s1] sm:$0xff]  ;;  %v42_v1 = vld [vmem:[%s860_s1 + $0x8] sm:$0xff]  ;;  %v43_v2 = vld [vmem:[%s860_s1 + $0x10] sm:$0xff]  ;;  %535 = vmatprep.subr.bf16.mxu0 %v632_v3  ;;  %499 = vmatprep.mubr.msk.f32.mxu0 %vm633_vm0, %v634_v6 }
   0x2   :  { %v536_v4 = vpack.c.bf16 %v42_v1, %v41_v0  ;;  %v44_v5 = vld [vmem:[%s860_s1 + $0x18] sm:$0xff]  ;;  %559 = vmatprep.subr.bf16.mxu1 %v632_v3  ;;  %510 = vmatprep.mubr.msk.f32.mxu1 %vm633_vm0, %v634_v6  ;;  %v45_v8 = vld [vmem:[%s860_s1 + $0x20] sm:$0xff]  ;;  %v46_v9 = vld [vmem:[%s860_s1 + $0x28] sm:$0xff] }
   0x3   :  { %v539_v7 = vpack.c.bf16 %v44_v5, %v43_v2  ;;  %v135_v10 = vld [vmem:[%s862_s3] sm:$0xff]  ;;  %v136_v11 = vld [vmem:[%s862_s3 + $0x8] sm:$0xff] }
   0x4   :  { %537 = vmatpush3.bf16.msra.mxu0 %v536_v4 }
   0x5   :  { %538 = vmatprep.subr.bf16.mxu0 %v632_v3 }
   0x6   :  { %19 = vsyncpa [#allocation5], 0  ;;  %v542_v12 = vpack.c.bf16 %v46_v9, %v45_v8  ;;  %v560_v13 = vpack.c.bf16 %v136_v11, %v135_v10  ;;  %v47_v14 = vld [vmem:[%s860_s1 + $0x30] sm:$0xff]  ;;  %v48_v15 = vld [vmem:[%s860_s1 + $0x38] sm:$0xff]  ;;  %vm146_vm1 = vcmask 261120   ;;  %s635_s25 = smov [#allocation2]  }
   0x7   :  { %v545_v16 = vpack.c.bf16 %v48_v15, %v47_v14  ;;  %v49_v17 = vld [vmem:[%s860_s1 + $0x40] sm:$0xff]  ;;  %v50_v18 = vld [vmem:[%s860_s1 + $0x48] sm:$0xff]  ;;  %v51_v20 = vld [vmem:[%s860_s1 + $0x50] sm:$0xff]  ;;  %s402_s26 = sshll.u32 %s635_s25, 4  ;;  %vm386_vm2 = vcmask 58368   ;;  %s403_s26 = int_to_ptr.vmem [resolvable:$true] %s402_s26 }
   0x8   :  { %540 = vmatpush3.bf16.msra.mxu0 %v539_v7  ;;  %561 = vmatpush3.bf16.msra.mxu1 %v560_v13  ;;  %v548_v19 = vpack.c.bf16 %v50_v18, %v49_v17  ;;  %v52_v21 = vld [vmem:[%s860_s1 + $0x58] sm:$0xff]  ;;  %v53_v23 = vld [vmem:[%s860_s1 + $0x60] sm:$0xff]  ;;  %v54_v24 = vld [vmem:[%s860_s1 + $0x68] sm:$0xff]  ;;  %p589_p1 = scmp.lt.s32.totalorder %s403_s26, %s403_s26 }
   0x9   :  { %541 = vmatprep.subr.bf16.mxu0 %v632_v3  ;;  %562 = vmatprep.subr.bf16.mxu1 %v632_v3  ;;  %v551_v22 = vpack.c.bf16 %v52_v21, %v51_v20  ;;  %v554_v25 = vpack.c.bf16 %v54_v24, %v53_v23  ;;  %v55_v26 = vld [vmem:[%s860_s1 + $0x70] sm:$0xff]  ;;  %v56_v27 = vld [vmem:[%s860_s1 + $0x78] sm:$0xff]  ;;  %v40_v29 = vld [vmem:[%s859_s0] sm:$0x3] }
   0xa   :  { %v557_v28 = vpack.c.bf16 %v56_v27, %v55_v26  ;;  %v137_v30 = vld [vmem:[%s862_s3 + $0x10] sm:$0xff]  ;;  %v138_v31 = vld [vmem:[%s862_s3 + $0x18] sm:$0xff]  ;;  %v428_v33 = vld [vmem:[%s861_s2] ss:$0 sm:$0xff] }
   0xb   :  { %v563_v32 = vpack.c.bf16 %v138_v31, %v137_v30  ;;  %v221_v34 = vld [vmem:[%s864_s5] sm:$0xff]  ;;  %v222_v35 = vld [vmem:[%s864_s5 + $0x8] sm:$0xff]  ;;  %v223_v41 = vld [vmem:[%s864_s5 + $0x10] sm:$0xff] }
   0xc   :  { %543 = vmatpush3.bf16.msra.mxu0 %v542_v12  ;;  %v566_v39 = vpack.c.bf16 %v222_v35, %v221_v34  ;;  %v224_v42 = vld [vmem:[%s864_s5 + $0x18] sm:$0xff]  ;;  %v429_v44 = vld [vmem:[%s863_s4] ss:$0 sm:$0xff]  ;;  %v306_v46 = vld [vmem:[%s866_s7 + $0x8] sm:$0xff] }
   0xd   :  { %544 = vmatprep.subr.bf16.mxu0 %v632_v3  ;;  %564 = vmatpush3.bf16.msra.mxu1 %v563_v32  ;;  %v569_v43 = vpack.c.bf16 %v224_v42, %v223_v41  ;;  %v305_v45 = vld [vmem:[%s866_s7] sm:$0xff]  ;;  %v307_v52 = vld [vmem:[%s866_s7 + $0x10] sm:$0xff]  ;;  %v308_v53 = vld [vmem:[%s866_s7 + $0x18] sm:$0xff]  ;;  %s584_s7 = scalar_lea.vmem %s403_s26, 32 }
   0xe   :  { %565 = vmatprep.subr.bf16.mxu1 %v632_v3  ;;  %v572_v50 = vpack.c.bf16 %v306_v46, %v305_v45  ;;  %v575_v54 = vpack.c.bf16 %v308_v53, %v307_v52  ;;  %v431_v55 = vld [vmem:[%s865_s6] ss:$0 sm:$0xff]  ;;  %p585_p0 = scmp.ne.s32.totalorder %s403_s26, %s584_s7  ;;  %p590_p2 = scmp.lt.s32.totalorder %s584_s7, %s584_s7 }
  0x10   :  { %546 = vmatpush3.bf16.msra.mxu0 %v545_v16  ;;  %p591_p3 = por %p590_p2, %p589_p1 }
  0x11   :  { %547 = vmatprep.subr.bf16.mxu0 %v632_v3 }
  0x12   :  { %p592_p4 = pnand %p591_p3, %p585_p0 }
  0x14   :  { %549 = vmatpush3.bf16.msra.mxu0 %v548_v19 }
  0x15   :  { %550 = vmatprep.subr.bf16.mxu0 %v632_v3 }
  0x18   :  { %552 = vmatpush3.bf16.msra.mxu0 %v551_v22 }
  0x19   :  { %553 = vmatprep.subr.bf16.mxu0 %v632_v3 }
  0x1c   :  { %555 = vmatpush3.bf16.msra.mxu0 %v554_v25 }
  0x1d   :  { %556 = vmatprep.subr.bf16.mxu0 %v632_v3 }
  0x20   :  { %558 = vmatpush3.bf16.msra.mxu0 %v557_v28 }
  0x23   :  { %500 = vmatmul.mubr.f32.vlgmr.msra.gmra.mrb[0].mxu0 %v40_v29 }
  0xf6   :  { %v130_v36 = vpop.f32.mrb[0].mxu0 }
  0xf7   :  { %v131_v37 = vadd.f32 %v428_v33, %v130_v36  ;;  %v501_v38 = vpop.f32.mrb[1].mxu0 }
  0xf9   :  { %v134_v40 = vmax.f32 %v131_v37, 0.0 }
  0xfb   :  { %511 = vmatmul.mubr.msk.f32.vlgmr.msra.gmra.mrb[0].mxu1 %vm146_vm1, %v134_v40 }
  0xfc   :  { %567 = vmatpush3.bf16.msra.mxu1 %v566_v39  ;;  %521 = vmatprep.mubr.msk.f32.mxu1 %vm633_vm0, %v634_v6 }
  0xfd   :  { %568 = vmatprep.subr.bf16.mxu1 %v632_v3 }
 0x100   :  { %570 = vmatpush3.bf16.msra.mxu1 %v569_v43 }
 0x101   :  { %571 = vmatprep.subr.bf16.mxu1 %v632_v3 }
 0x1ce   :  { %v216_v47 = vpop.f32.mrb[0].mxu1 }
 0x1cf   :  { %v217_v48 = vadd.f32 %v429_v44, %v216_v47  ;;  %v512_v49 = vpop.f32.mrb[1].mxu1 }
 0x1d1   :  { %v220_v51 = vmax.f32 %v217_v48, 0.0 }
 0x1d3   :  { %522 = vmatmul.mubr.msk.f32.vlgmr.msra.gmra.mrb[2].mxu1 %vm146_vm1, %v220_v51 }
 0x1d4   :  { %573 = vmatpush3.bf16.msra.mxu1 %v572_v50  ;;  %532 = vmatprep.mubr.msk.f32.mxu1 %vm633_vm0, %v634_v6 }
 0x1d5   :  { %574 = vmatprep.subr.bf16.mxu1 %v632_v3 }
 0x1d8   :  { %576 = vmatpush3.bf16.msra.mxu1 %v575_v54 }
 0x1db   :  { %533 = vmatmul.mubr.msk.f32.vlgmr.msra.gmra.mrb[4].mxu1 %vm146_vm1, %v220_v51 }
 0x2a6   :  { %v301_v56 = vpop.f32.mrb[2].mxu1 }
 0x2a7   :  { %v302_v57 = vadd.f32 %v431_v55, %v301_v56  ;;  %v523_v58 = vpop.f32.mrb[3].mxu1 }
 0x2a9   :  { %387 = vst.msk [vmem:[#allocation2] sm:$0x3] %vm386_vm2, %v302_v57 }
 0x2aa   :  { %595 = shalt.err (!%p592_p4)
}
 0x2ab   :  { %s596_s6 = scalar_lea.hbm %s869_s10, 32 }
 0x2ac   :  { %p597_p5 = scmp.ne.s32.totalorder %s869_s10, %s596_s6  ;;  %p600_p6 = scmp.lt.u32.totalorder %s596_s6, %s869_s10 }
 0x2ae   :  { %p602_p7 = pnand %p600_p6, %p597_p5 }
 0x2b0   :  { %605 = shalt.err (!%p602_p7)
}
 0x2b1   :  { %405 = dma.vmem_to_hbm [thread:$0]  %s403_s26, 32, %s869_s10, [#allocation3]   ;;  %v433_v59 = vld [vmem:[%s867_s8] ss:$0 sm:$0xff]  ;;  %v382_v60 = vpop.f32.mrb[4].mxu1 }
 0x2b2   :  { %s636_s15 = smov [#allocation4]   ;;  %v383_v61 = vadd.f32 %v433_v59, %v382_v60  ;;  %v534_v62 = vpop.f32.mrb[5].mxu1 }
 0x2b3   :  { %s412_s16 = sshll.u32 %s636_s15, 4  ;;  %s413_s16 = int_to_ptr.vmem [resolvable:$true] %s412_s16 }
 0x2b4   :  { %v389_v63 = vmul.f32 0.5, %v383_v61  ;;  %388 = vst.msk [vmem:[#allocation4] sm:$0x3] %vm386_vm2, %v383_v61  ;;  %s606_s17 = scalar_lea.vmem %s413_s16, 32  ;;  %p611_p9 = scmp.lt.s32.totalorder %s413_s16, %s413_s16 }
 0x2b5   :  { %p607_p8 = scmp.ne.s32.totalorder %s413_s16, %s606_s17  ;;  %p612_p10 = scmp.lt.s32.totalorder %s606_s17, %s606_s17 }
 0x2b7   :  { %p613_p11 = por %p612_p10, %p611_p9 }
 0x2b9   :  { %p614_p12 = pnand %p613_p11, %p607_p8 }
 0x2bb   :  { %617 = shalt.err (!%p614_p12)
}
 0x2bc   :  { %s618_s8 = scalar_lea.hbm %s870_s11, 32 }
 0x2bd   :  { %p619_p13 = scmp.ne.s32.totalorder %s870_s11, %s618_s8  ;;  %p622_p0 = scmp.lt.u32.totalorder %s618_s8, %s870_s11 }
 0x2bf   :  { %p624_p1 = pnand %p622_p0, %p619_p13 }
 0x2c1   :  { %627 = shalt.err (!%p624_p1)
}
 0x2c2   :  { %415 = dma.vmem_to_hbm [thread:$0]  %s413_s16, 32, %s870_s11, [#allocation5]   ;;  %v390_v0 = vmul.f32 1.442695, %v389_v63  ;;  %v392_v1 = vld [vmem:[%s868_s9] sm:$0x3] }
 0x2c4   :  { %582 = vpow2.f32 %v390_v0 }
 0x2ce   :  { %v583_v2 = vpop.eup %582 }
 0x2cf   :  { %v393_v3 = vmul.f32 %v583_v2, %v392_v1 }
 0x2d1   :  { %v394_v4 = vadd.f32 %v393_v3, %v302_v57 }
 0x2d3   :  { %395 = vst.msk [vmem:[%s871_s12] sm:$0x3] %vm386_vm2, %v394_v4 }
 0x2d4   :  { %628 = dma.done.wait [#allocation3], 32  }
 0x2d5   :  { %629 = vsyncadd [#allocation3], 4294967264 }
 0x2d6   :  { %630 = dma.done.wait [#allocation5], 32  }
 0x2d7   :  { %631 = vsyncadd [#allocation5], 4294967264 }
 0x2d8   :  { %426 = vsyncpa [#allocation3], 1 }
 0x2d9   :  { %427 = vsyncpa [#allocation5], 1 }

// kernel: tile.22
= control target key start
LH: loop header
LB: loop body
LE: loop exit
PB: predicated region body
PF: predicated region fallthrough
CT: control target
= control target key end

     0   :  { %s22_s0 = inlined_call_operand.vmem [shape: f32[8], index: 0, kind: input, shape index: {}]   ;;  %s23_s1 = inlined_call_operand.vmem [shape: f32[4,8], index: 1, kind: output, shape index: {}]  }
   0x1   :  { %v4_v0 = vld [vmem:[%s22_s0] ss:$0 sm:$0xff] }
   0x2   :  { %5 = vst [vmem:[%s23_s1] sm:$0xf] %v4_v0 }

// kernel: tile.0
= control target key start
LH: loop header
LB: loop body
LE: loop exit
PB: predicated region body
PF: predicated region fallthrough
CT: control target
= control target key end

     0   :  { %s66_s8 = smov 125   ;;  %vm7_vm0 = vcmask 7168   ;;  %s67_s11 = smov 126   ;;  %s117_s0 = inlined_call_operand.vmem [shape: f32[4,8], index: 0, kind: input, shape index: {}]   ;;  %s118_s1 = inlined_call_operand.vmem [shape: f32[32,1], index: 1, kind: output, shape index: {}]  }
   0x1   :  { %v4_v0 = vld [vmem:[%s117_s0] sm:$0xf]  ;;  %s65_s0 = smov 127   ;;  %s68_s12 = smov 124  }
   0x2   :  { %5 = vst [vmem:[#allocation0] sm:$0xf] %v4_v0  ;;  %s69_s13 = smov 123   ;;  %s70_s14 = smov 122  }
   0x3   :  { %s71_s15 = smov 121  }
   0x9   :  { %v9_v1 = vld [vmem:[#allocation0] sm:$0xf]  }
   0xa   :  { %v21_v2 = vld [vmem:[#allocation0] sm:$0xf]   ;;  %10 = vrot.lane.b32.xlu0 %v9_v1, %s65_s0 }
   0xb   :  { %22 = vrot.lane.b32.xlu1 %v21_v2, %s66_s8  ;;  %v15_v3 = vld [vmem:[#allocation0] sm:$0xf]  }
   0xc   :  { %v27_v4 = vld [vmem:[#allocation0] sm:$0xf]  }
   0xd   :  { %v6_v5 = vld [vmem:[#allocation0] sm:$0xf]  }
   0xe   :  { %8 = vst.msk [vmem:[%s118_s1] ss:$8 sm:$0xf] %vm7_vm0, %v6_v5   ;;  %16 = vrot.lane.b32.xlu0 %v15_v3, %s67_s11  ;;  %v33_v6 = vld [vmem:[#allocation0] sm:$0xf]  }
   0xf   :  { %28 = vrot.lane.b32.xlu1 %v27_v4, %s68_s12  ;;  %v39_v7 = vld [vmem:[#allocation0] sm:$0xf]  }
  0x10   :  { %v45_v8 = vld [vmem:[#allocation0] sm:$0xf]  }
  0x12   :  { %34 = vrot.lane.b32.xlu0 %v33_v6, %s69_s13 }
  0x13   :  { %40 = vrot.lane.b32.xlu1 %v39_v7, %s70_s14 }
  0x16   :  { %46 = vrot.lane.b32.xlu0 %v45_v8, %s71_s15 }
  0x7c   :  { %v11_v9 = vpop.permute.xlu0 %10  }
  0x7d   :  { %v23_v10 = vpop.permute.xlu1 %22   ;;  %51 = vst.msk [vmem:[%s118_s1 + $0x1] ss:$8 sm:$0xf] %vm7_vm0, %v11_v9  }
  0x7e   :  { %53 = vst.msk [vmem:[%s118_s1 + $0x3] ss:$8 sm:$0xf] %vm7_vm0, %v23_v10  }
  0x80   :  { %v17_v11 = vpop.permute.xlu0 %16  }
  0x81   :  { %v29_v12 = vpop.permute.xlu1 %28   ;;  %52 = vst.msk [vmem:[%s118_s1 + $0x2] ss:$8 sm:$0xf] %vm7_vm0, %v17_v11  }
  0x82   :  { %54 = vst.msk [vmem:[%s118_s1 + $0x4] ss:$8 sm:$0xf] %vm7_vm0, %v29_v12  }
  0x84   :  { %v35_v13 = vpop.permute.xlu0 %34  }
  0x85   :  { %v41_v14 = vpop.permute.xlu1 %40   ;;  %55 = vst.msk [vmem:[%s118_s1 + $0x5] ss:$8 sm:$0xf] %vm7_vm0, %v35_v13  }
  0x86   :  { %56 = vst.msk [vmem:[%s118_s1 + $0x6] ss:$8 sm:$0xf] %vm7_vm0, %v41_v14  }
  0x88   :  { %v47_v15 = vpop.permute.xlu0 %46  }
  0x89   :  { %57 = vst.msk [vmem:[%s118_s1 + $0x7] ss:$8 sm:$0xf] %vm7_vm0, %v47_v15  }

// kernel: vaegan_forward.21
= control target key start
LH: loop header
LB: loop body
LE: loop exit
PB: predicated region body
PF: predicated region fallthrough
CT: control target
= control target key end

     0   :  { %v232_v3 = vmov 0   ;;  %vm51_vm0 = vcmask 588800   ;;  %vm153_vm1 = vcmask 261120   ;;  %s320_s1 = inlined_call_operand.vmem [shape: f32[72,32], index: 1, kind: input, shape index: {}]   ;;  %s321_s0 = inlined_call_operand.vmem [shape: f32[32,72], index: 0, kind: input, shape index: {}]   ;;  %s322_s2 = inlined_call_operand.vmem [shape: f32[32,1], index: 2, kind: input, shape index: {}]   ;;  %s323_s3 = inlined_call_operand.vmem [shape: f32[32,32], index: 3, kind: output, shape index: {}]  }
   0x1   :  { %v18_v0 = vld [vmem:[%s320_s1] sm:$0xff]  ;;  %v19_v1 = vld [vmem:[%s320_s1 + $0x8] sm:$0xff]  ;;  %v20_v2 = vld [vmem:[%s320_s1 + $0x10] sm:$0xff]  ;;  %231 = vset.pattern.permute.xlu1 %v232_v3  ;;  %230 = vset.pattern.permute.xlu0 %v232_v3 }
   0x2   :  { %v203_v4 = vpack.c.bf16 %v19_v1, %v18_v0  ;;  %v21_v5 = vld [vmem:[%s320_s1 + $0x18] sm:$0xff]  ;;  %v22_v7 = vld [vmem:[%s320_s1 + $0x20] sm:$0xff]  ;;  %v23_v8 = vld [vmem:[%s320_s1 + $0x28] sm:$0xff] }
   0x3   :  { %v207_v6 = vpack.c.bf16 %v21_v5, %v20_v2  ;;  %v14_v9 = vld [vmem:[%s321_s0] sm:$0xff]  ;;  %v16_v10 = vld [vmem:[%s321_s0 + $0x10] sm:$0xff]  ;;  %v211_v13 = vpack.c.bf16 %v23_v8, %v22_v7  ;;  %v25_v15 = vld [vmem:[%s320_s1 + $0x38] sm:$0xff] }
   0x4   :  { %204 = vmatprep.subr.bf16.mxu0 %v203_v4  ;;  %219 = vmatprep.subr.bf16.mxu1 %v203_v4  ;;  %v29_v11 = vld [vmem:[%s322_s2 + $0x10] sm:$0xff]  ;;  %v27_v12 = vld [vmem:[%s322_s2] sm:$0xff]  ;;  %v30_v16 = vld [vmem:[%s322_s2 + $0x18] sm:$0xff] }
   0x5   :  { %206 = vmatpush3.bf16.msra.mxu0 %v203_v4  ;;  %224 = vmatpush3.bf16.msra.mxu1 %v203_v4  ;;  %v24_v14 = vld [vmem:[%s320_s1 + $0x30] sm:$0xff]  ;;  %v28_v17 = vld [vmem:[%s322_s2 + $0x8] sm:$0xff]  ;;  %v26_v19 = vld [vmem:[%s320_s1 + $0x40] sm:$0xff] }
   0x6   :  { %208 = vmatprep.subr.bf16.mxu0 %v207_v6  ;;  %220 = vmatprep.subr.bf16.mxu1 %v207_v6  ;;  %v215_v18 = vpack.c.bf16 %v25_v15, %v24_v14  ;;  %v15_v20 = vld [vmem:[%s321_s0 + $0x8] sm:$0xff]  ;;  %v17_v21 = vld [vmem:[%s321_s0 + $0x18] sm:$0xff] }
   0x7   :  { %197 = vmatprep.mubr.msk.f32.mxu0 %vm51_vm0, %v14_v9  ;;  %200 = vmatprep.mubr.msk.f32.mxu1 %vm51_vm0, %v16_v10 }
   0x8   :  { %43 = vperm.xlu1 %231, %v29_v11   ;;  %33 = vperm.xlu0 %230, %v27_v12  }
   0x9   :  { %210 = vmatpush3.bf16.msra.mxu0 %v207_v6  ;;  %225 = vmatpush3.bf16.msra.mxu1 %v207_v6 }
   0xa   :  { %212 = vmatprep.subr.bf16.mxu0 %v211_v13  ;;  %221 = vmatprep.subr.bf16.mxu1 %v211_v13 }
   0xc   :  { %48 = vperm.xlu1 %231, %v30_v16   ;;  %38 = vperm.xlu0 %230, %v28_v17  }
   0xd   :  { %214 = vmatpush3.bf16.msra.mxu0 %v211_v13  ;;  %226 = vmatpush3.bf16.msra.mxu1 %v211_v13 }
   0xe   :  { %216 = vmatprep.subr.bf16.mxu0 %v215_v18  ;;  %222 = vmatprep.subr.bf16.mxu1 %v215_v18 }
  0x11   :  { %218 = vmatpush3.bf16.msra.mxu0 %v215_v18  ;;  %227 = vmatpush3.bf16.msra.mxu1 %v215_v18 }
  0x12   :  { %195 = vmatprep.subr.mxu0 %v26_v19  ;;  %223 = vmatprep.subr.mxu1 %v26_v19 }
  0x15   :  { %196 = vmatpush3.msra.mxu0 %v26_v19  ;;  %228 = vmatpush3.msra.mxu1 %v26_v19 }
  0x16   :  { %198 = vmatmul.mubr.msk.f32.vlgmr.msra.gmra.mrb[0].mxu0 %vm51_vm0, %v15_v20  ;;  %201 = vmatmul.mubr.msk.f32.vlgmr.msra.gmra.mrb[0].mxu1 %vm51_vm0, %v17_v21 }
  0x87   :  { %v44_v22 = vpop.permute.xlu1 %43  ;;  %v34_v23 = vpop.permute.xlu0 %33 }
  0x8b   :  { %v49_v24 = vpop.permute.xlu1 %48  ;;  %v39_v25 = vpop.permute.xlu0 %38 }
  0xe9   :  { %v199_v26 = vpop.f32.mrb[0].mxu0  ;;  %v202_v27 = vpop.f32.mrb[0].mxu1 }
  0xea   :  { %v136_v28 = vadd.f32 %v199_v26, %v39_v25  ;;  %v146_v29 = vadd.f32 %v202_v27, %v49_v24  ;;  %v130_v30 = vpop.f32.mrb[1].mxu0  ;;  %v140_v31 = vpop.f32.mrb[1].mxu1 }
  0xeb   :  { %v131_v32 = vadd.f32 %v130_v30, %v34_v23  ;;  %v141_v33 = vadd.f32 %v140_v31, %v44_v22 }
  0xec   :  { %v150_v34 = vmax.f32 %v136_v28, 0.0  ;;  %v152_v35 = vmax.f32 %v146_v29, 0.0 }
  0xed   :  { %v149_v36 = vmax.f32 %v131_v32, 0.0  ;;  %v151_v37 = vmax.f32 %v141_v33, 0.0 }
  0xee   :  { %155 = vst.msk [vmem:[%s323_s3 + $0x8] sm:$0xff] %vm153_vm1, %v150_v34  ;;  %157 = vst.msk [vmem:[%s323_s3 + $0x18] sm:$0xff] %vm153_vm1, %v152_v35 }
  0xef   :  { %154 = vst.msk [vmem:[%s323_s3] sm:$0xff] %vm153_vm1, %v149_v36  ;;  %156 = vst.msk [vmem:[%s323_s3 + $0x10] sm:$0xff] %vm153_vm1, %v151_v37 }

// kernel: vaegan_forward.22
= control target key start
LH: loop header
LB: loop body
LE: loop exit
PB: predicated region body
PF: predicated region fallthrough
CT: control target
= control target key end

     0   :  { %v231_v3 = vmov 0   ;;  %vm51_vm0 = vcmask 588800   ;;  %s319_s1 = inlined_call_operand.vmem [shape: f32[72,128], index: 1, kind: input, shape index: {}]   ;;  %s320_s0 = inlined_call_operand.vmem [shape: f32[32,72], index: 0, kind: input, shape index: {}]   ;;  %s321_s2 = inlined_call_operand.vmem [shape: f32[32,1], index: 2, kind: input, shape index: {}]   ;;  %s322_s3 = inlined_call_operand.vmem [shape: f32[32,128], index: 3, kind: output, shape index: {}]  }
   0x1   :  { %v18_v0 = vld [vmem:[%s319_s1] sm:$0xff]  ;;  %v19_v1 = vld [vmem:[%s319_s1 + $0x8] sm:$0xff]  ;;  %v20_v2 = vld [vmem:[%s319_s1 + $0x10] sm:$0xff]  ;;  %230 = vset.pattern.permute.xlu1 %v231_v3  ;;  %229 = vset.pattern.permute.xlu0 %v231_v3 }
   0x2   :  { %v202_v4 = vpack.c.bf16 %v19_v1, %v18_v0  ;;  %v21_v5 = vld [vmem:[%s319_s1 + $0x18] sm:$0xff]  ;;  %v22_v7 = vld [vmem:[%s319_s1 + $0x20] sm:$0xff]  ;;  %v23_v8 = vld [vmem:[%s319_s1 + $0x28] sm:$0xff] }
   0x3   :  { %v206_v6 = vpack.c.bf16 %v21_v5, %v20_v2  ;;  %v14_v9 = vld [vmem:[%s320_s0] sm:$0xff]  ;;  %v16_v10 = vld [vmem:[%s320_s0 + $0x10] sm:$0xff]  ;;  %v210_v13 = vpack.c.bf16 %v23_v8, %v22_v7  ;;  %v25_v15 = vld [vmem:[%s319_s1 + $0x38] sm:$0xff] }
   0x4   :  { %203 = vmatprep.subr.bf16.mxu0 %v202_v4  ;;  %218 = vmatprep.subr.bf16.mxu1 %v202_v4  ;;  %v29_v11 = vld [vmem:[%s321_s2 + $0x10] sm:$0xff]  ;;  %v27_v12 = vld [vmem:[%s321_s2] sm:$0xff]  ;;  %v30_v16 = vld [vmem:[%s321_s2 + $0x18] sm:$0xff] }
   0x5   :  { %205 = vmatpush3.bf16.msra.mxu0 %v202_v4  ;;  %223 = vmatpush3.bf16.msra.mxu1 %v202_v4  ;;  %v24_v14 = vld [vmem:[%s319_s1 + $0x30] sm:$0xff]  ;;  %v28_v17 = vld [vmem:[%s321_s2 + $0x8] sm:$0xff]  ;;  %v26_v19 = vld [vmem:[%s319_s1 + $0x40] sm:$0xff] }
   0x6   :  { %207 = vmatprep.subr.bf16.mxu0 %v206_v6  ;;  %219 = vmatprep.subr.bf16.mxu1 %v206_v6  ;;  %v214_v18 = vpack.c.bf16 %v25_v15, %v24_v14  ;;  %v15_v20 = vld [vmem:[%s320_s0 + $0x8] sm:$0xff]  ;;  %v17_v21 = vld [vmem:[%s320_s0 + $0x18] sm:$0xff] }
   0x7   :  { %196 = vmatprep.mubr.msk.f32.mxu0 %vm51_vm0, %v14_v9  ;;  %199 = vmatprep.mubr.msk.f32.mxu1 %vm51_vm0, %v16_v10 }
   0x8   :  { %43 = vperm.xlu1 %230, %v29_v11   ;;  %33 = vperm.xlu0 %229, %v27_v12  }
   0x9   :  { %209 = vmatpush3.bf16.msra.mxu0 %v206_v6  ;;  %224 = vmatpush3.bf16.msra.mxu1 %v206_v6 }
   0xa   :  { %211 = vmatprep.subr.bf16.mxu0 %v210_v13  ;;  %220 = vmatprep.subr.bf16.mxu1 %v210_v13 }
   0xc   :  { %48 = vperm.xlu1 %230, %v30_v16   ;;  %38 = vperm.xlu0 %229, %v28_v17  }
   0xd   :  { %213 = vmatpush3.bf16.msra.mxu0 %v210_v13  ;;  %225 = vmatpush3.bf16.msra.mxu1 %v210_v13 }
   0xe   :  { %215 = vmatprep.subr.bf16.mxu0 %v214_v18  ;;  %221 = vmatprep.subr.bf16.mxu1 %v214_v18 }
  0x11   :  { %217 = vmatpush3.bf16.msra.mxu0 %v214_v18  ;;  %226 = vmatpush3.bf16.msra.mxu1 %v214_v18 }
  0x12   :  { %194 = vmatprep.subr.mxu0 %v26_v19  ;;  %222 = vmatprep.subr.mxu1 %v26_v19 }
  0x15   :  { %195 = vmatpush3.msra.mxu0 %v26_v19  ;;  %227 = vmatpush3.msra.mxu1 %v26_v19 }
  0x16   :  { %197 = vmatmul.mubr.msk.f32.vlgmr.msra.gmra.mrb[0].mxu0 %vm51_vm0, %v15_v20  ;;  %200 = vmatmul.mubr.msk.f32.vlgmr.msra.gmra.mrb[0].mxu1 %vm51_vm0, %v17_v21 }
  0x87   :  { %v44_v22 = vpop.permute.xlu1 %43  ;;  %v34_v23 = vpop.permute.xlu0 %33 }
  0x8b   :  { %v49_v24 = vpop.permute.xlu1 %48  ;;  %v39_v25 = vpop.permute.xlu0 %38 }
  0xe9   :  { %v198_v26 = vpop.f32.mrb[0].mxu0  ;;  %v201_v27 = vpop.f32.mrb[0].mxu1 }
  0xea   :  { %v136_v28 = vadd.f32 %v198_v26, %v39_v25  ;;  %v146_v29 = vadd.f32 %v201_v27, %v49_v24  ;;  %v130_v30 = vpop.f32.mrb[1].mxu0  ;;  %v140_v31 = vpop.f32.mrb[1].mxu1 }
  0xeb   :  { %v131_v32 = vadd.f32 %v130_v30, %v34_v23  ;;  %v141_v33 = vadd.f32 %v140_v31, %v44_v22 }
  0xec   :  { %v150_v34 = vmax.f32 %v136_v28, 0.0  ;;  %v152_v35 = vmax.f32 %v146_v29, 0.0 }
  0xed   :  { %v149_v36 = vmax.f32 %v131_v32, 0.0  ;;  %v151_v37 = vmax.f32 %v141_v33, 0.0 }
  0xee   :  { %154 = vst [vmem:[%s322_s3 + $0x8] sm:$0xff] %v150_v34  ;;  %156 = vst [vmem:[%s322_s3 + $0x18] sm:$0xff] %v152_v35 }
  0xef   :  { %153 = vst [vmem:[%s322_s3] sm:$0xff] %v149_v36  ;;  %155 = vst [vmem:[%s322_s3 + $0x10] sm:$0xff] %v151_v37 }

// kernel: vaegan_forward.23
= control target key start
LH: loop header
LB: loop body
LE: loop exit
PB: predicated region body
PF: predicated region fallthrough
CT: control target
= control target key end

     0   :  { %v349_v3 = vmov 0.0   ;;  %v350_v8 = vmov 0   ;;  %vm78_vm0 = vcmask 588800   ;;  %s567_s1 = inlined_call_operand.vmem [shape: f32[72,512], index: 1, kind: input, shape index: {}]   ;;  %s568_s2 = inlined_call_operand.vmem [shape: f32[32,1], index: 2, kind: input, shape index: {}]   ;;  %s569_s0 = inlined_call_operand.vmem [shape: f32[32,72], index: 0, kind: input, shape index: {}]   ;;  %s570_s3 = inlined_call_operand.vmem [shape: f32[32,512], index: 3, kind: output, shape index: {}]  }
   0x1   :  { %v19_v0 = vld [vmem:[%s567_s1 + $0x8] sm:$0xff]  ;;  %v21_v2 = vld [vmem:[%s567_s1 + $0x18] sm:$0xff]  ;;  %155 = vmatprep.mubr.f32.mxu0 %v349_v3  ;;  %244 = vmatprep.mubr.f32.mxu1 %v349_v3  ;;  %v18_v6 = vld [vmem:[%s567_s1] sm:$0xff] }
   0x2   :  { %v23_v1 = vld [vmem:[%s567_s1 + $0x28] sm:$0xff]  ;;  %v25_v5 = vld [vmem:[%s567_s1 + $0x38] sm:$0xff]  ;;  %v22_v7 = vld [vmem:[%s567_s1 + $0x20] sm:$0xff]  ;;  %347 = vset.pattern.permute.xlu0 %v350_v8  ;;  %348 = vset.pattern.permute.xlu1 %v350_v8 }
   0x3   :  { %v313_v4 = vpack.c.bf16 %v23_v1, %v19_v0  ;;  %v329_v9 = vpack.c.bf16 %v25_v5, %v21_v2  ;;  %v315_v10 = vpack.c.bf16 %v22_v7, %v18_v6  ;;  %v20_v11 = vld [vmem:[%s567_s1 + $0x10] sm:$0xff]  ;;  %v27_v13 = vld [vmem:[%s567_s1 + $0x48] sm:$0xff]  ;;  %v29_v16 = vld [vmem:[%s567_s1 + $0x58] sm:$0xff] }
   0x4   :  { %v24_v12 = vld [vmem:[%s567_s1 + $0x30] sm:$0xff]  ;;  %v31_v15 = vld [vmem:[%s567_s1 + $0x68] sm:$0xff]  ;;  %v33_v17 = vld [vmem:[%s567_s1 + $0x78] sm:$0xff] }
   0x5   :  { %314 = vmatprep.subr.bf16.mxu0 %v313_v4  ;;  %v331_v14 = vpack.c.bf16 %v24_v12, %v20_v11  ;;  %330 = vmatprep.subr.bf16.mxu1 %v329_v9  ;;  %v317_v18 = vpack.c.bf16 %v31_v15, %v27_v13  ;;  %v333_v19 = vpack.c.bf16 %v33_v17, %v29_v16  ;;  %v26_v20 = vld [vmem:[%s567_s1 + $0x40] sm:$0xff]  ;;  %v28_v22 = vld [vmem:[%s567_s1 + $0x50] sm:$0xff]  ;;  %v35_v25 = vld [vmem:[%s567_s1 + $0x88] sm:$0xff] }
   0x6   :  { %316 = vmatpush1.bf16.msra.mxu0 %v315_v10  ;;  %v30_v21 = vld [vmem:[%s567_s1 + $0x60] sm:$0xff]  ;;  %v32_v24 = vld [vmem:[%s567_s1 + $0x70] sm:$0xff]  ;;  %v39_v26 = vld [vmem:[%s567_s1 + $0xa8] sm:$0xff] }
   0x7   :  { %332 = vmatpush1.bf16.msra.mxu1 %v331_v14  ;;  %v319_v23 = vpack.c.bf16 %v30_v21, %v26_v20  ;;  %318 = vmatprep.subr.bf16.mxu0 %v317_v18  ;;  %v335_v27 = vpack.c.bf16 %v32_v24, %v28_v22  ;;  %v321_v28 = vpack.c.bf16 %v39_v26, %v35_v25  ;;  %v37_v29 = vld [vmem:[%s567_s1 + $0x98] sm:$0xff]  ;;  %v34_v31 = vld [vmem:[%s567_s1 + $0x80] sm:$0xff]  ;;  %v36_v34 = vld [vmem:[%s567_s1 + $0x90] sm:$0xff] }
   0x8   :  { %334 = vmatprep.subr.bf16.mxu1 %v333_v19  ;;  %v41_v30 = vld [vmem:[%s567_s1 + $0xb8] sm:$0xff]  ;;  %v38_v33 = vld [vmem:[%s567_s1 + $0xa0] sm:$0xff]  ;;  %v40_v35 = vld [vmem:[%s567_s1 + $0xb0] sm:$0xff] }
   0x9   :  { %v337_v32 = vpack.c.bf16 %v41_v30, %v37_v29  ;;  %v323_v36 = vpack.c.bf16 %v38_v33, %v34_v31  ;;  %v43_v37 = vld [vmem:[%s567_s1 + $0xc8] sm:$0xff]  ;;  %v45_v39 = vld [vmem:[%s567_s1 + $0xd8] sm:$0xff]  ;;  %v339_v40 = vpack.c.bf16 %v40_v35, %v36_v34  ;;  %v42_v43 = vld [vmem:[%s567_s1 + $0xc0] sm:$0xff] }
   0xa   :  { %320 = vmatpush1.bf16.msra.mxu0 %v319_v23  ;;  %v47_v38 = vld [vmem:[%s567_s1 + $0xe8] sm:$0xff]  ;;  %v49_v42 = vld [vmem:[%s567_s1 + $0xf8] sm:$0xff]  ;;  %v46_v44 = vld [vmem:[%s567_s1 + $0xe0] sm:$0xff] }
   0xb   :  { %336 = vmatpush1.bf16.msra.mxu1 %v335_v27  ;;  %322 = vmatprep.subr.bf16.mxu0 %v321_v28  ;;  %v325_v41 = vpack.c.bf16 %v47_v38, %v43_v37  ;;  %v341_v45 = vpack.c.bf16 %v49_v42, %v45_v39  ;;  %v44_v46 = vld [vmem:[%s567_s1 + $0xd0] sm:$0xff]  ;;  %v327_v48 = vpack.c.bf16 %v46_v44, %v42_v43  ;;  %v54_v50 = vld [vmem:[%s568_s2] sm:$0xff]  ;;  %v51_v51 = vld [vmem:[%s567_s1 + $0x108] sm:$0xff] }
   0xc   :  { %338 = vmatprep.subr.bf16.mxu1 %v337_v32  ;;  %v48_v47 = vld [vmem:[%s567_s1 + $0xf0] sm:$0xff]  ;;  %60 = vperm.xlu0 %347, %v54_v50   ;;  %v53_v53 = vld [vmem:[%s567_s1 + $0x118] sm:$0xff]  ;;  %v55_v54 = vld [vmem:[%s568_s2 + $0x8] sm:$0xff] }
   0xd   :  { %v343_v49 = vpack.c.bf16 %v48_v47, %v44_v46  ;;  %v56_v52 = vld [vmem:[%s568_s2 + $0x10] sm:$0xff]  ;;  %v57_v55 = vld [vmem:[%s568_s2 + $0x18] sm:$0xff]  ;;  %v50_v56 = vld [vmem:[%s567_s1 + $0x100] sm:$0xff] }
   0xe   :  { %324 = vmatpush1.bf16.msra.mxu0 %v323_v36  ;;  %70 = vperm.xlu1 %348, %v56_v52   ;;  %v52_v57 = vld [vmem:[%s567_s1 + $0x110] sm:$0xff]  ;;  %v14_v58 = vld [vmem:[%s569_s0] sm:$0xff]  ;;  %v15_v59 = vld [vmem:[%s569_s0 + $0x8] sm:$0xff] }
   0xf   :  { %340 = vmatpush1.bf16.msra.mxu1 %v339_v40  ;;  %326 = vmatprep.subr.bf16.mxu0 %v325_v41  ;;  %v16_v60 = vld [vmem:[%s569_s0 + $0x10] sm:$0xff]  ;;  %v17_v61 = vld [vmem:[%s569_s0 + $0x18] sm:$0xff] }
  0x10   :  { %342 = vmatprep.subr.bf16.mxu1 %v341_v45  ;;  %65 = vperm.xlu0 %347, %v55_v54  }
  0x12   :  { %328 = vmatpush1.bf16.msra.mxu0 %v327_v48  ;;  %75 = vperm.xlu1 %348, %v57_v55  }
  0x13   :  { %344 = vmatpush1.bf16.msra.mxu1 %v343_v49  ;;  %107 = vmatprep.subr.mxu0 %v51_v51 }
  0x14   :  { %196 = vmatprep.subr.mxu1 %v53_v53 }
  0x16   :  { %108 = vmatpush1.msra.mxu0 %v50_v56 }
  0x17   :  { %197 = vmatpush1.msra.mxu1 %v52_v57  ;;  %305 = vmatmul.mubr.msk.f32.vlgmr.msra.gmra.mrb[0].mxu0 %vm78_vm0, %v14_v58 }
  0x18   :  { %309 = vmatmul.mubr.msk.f32.vlgmr.msra.gmra.mrb[0].mxu1 %vm78_vm0, %v14_v58  ;;  %161 = vmatprep.mubr.f32.mxu0 %v349_v3 }
  0x19   :  { %250 = vmatprep.mubr.f32.mxu1 %v349_v3 }
  0x1b   :  { %306 = vmatmul.mubr.msk.f32.gmra.mrb[2].mxu0 %vm78_vm0, %v15_v59 }
  0x1c   :  { %310 = vmatmul.mubr.msk.f32.gmra.mrb[2].mxu1 %vm78_vm0, %v15_v59  ;;  %167 = vmatprep.mubr.f32.mxu0 %v349_v3 }
  0x1d   :  { %256 = vmatprep.mubr.f32.mxu1 %v349_v3 }
  0x1f   :  { %307 = vmatmul.mubr.msk.f32.gmra.mrb[4].mxu0 %vm78_vm0, %v16_v60 }
  0x20   :  { %311 = vmatmul.mubr.msk.f32.gmra.mrb[4].mxu1 %vm78_vm0, %v16_v60  ;;  %173 = vmatprep.mubr.f32.mxu0 %v349_v3 }
  0x21   :  { %262 = vmatprep.mubr.f32.mxu1 %v349_v3 }
  0x23   :  { %308 = vmatmul.mubr.msk.f32.gmra.mrb[6].mxu0 %vm78_vm0, %v17_v61 }
  0x24   :  { %312 = vmatmul.mubr.msk.f32.gmra.mrb[6].mxu1 %vm78_vm0, %v17_v61 }
  0x8b   :  { %v61_v62 = vpop.permute.xlu0 %60 }
  0x8d   :  { %v71_v17 = vpop.permute.xlu1 %70 }
  0x8f   :  { %v66_v7 = vpop.permute.xlu0 %65 }
  0x91   :  { %v76_v35 = vpop.permute.xlu1 %75 }
  0xea   :  { %v157_v63 = vpop.f32.mrb[0].mxu0 }
  0xeb   :  { %v158_v0 = vadd.f32 %v157_v63, %v61_v62  ;;  %v246_v1 = vpop.f32.mrb[0].mxu1  ;;  %v159_v2 = vpop.f32.mrb[1].mxu0 }
  0xec   :  { %v247_v4 = vadd.f32 %v246_v1, %v61_v62  ;;  %v160_v5 = vadd.f32 %v159_v2, %v61_v62  ;;  %v248_v6 = vpop.f32.mrb[1].mxu1 }
  0xed   :  { %v269_v8 = vmax.f32 %v158_v0, 0.0  ;;  %v249_v9 = vadd.f32 %v248_v6, %v61_v62 }
  0xee   :  { %v271_v10 = vmax.f32 %v247_v4, 0.0  ;;  %v270_v11 = vmax.f32 %v160_v5, 0.0  ;;  %v163_v12 = vpop.f32.mrb[2].mxu0 }
  0xef   :  { %285 = vst [vmem:[%s570_s3] sm:$0xff] %v269_v8  ;;  %v272_v3 = vmax.f32 %v249_v9, 0.0  ;;  %v164_v13 = vadd.f32 %v163_v12, %v66_v7  ;;  %v252_v14 = vpop.f32.mrb[2].mxu1  ;;  %v165_v15 = vpop.f32.mrb[3].mxu0 }
  0xf0   :  { %287 = vst [vmem:[%s570_s3 + $0x10] sm:$0xff] %v271_v10  ;;  %286 = vst [vmem:[%s570_s3 + $0x8] sm:$0xff] %v270_v11  ;;  %v253_v16 = vadd.f32 %v252_v14, %v66_v7  ;;  %v166_v18 = vadd.f32 %v165_v15, %v66_v7  ;;  %v254_v19 = vpop.f32.mrb[3].mxu1 }
  0xf1   :  { %288 = vst [vmem:[%s570_s3 + $0x18] sm:$0xff] %v272_v3  ;;  %v273_v20 = vmax.f32 %v164_v13, 0.0  ;;  %v255_v21 = vadd.f32 %v254_v19, %v66_v7 }
  0xf2   :  { %v275_v22 = vmax.f32 %v253_v16, 0.0  ;;  %v274_v23 = vmax.f32 %v166_v18, 0.0  ;;  %v169_v24 = vpop.f32.mrb[4].mxu0 }
  0xf3   :  { %289 = vst [vmem:[%s570_s3 + $0x20] sm:$0xff] %v273_v20  ;;  %v276_v25 = vmax.f32 %v255_v21, 0.0  ;;  %v170_v26 = vadd.f32 %v169_v24, %v71_v17  ;;  %v258_v27 = vpop.f32.mrb[4].mxu1  ;;  %v171_v28 = vpop.f32.mrb[5].mxu0 }
  0xf4   :  { %291 = vst [vmem:[%s570_s3 + $0x30] sm:$0xff] %v275_v22  ;;  %290 = vst [vmem:[%s570_s3 + $0x28] sm:$0xff] %v274_v23  ;;  %v259_v29 = vadd.f32 %v258_v27, %v71_v17  ;;  %v172_v30 = vadd.f32 %v171_v28, %v71_v17  ;;  %v260_v31 = vpop.f32.mrb[5].mxu1 }
  0xf5   :  { %292 = vst [vmem:[%s570_s3 + $0x38] sm:$0xff] %v276_v25  ;;  %v277_v32 = vmax.f32 %v170_v26, 0.0  ;;  %v261_v33 = vadd.f32 %v260_v31, %v71_v17 }
  0xf6   :  { %v279_v34 = vmax.f32 %v259_v29, 0.0  ;;  %v278_v36 = vmax.f32 %v172_v30, 0.0  ;;  %v175_v37 = vpop.f32.mrb[6].mxu0 }
  0xf7   :  { %293 = vst [vmem:[%s570_s3 + $0x40] sm:$0xff] %v277_v32  ;;  %v280_v38 = vmax.f32 %v261_v33, 0.0  ;;  %v176_v39 = vadd.f32 %v175_v37, %v76_v35  ;;  %v264_v40 = vpop.f32.mrb[6].mxu1  ;;  %v177_v41 = vpop.f32.mrb[7].mxu0 }
  0xf8   :  { %295 = vst [vmem:[%s570_s3 + $0x50] sm:$0xff] %v279_v34  ;;  %294 = vst [vmem:[%s570_s3 + $0x48] sm:$0xff] %v278_v36  ;;  %v265_v42 = vadd.f32 %v264_v40, %v76_v35  ;;  %v178_v43 = vadd.f32 %v177_v41, %v76_v35  ;;  %v266_v44 = vpop.f32.mrb[7].mxu1 }
  0xf9   :  { %296 = vst [vmem:[%s570_s3 + $0x58] sm:$0xff] %v280_v38  ;;  %v281_v45 = vmax.f32 %v176_v39, 0.0  ;;  %v267_v46 = vadd.f32 %v266_v44, %v76_v35 }
  0xfa   :  { %v283_v47 = vmax.f32 %v265_v42, 0.0  ;;  %v282_v48 = vmax.f32 %v178_v43, 0.0 }
  0xfb   :  { %297 = vst [vmem:[%s570_s3 + $0x60] sm:$0xff] %v281_v45  ;;  %v284_v49 = vmax.f32 %v267_v46, 0.0 }
  0xfc   :  { %299 = vst [vmem:[%s570_s3 + $0x70] sm:$0xff] %v283_v47  ;;  %298 = vst [vmem:[%s570_s3 + $0x68] sm:$0xff] %v282_v48 }
  0xfd   :  { %300 = vst [vmem:[%s570_s3 + $0x78] sm:$0xff] %v284_v49 }

// kernel: tile.37
= control target key start
LH: loop header
LB: loop body
LE: loop exit
PB: predicated region body
PF: predicated region fallthrough
CT: control target
= control target key end

     0   :  { %s20_s0 = inlined_call_operand.<no memory space> [shape: f32[], index: 0, kind: input, shape index: {}]   ;;  %s21_s1 = inlined_call_operand.vmem [shape: f32[4,1], index: 1, kind: output, shape index: {}]  }
   0x1   :  { %v2_v0 = vstv %s20_s0 }
   0x2   :  { %3 = vst [vmem:[%s21_s1] sm:$0xf] %v2_v0 }

// kernel: vaegan_forward.24
= control target key start
LH: loop header
LB: loop body
LE: loop exit
PB: predicated region body
PF: predicated region fallthrough
CT: control target
= control target key end

     0   :  { %v1096_v3 = vmov 0.0   ;;  %v1097_v8 = vmov 0   ;;  %vm165_vm0 = vcmask 588800   ;;  %s1624_s1 = inlined_call_operand.vmem [shape: f32[72,2048], index: 1, kind: input, shape index: {}]   ;;  %s1625_s0 = inlined_call_operand.vmem [shape: f32[4,72], index: 0, kind: input, shape index: {}]   ;;  %s1626_s2 = inlined_call_operand.vmem [shape: f32[4,1], index: 2, kind: input, shape index: {}]   ;;  %s1627_s3 = inlined_call_operand.vmem [shape: f32[4,2048], index: 3, kind: output, shape index: {}]  }
   0x1   :  { %v16_v0 = vld [vmem:[%s1624_s1 + $0x8] sm:$0xff]  ;;  %v18_v2 = vld [vmem:[%s1624_s1 + $0x18] sm:$0xff]  ;;  %233 = vmatprep.mubr.f32.mxu0 %v1096_v3  ;;  %304 = vmatprep.mubr.f32.mxu1 %v1096_v3  ;;  %v15_v6 = vld [vmem:[%s1624_s1] sm:$0xff] }
   0x2   :  { %v32_v1 = vld [vmem:[%s1624_s1 + $0x88] sm:$0xff]  ;;  %v34_v5 = vld [vmem:[%s1624_s1 + $0x98] sm:$0xff]  ;;  %v31_v7 = vld [vmem:[%s1624_s1 + $0x80] sm:$0xff]  ;;  %1031 = vset.pattern.permute.xlu0 %v1097_v8 }
   0x3   :  { %v901_v4 = vpack.c.bf16 %v32_v1, %v16_v0  ;;  %v917_v9 = vpack.c.bf16 %v34_v5, %v18_v2  ;;  %v903_v10 = vpack.c.bf16 %v31_v7, %v15_v6  ;;  %v17_v11 = vld [vmem:[%s1624_s1 + $0x10] sm:$0xff]  ;;  %v48_v13 = vld [vmem:[%s1624_s1 + $0x108] sm:$0xff]  ;;  %v50_v16 = vld [vmem:[%s1624_s1 + $0x118] sm:$0xff] }
   0x4   :  { %v33_v12 = vld [vmem:[%s1624_s1 + $0x90] sm:$0xff]  ;;  %v64_v15 = vld [vmem:[%s1624_s1 + $0x188] sm:$0xff]  ;;  %v66_v17 = vld [vmem:[%s1624_s1 + $0x198] sm:$0xff] }
   0x5   :  { %902 = vmatprep.subr.bf16.mxu0 %v901_v4  ;;  %v919_v14 = vpack.c.bf16 %v33_v12, %v17_v11  ;;  %918 = vmatprep.subr.bf16.mxu1 %v917_v9  ;;  %v905_v18 = vpack.c.bf16 %v64_v15, %v48_v13  ;;  %v921_v19 = vpack.c.bf16 %v66_v17, %v50_v16  ;;  %v47_v20 = vld [vmem:[%s1624_s1 + $0x100] sm:$0xff]  ;;  %v49_v22 = vld [vmem:[%s1624_s1 + $0x110] sm:$0xff]  ;;  %v80_v25 = vld [vmem:[%s1624_s1 + $0x208] sm:$0xff] }
   0x6   :  { %904 = vmatpush1.bf16.msra.mxu0 %v903_v10  ;;  %v63_v21 = vld [vmem:[%s1624_s1 + $0x180] sm:$0xff]  ;;  %v65_v24 = vld [vmem:[%s1624_s1 + $0x190] sm:$0xff]  ;;  %v96_v26 = vld [vmem:[%s1624_s1 + $0x288] sm:$0xff] }
   0x7   :  { %920 = vmatpush1.bf16.msra.mxu1 %v919_v14  ;;  %v907_v23 = vpack.c.bf16 %v63_v21, %v47_v20  ;;  %906 = vmatprep.subr.bf16.mxu0 %v905_v18  ;;  %v923_v27 = vpack.c.bf16 %v65_v24, %v49_v22  ;;  %v909_v28 = vpack.c.bf16 %v96_v26, %v80_v25  ;;  %v82_v29 = vld [vmem:[%s1624_s1 + $0x218] sm:$0xff]  ;;  %v79_v31 = vld [vmem:[%s1624_s1 + $0x200] sm:$0xff]  ;;  %v81_v34 = vld [vmem:[%s1624_s1 + $0x210] sm:$0xff] }
   0x8   :  { %922 = vmatprep.subr.bf16.mxu1 %v921_v19  ;;  %v98_v30 = vld [vmem:[%s1624_s1 + $0x298] sm:$0xff]  ;;  %v95_v33 = vld [vmem:[%s1624_s1 + $0x280] sm:$0xff]  ;;  %v97_v35 = vld [vmem:[%s1624_s1 + $0x290] sm:$0xff] }
   0x9   :  { %v925_v32 = vpack.c.bf16 %v98_v30, %v82_v29  ;;  %v911_v36 = vpack.c.bf16 %v95_v33, %v79_v31  ;;  %v112_v37 = vld [vmem:[%s1624_s1 + $0x308] sm:$0xff]  ;;  %v114_v39 = vld [vmem:[%s1624_s1 + $0x318] sm:$0xff]  ;;  %v927_v40 = vpack.c.bf16 %v97_v35, %v81_v34  ;;  %v111_v43 = vld [vmem:[%s1624_s1 + $0x300] sm:$0xff] }
   0xa   :  { %908 = vmatpush1.bf16.msra.mxu0 %v907_v23  ;;  %v128_v38 = vld [vmem:[%s1624_s1 + $0x388] sm:$0xff]  ;;  %v130_v42 = vld [vmem:[%s1624_s1 + $0x398] sm:$0xff]  ;;  %v127_v44 = vld [vmem:[%s1624_s1 + $0x380] sm:$0xff] }
   0xb   :  { %924 = vmatpush1.bf16.msra.mxu1 %v923_v27  ;;  %910 = vmatprep.subr.bf16.mxu0 %v909_v28  ;;  %v913_v41 = vpack.c.bf16 %v128_v38, %v112_v37  ;;  %v929_v45 = vpack.c.bf16 %v130_v42, %v114_v39  ;;  %v113_v46 = vld [vmem:[%s1624_s1 + $0x310] sm:$0xff]  ;;  %v915_v48 = vpack.c.bf16 %v127_v44, %v111_v43  ;;  %v144_v50 = vld [vmem:[%s1624_s1 + $0x408] sm:$0xff]  ;;  %v146_v51 = vld [vmem:[%s1624_s1 + $0x418] sm:$0xff] }
   0xc   :  { %926 = vmatprep.subr.bf16.mxu1 %v925_v32  ;;  %v129_v47 = vld [vmem:[%s1624_s1 + $0x390] sm:$0xff]  ;;  %v20_v52 = vld [vmem:[%s1624_s1 + $0x28] sm:$0xff]  ;;  %v143_v53 = vld [vmem:[%s1624_s1 + $0x400] sm:$0xff] }
   0xd   :  { %v931_v49 = vpack.c.bf16 %v129_v47, %v113_v46  ;;  %v36_v54 = vld [vmem:[%s1624_s1 + $0xa8] sm:$0xff]  ;;  %v22_v55 = vld [vmem:[%s1624_s1 + $0x38] sm:$0xff]  ;;  %v145_v57 = vld [vmem:[%s1624_s1 + $0x410] sm:$0xff] }
   0xe   :  { %912 = vmatpush1.bf16.msra.mxu0 %v911_v36  ;;  %v38_v56 = vld [vmem:[%s1624_s1 + $0xb8] sm:$0xff]  ;;  %v19_v58 = vld [vmem:[%s1624_s1 + $0x20] sm:$0xff]  ;;  %v21_v60 = vld [vmem:[%s1624_s1 + $0x30] sm:$0xff]  ;;  %v933_v1 = vpack.c.bf16 %v36_v54, %v20_v52 }
   0xf   :  { %928 = vmatpush1.bf16.msra.mxu1 %v927_v40  ;;  %914 = vmatprep.subr.bf16.mxu0 %v913_v41  ;;  %v35_v59 = vld [vmem:[%s1624_s1 + $0xa0] sm:$0xff]  ;;  %v37_v61 = vld [vmem:[%s1624_s1 + $0xb0] sm:$0xff]  ;;  %v52_v62 = vld [vmem:[%s1624_s1 + $0x128] sm:$0xff]  ;;  %v949_v5 = vpack.c.bf16 %v38_v56, %v22_v55 }
  0x10   :  { %930 = vmatprep.subr.bf16.mxu1 %v929_v45  ;;  %v68_v63 = vld [vmem:[%s1624_s1 + $0x1a8] sm:$0xff]  ;;  %v1261_v0 = vld [vmem:[%s1625_s0] sm:$0xf]  ;;  %v54_v2 = vld [vmem:[%s1624_s1 + $0x138] sm:$0xff]  ;;  %v935_v6 = vpack.c.bf16 %v35_v59, %v19_v58  ;;  %v951_v7 = vpack.c.bf16 %v37_v61, %v21_v60 }
  0x11   :  { %v70_v4 = vld [vmem:[%s1624_s1 + $0x1b8] sm:$0xff]  ;;  %v937_v8 = vpack.c.bf16 %v68_v63, %v52_v62  ;;  %v51_v9 = vld [vmem:[%s1624_s1 + $0x120] sm:$0xff]  ;;  %v53_v11 = vld [vmem:[%s1624_s1 + $0x130] sm:$0xff] }
  0x12   :  { %916 = vmatpush1.bf16.msra.mxu0 %v915_v48  ;;  %v67_v10 = vld [vmem:[%s1624_s1 + $0x1a0] sm:$0xff]  ;;  %v953_v12 = vpack.c.bf16 %v70_v4, %v54_v2  ;;  %v69_v13 = vld [vmem:[%s1624_s1 + $0x1b0] sm:$0xff]  ;;  %v84_v14 = vld [vmem:[%s1624_s1 + $0x228] sm:$0xff] }
  0x13   :  { %932 = vmatpush1.bf16.msra.mxu1 %v931_v49  ;;  %185 = vmatprep.subr.mxu0 %v144_v50  ;;  %v100_v15 = vld [vmem:[%s1624_s1 + $0x2a8] sm:$0xff]  ;;  %v86_v16 = vld [vmem:[%s1624_s1 + $0x238] sm:$0xff]  ;;  %v939_v18 = vpack.c.bf16 %v67_v10, %v51_v9  ;;  %v955_v19 = vpack.c.bf16 %v69_v13, %v53_v11  ;;  %v83_v21 = vld [vmem:[%s1624_s1 + $0x220] sm:$0xff] }
  0x14   :  { %256 = vmatprep.subr.mxu1 %v146_v51  ;;  %v102_v17 = vld [vmem:[%s1624_s1 + $0x2b8] sm:$0xff]  ;;  %v941_v20 = vpack.c.bf16 %v100_v15, %v84_v14  ;;  %v99_v22 = vld [vmem:[%s1624_s1 + $0x2a0] sm:$0xff]  ;;  %v85_v23 = vld [vmem:[%s1624_s1 + $0x230] sm:$0xff] }
  0x15   :  { %v957_v24 = vpack.c.bf16 %v102_v17, %v86_v16  ;;  %v101_v25 = vld [vmem:[%s1624_s1 + $0x2b0] sm:$0xff]  ;;  %v116_v26 = vld [vmem:[%s1624_s1 + $0x328] sm:$0xff]  ;;  %v118_v28 = vld [vmem:[%s1624_s1 + $0x338] sm:$0xff]  ;;  %v943_v30 = vpack.c.bf16 %v99_v22, %v83_v21 }
  0x16   :  { %186 = vmatpush1.msra.mxu0 %v143_v53  ;;  %v132_v27 = vld [vmem:[%s1624_s1 + $0x3a8] sm:$0xff]  ;;  %v134_v29 = vld [vmem:[%s1624_s1 + $0x3b8] sm:$0xff]  ;;  %v959_v31 = vpack.c.bf16 %v101_v25, %v85_v23  ;;  %v115_v33 = vld [vmem:[%s1624_s1 + $0x320] sm:$0xff] }
  0x17   :  { %257 = vmatpush1.msra.mxu1 %v145_v57  ;;  %877 = vmatmul.mubr.msk.f32.vlgmr.msra.gmra.mrb[0].mxu0 %vm165_vm0, %v1261_v0  ;;  %v945_v32 = vpack.c.bf16 %v132_v27, %v116_v26  ;;  %v131_v34 = vld [vmem:[%s1624_s1 + $0x3a0] sm:$0xff]  ;;  %v961_v35 = vpack.c.bf16 %v134_v29, %v118_v28  ;;  %v117_v36 = vld [vmem:[%s1624_s1 + $0x330] sm:$0xff]  ;;  %v148_v40 = vld [vmem:[%s1624_s1 + $0x428] sm:$0xff] }
  0x18   :  { %878 = vmatmul.mubr.msk.f32.vlgmr.msra.gmra.mrb[0].mxu1 %vm165_vm0, %v1261_v0  ;;  %934 = vmatprep.subr.bf16.mxu0 %v933_v1  ;;  %v133_v37 = vld [vmem:[%s1624_s1 + $0x3b0] sm:$0xff]  ;;  %v947_v38 = vpack.c.bf16 %v131_v34, %v115_v33  ;;  %v150_v41 = vld [vmem:[%s1624_s1 + $0x438] sm:$0xff]  ;;  %v24_v42 = vld [vmem:[%s1624_s1 + $0x48] sm:$0xff] }
  0x19   :  { %950 = vmatprep.subr.bf16.mxu1 %v949_v5  ;;  %936 = vmatpush1.bf16.msra.mxu0 %v935_v6  ;;  %v963_v39 = vpack.c.bf16 %v133_v37, %v117_v36  ;;  %v147_v43 = vld [vmem:[%s1624_s1 + $0x420] sm:$0xff]  ;;  %v40_v44 = vld [vmem:[%s1624_s1 + $0xc8] sm:$0xff]  ;;  %v26_v45 = vld [vmem:[%s1624_s1 + $0x58] sm:$0xff] }
  0x1a   :  { %952 = vmatpush1.bf16.msra.mxu1 %v951_v7  ;;  %938 = vmatprep.subr.bf16.mxu0 %v937_v8  ;;  %v42_v46 = vld [vmem:[%s1624_s1 + $0xd8] sm:$0xff]  ;;  %v23_v47 = vld [vmem:[%s1624_s1 + $0x40] sm:$0xff]  ;;  %v25_v49 = vld [vmem:[%s1624_s1 + $0x50] sm:$0xff]  ;;  %v965_v54 = vpack.c.bf16 %v40_v44, %v24_v42 }
  0x1b   :  { %954 = vmatprep.subr.bf16.mxu1 %v953_v12  ;;  %375 = vmatprep.mubr.f32.mxu0 %v1096_v3  ;;  %v39_v48 = vld [vmem:[%s1624_s1 + $0xc0] sm:$0xff]  ;;  %v41_v50 = vld [vmem:[%s1624_s1 + $0xd0] sm:$0xff]  ;;  %v56_v51 = vld [vmem:[%s1624_s1 + $0x148] sm:$0xff]  ;;  %v981_v57 = vpack.c.bf16 %v42_v46, %v26_v45 }
  0x1c   :  { %446 = vmatprep.mubr.f32.mxu1 %v1096_v3  ;;  %v72_v52 = vld [vmem:[%s1624_s1 + $0x1c8] sm:$0xff]  ;;  %v149_v53 = vld [vmem:[%s1624_s1 + $0x430] sm:$0xff]  ;;  %v58_v55 = vld [vmem:[%s1624_s1 + $0x158] sm:$0xff]  ;;  %v967_v58 = vpack.c.bf16 %v39_v48, %v23_v47  ;;  %v983_v59 = vpack.c.bf16 %v41_v50, %v25_v49 }
  0x1d   :  { %940 = vmatpush1.bf16.msra.mxu0 %v939_v18  ;;  %v74_v56 = vld [vmem:[%s1624_s1 + $0x1d8] sm:$0xff]  ;;  %v969_v60 = vpack.c.bf16 %v72_v52, %v56_v51  ;;  %v55_v61 = vld [vmem:[%s1624_s1 + $0x140] sm:$0xff]  ;;  %v57_v63 = vld [vmem:[%s1624_s1 + $0x150] sm:$0xff] }
  0x1e   :  { %956 = vmatpush1.bf16.msra.mxu1 %v955_v19  ;;  %942 = vmatprep.subr.bf16.mxu0 %v941_v20  ;;  %v71_v62 = vld [vmem:[%s1624_s1 + $0x1c0] sm:$0xff]  ;;  %v985_v1 = vpack.c.bf16 %v74_v56, %v58_v55  ;;  %v73_v2 = vld [vmem:[%s1624_s1 + $0x1d0] sm:$0xff]  ;;  %v88_v4 = vld [vmem:[%s1624_s1 + $0x248] sm:$0xff] }
  0x1f   :  { %958 = vmatprep.subr.bf16.mxu1 %v957_v24  ;;  %v104_v5 = vld [vmem:[%s1624_s1 + $0x2c8] sm:$0xff]  ;;  %v90_v6 = vld [vmem:[%s1624_s1 + $0x258] sm:$0xff]  ;;  %v971_v8 = vpack.c.bf16 %v71_v62, %v55_v61  ;;  %v987_v9 = vpack.c.bf16 %v73_v2, %v57_v63  ;;  %v87_v11 = vld [vmem:[%s1624_s1 + $0x240] sm:$0xff] }
  0x20   :  { %v106_v7 = vld [vmem:[%s1624_s1 + $0x2d8] sm:$0xff]  ;;  %v973_v10 = vpack.c.bf16 %v104_v5, %v88_v4  ;;  %v103_v12 = vld [vmem:[%s1624_s1 + $0x2c0] sm:$0xff]  ;;  %v89_v13 = vld [vmem:[%s1624_s1 + $0x250] sm:$0xff] }
  0x21   :  { %944 = vmatpush1.bf16.msra.mxu0 %v943_v30  ;;  %v989_v14 = vpack.c.bf16 %v106_v7, %v90_v6  ;;  %v105_v15 = vld [vmem:[%s1624_s1 + $0x2d0] sm:$0xff]  ;;  %v120_v16 = vld [vmem:[%s1624_s1 + $0x348] sm:$0xff]  ;;  %v122_v18 = vld [vmem:[%s1624_s1 + $0x358] sm:$0xff]  ;;  %v975_v20 = vpack.c.bf16 %v103_v12, %v87_v11 }
  0x22   :  { %960 = vmatpush1.bf16.msra.mxu1 %v959_v31  ;;  %946 = vmatprep.subr.bf16.mxu0 %v945_v32  ;;  %v136_v17 = vld [vmem:[%s1624_s1 + $0x3c8] sm:$0xff]  ;;  %v138_v19 = vld [vmem:[%s1624_s1 + $0x3d8] sm:$0xff]  ;;  %v991_v21 = vpack.c.bf16 %v105_v15, %v89_v13  ;;  %v119_v23 = vld [vmem:[%s1624_s1 + $0x340] sm:$0xff] }
  0x23   :  { %962 = vmatprep.subr.bf16.mxu1 %v961_v35  ;;  %v977_v22 = vpack.c.bf16 %v136_v17, %v120_v16  ;;  %v135_v24 = vld [vmem:[%s1624_s1 + $0x3c0] sm:$0xff]  ;;  %v993_v25 = vpack.c.bf16 %v138_v19, %v122_v18  ;;  %v121_v26 = vld [vmem:[%s1624_s1 + $0x350] sm:$0xff]  ;;  %v152_v31 = vld [vmem:[%s1624_s1 + $0x448] sm:$0xff] }
  0x24   :  { %v137_v27 = vld [vmem:[%s1624_s1 + $0x3d0] sm:$0xff]  ;;  %v159_v28 = vld [vmem:[%s1626_s2] sm:$0xf]  ;;  %v979_v29 = vpack.c.bf16 %v135_v24, %v119_v23  ;;  %v154_v32 = vld [vmem:[%s1624_s1 + $0x458] sm:$0xff] }
  0x25   :  { %948 = vmatpush1.bf16.msra.mxu0 %v947_v38  ;;  %162 = vperm.xlu0 %1031, %v159_v28   ;;  %v995_v30 = vpack.c.bf16 %v137_v27, %v121_v26  ;;  %v28_v33 = vld [vmem:[%s1624_s1 + $0x68] sm:$0xff]  ;;  %v151_v34 = vld [vmem:[%s1624_s1 + $0x440] sm:$0xff]  ;;  %v30_v36 = vld [vmem:[%s1624_s1 + $0x78] sm:$0xff] }
  0x26   :  { %964 = vmatpush1.bf16.msra.mxu1 %v963_v39  ;;  %327 = vmatprep.subr.mxu0 %v148_v40  ;;  %v44_v35 = vld [vmem:[%s1624_s1 + $0xe8] sm:$0xff]  ;;  %v46_v37 = vld [vmem:[%s1624_s1 + $0xf8] sm:$0xff]  ;;  %v27_v38 = vld [vmem:[%s1624_s1 + $0x60] sm:$0xff] }
  0x27   :  { %398 = vmatprep.subr.mxu1 %v150_v41  ;;  %v43_v39 = vld [vmem:[%s1624_s1 + $0xe0] sm:$0xff]  ;;  %v29_v40 = vld [vmem:[%s1624_s1 + $0x70] sm:$0xff]  ;;  %v60_v42 = vld [vmem:[%s1624_s1 + $0x168] sm:$0xff]  ;;  %v997_v45 = vpack.c.bf16 %v44_v35, %v28_v33  ;;  %v1013_v48 = vpack.c.bf16 %v46_v37, %v30_v36 }
  0x28   :  { %v45_v41 = vld [vmem:[%s1624_s1 + $0xf0] sm:$0xff]  ;;  %v62_v46 = vld [vmem:[%s1624_s1 + $0x178] sm:$0xff]  ;;  %v999_v49 = vpack.c.bf16 %v43_v39, %v27_v38  ;;  %v59_v52 = vld [vmem:[%s1624_s1 + $0x160] sm:$0xff] }
  0x29   :  { %328 = vmatpush1.msra.mxu0 %v147_v43  ;;  %v76_v43 = vld [vmem:[%s1624_s1 + $0x1e8] sm:$0xff]  ;;  %v153_v44 = vld [vmem:[%s1624_s1 + $0x450] sm:$0xff]  ;;  %v78_v47 = vld [vmem:[%s1624_s1 + $0x1f8] sm:$0xff]  ;;  %v1015_v50 = vpack.c.bf16 %v45_v41, %v29_v40 }
  0x2a   :  { %399 = vmatpush1.msra.mxu1 %v149_v53  ;;  %879 = vmatmul.mubr.msk.f32.vlgmr.msra.gmra.mrb[2].mxu0 %vm165_vm0, %v1261_v0  ;;  %v1001_v51 = vpack.c.bf16 %v76_v43, %v60_v42  ;;  %v75_v53 = vld [vmem:[%s1624_s1 + $0x1e0] sm:$0xff]  ;;  %v1017_v55 = vpack.c.bf16 %v78_v47, %v62_v46  ;;  %v77_v56 = vld [vmem:[%s1624_s1 + $0x1f0] sm:$0xff]  ;;  %v124_v7 = vld [vmem:[%s1624_s1 + $0x368] sm:$0xff] }
  0x2b   :  { %880 = vmatmul.mubr.msk.f32.vlgmr.msra.gmra.mrb[2].mxu1 %vm165_vm0, %v1261_v0  ;;  %966 = vmatprep.subr.bf16.mxu0 %v965_v54  ;;  %v61_v54 = vld [vmem:[%s1624_s1 + $0x170] sm:$0xff]  ;;  %v1003_v61 = vpack.c.bf16 %v75_v53, %v59_v52  ;;  %v107_v2 = vld [vmem:[%s1624_s1 + $0x2e0] sm:$0xff] }
  0x2c   :  { %982 = vmatprep.subr.bf16.mxu1 %v981_v57  ;;  %968 = vmatpush1.bf16.msra.mxu0 %v967_v58  ;;  %v92_v57 = vld [vmem:[%s1624_s1 + $0x268] sm:$0xff]  ;;  %v1019_v62 = vpack.c.bf16 %v77_v56, %v61_v54  ;;  %v93_v4 = vld [vmem:[%s1624_s1 + $0x270] sm:$0xff]  ;;  %v139_v15 = vld [vmem:[%s1624_s1 + $0x3e0] sm:$0xff] }
  0x2d   :  { %984 = vmatpush1.bf16.msra.mxu1 %v983_v59  ;;  %970 = vmatprep.subr.bf16.mxu0 %v969_v60  ;;  %v108_v58 = vld [vmem:[%s1624_s1 + $0x2e8] sm:$0xff]  ;;  %v94_v59 = vld [vmem:[%s1624_s1 + $0x278] sm:$0xff]  ;;  %v109_v6 = vld [vmem:[%s1624_s1 + $0x2f0] sm:$0xff] }
  0x2e   :  { %986 = vmatprep.subr.bf16.mxu1 %v985_v1  ;;  %517 = vmatprep.mubr.f32.mxu0 %v1096_v3  ;;  %v110_v60 = vld [vmem:[%s1624_s1 + $0x2f8] sm:$0xff]  ;;  %v1005_v63 = vpack.c.bf16 %v108_v58, %v92_v57  ;;  %v91_v1 = vld [vmem:[%s1624_s1 + $0x260] sm:$0xff]  ;;  %v1023_v12 = vpack.c.bf16 %v109_v6, %v93_v4  ;;  %v141_v17 = vld [vmem:[%s1624_s1 + $0x3f0] sm:$0xff] }
  0x2f   :  { %588 = vmatprep.mubr.f32.mxu1 %v1096_v3  ;;  %v1021_v5 = vpack.c.bf16 %v110_v60, %v94_v59  ;;  %v1007_v11 = vpack.c.bf16 %v107_v2, %v91_v1  ;;  %v157_v23 = vld [vmem:[%s1624_s1 + $0x470] sm:$0xff] }
  0x30   :  { %972 = vmatpush1.bf16.msra.mxu0 %v971_v8  ;;  %v140_v8 = vld [vmem:[%s1624_s1 + $0x3e8] sm:$0xff] }
  0x31   :  { %988 = vmatpush1.bf16.msra.mxu1 %v987_v9  ;;  %974 = vmatprep.subr.bf16.mxu0 %v973_v10  ;;  %v126_v9 = vld [vmem:[%s1624_s1 + $0x378] sm:$0xff]  ;;  %v1009_v13 = vpack.c.bf16 %v140_v8, %v124_v7 }
  0x32   :  { %990 = vmatprep.subr.bf16.mxu1 %v989_v14  ;;  %v142_v10 = vld [vmem:[%s1624_s1 + $0x3f8] sm:$0xff]  ;;  %v123_v14 = vld [vmem:[%s1624_s1 + $0x360] sm:$0xff] }
  0x33   :  { %v1025_v16 = vpack.c.bf16 %v142_v10, %v126_v9  ;;  %v1011_v18 = vpack.c.bf16 %v139_v15, %v123_v14 }
  0x34   :  { %976 = vmatpush1.bf16.msra.mxu0 %v975_v20  ;;  %v156_v20 = vld [vmem:[%s1624_s1 + $0x468] sm:$0xff] }
  0x35   :  { %992 = vmatpush1.bf16.msra.mxu1 %v991_v21  ;;  %978 = vmatprep.subr.bf16.mxu0 %v977_v22  ;;  %v158_v21 = vld [vmem:[%s1624_s1 + $0x478] sm:$0xff]  ;;  %v155_v22 = vld [vmem:[%s1624_s1 + $0x460] sm:$0xff] }
  0x36   :  { %994 = vmatprep.subr.bf16.mxu1 %v993_v25 }
  0x38   :  { %980 = vmatpush1.bf16.msra.mxu0 %v979_v29 }
  0x39   :  { %996 = vmatpush1.bf16.msra.mxu1 %v995_v30  ;;  %469 = vmatprep.subr.mxu0 %v152_v31 }
  0x3a   :  { %540 = vmatprep.subr.mxu1 %v154_v32 }
  0x3c   :  { %470 = vmatpush1.msra.mxu0 %v151_v34 }
  0x3d   :  { %541 = vmatpush1.msra.mxu1 %v153_v44  ;;  %881 = vmatmul.mubr.msk.f32.vlgmr.msra.gmra.mrb[4].mxu0 %vm165_vm0, %v1261_v0 }
  0x3e   :  { %882 = vmatmul.mubr.msk.f32.vlgmr.msra.gmra.mrb[4].mxu1 %vm165_vm0, %v1261_v0  ;;  %998 = vmatprep.subr.bf16.mxu0 %v997_v45 }
  0x3f   :  { %1014 = vmatprep.subr.bf16.mxu1 %v1013_v48  ;;  %1000 = vmatpush1.bf16.msra.mxu0 %v999_v49 }
  0x40   :  { %1016 = vmatpush1.bf16.msra.mxu1 %v1015_v50  ;;  %1002 = vmatprep.subr.bf16.mxu0 %v1001_v51 }
  0x41   :  { %1018 = vmatprep.subr.bf16.mxu1 %v1017_v55  ;;  %659 = vmatprep.mubr.f32.mxu0 %v1096_v3 }
  0x42   :  { %730 = vmatprep.mubr.f32.mxu1 %v1096_v3  ;;  %v125_v3 = vld [vmem:[%s1624_s1 + $0x370] sm:$0xff] }
  0x43   :  { %1004 = vmatpush1.bf16.msra.mxu0 %v1003_v61  ;;  %v1027_v19 = vpack.c.bf16 %v141_v17, %v125_v3 }
  0x44   :  { %1020 = vmatpush1.bf16.msra.mxu1 %v1019_v62  ;;  %1006 = vmatprep.subr.bf16.mxu0 %v1005_v63 }
  0x45   :  { %1022 = vmatprep.subr.bf16.mxu1 %v1021_v5 }
  0x47   :  { %1008 = vmatpush1.bf16.msra.mxu0 %v1007_v11 }
  0x48   :  { %1024 = vmatpush1.bf16.msra.mxu1 %v1023_v12  ;;  %1010 = vmatprep.subr.bf16.mxu0 %v1009_v13 }
  0x49   :  { %1026 = vmatprep.subr.bf16.mxu1 %v1025_v16 }
  0x4b   :  { %1012 = vmatpush1.bf16.msra.mxu0 %v1011_v18 }
  0x4c   :  { %1028 = vmatpush1.bf16.msra.mxu1 %v1027_v19  ;;  %611 = vmatprep.subr.mxu0 %v156_v20 }
  0x4d   :  { %682 = vmatprep.subr.mxu1 %v158_v21 }
  0x4f   :  { %612 = vmatpush1.msra.mxu0 %v155_v22 }
  0x50   :  { %683 = vmatpush1.msra.mxu1 %v157_v23  ;;  %883 = vmatmul.mubr.msk.f32.vlgmr.msra.gmra.mrb[6].mxu0 %vm165_vm0, %v1261_v0 }
  0x51   :  { %884 = vmatmul.mubr.msk.f32.vlgmr.msra.gmra.mrb[6].mxu1 %vm165_vm0, %v1261_v0 }
  0xa4   :  { %v1582_v24 = vpop.permute.xlu0 %162 }
  0xea   :  { %v235_v25 = vpop.f32.mrb[0].mxu0 }
  0xeb   :  { %v306_v26 = vpop.f32.mrb[0].mxu1  ;;  %v236_v27 = vadd.f32 %v235_v25, %v1582_v24  ;;  %v237_v28 = vpop.f32.mrb[1].mxu0 }
  0xec   :  { %v238_v29 = vadd.f32 %v237_v28, %v1582_v24  ;;  %v307_v30 = vadd.f32 %v306_v26, %v1582_v24  ;;  %v308_v31 = vpop.f32.mrb[1].mxu1 }
  0xed   :  { %v885_v32 = vmul.f32 -1.442695, %v236_v27  ;;  %v309_v33 = vadd.f32 %v308_v31, %v1582_v24 }
  0xee   :  { %v886_v34 = vmul.f32 -1.442695, %v238_v29  ;;  %v887_v35 = vmul.f32 -1.442695, %v307_v30 }
  0xef   :  { %1032 = vpow2.f32 %v885_v32  ;;  %v888_v36 = vmul.f32 -1.442695, %v309_v33 }
  0xf0   :  { %1034 = vpow2.f32 %v886_v34 }
  0xf1   :  { %1036 = vpow2.f32 %v887_v35 }
  0xf2   :  { %1038 = vpow2.f32 %v888_v36 }
  0xf9   :  { %v1033_v0 = vpop.eup %1032 }
  0xfa   :  { %v1035_v37 = vpop.eup %1034  ;;  %v785_v38 = vadd.f32 1.0, %v1033_v0 }
  0xfb   :  { %v1037_v39 = vpop.eup %1036  ;;  %v786_v40 = vadd.f32 1.0, %v1035_v37 }
  0xfc   :  { %v1039_v41 = vpop.eup %1038  ;;  %1040 = vrcp.f32 %v785_v38  ;;  %v787_v42 = vadd.f32 1.0, %v1037_v39 }
  0xfd   :  { %1042 = vrcp.f32 %v786_v40  ;;  %v788_v43 = vadd.f32 1.0, %v1039_v41  ;;  %v377_v44 = vpop.f32.mrb[2].mxu0 }
  0xfe   :  { %1044 = vrcp.f32 %v787_v42  ;;  %v378_v45 = vadd.f32 %v377_v44, %v1582_v24  ;;  %v448_v46 = vpop.f32.mrb[2].mxu1  ;;  %v379_v47 = vpop.f32.mrb[3].mxu0 }
  0xff   :  { %1046 = vrcp.f32 %v788_v43  ;;  %v449_v48 = vadd.f32 %v448_v46, %v1582_v24  ;;  %v380_v49 = vadd.f32 %v379_v47, %v1582_v24  ;;  %v450_v50 = vpop.f32.mrb[3].mxu1 }
 0x100   :  { %v889_v51 = vmul.f32 -1.442695, %v378_v45  ;;  %v451_v52 = vadd.f32 %v450_v50, %v1582_v24 }
 0x101   :  { %v891_v53 = vmul.f32 -1.442695, %v449_v48  ;;  %v890_v54 = vmul.f32 -1.442695, %v380_v49 }
 0x102   :  { %1048 = vpow2.f32 %v889_v51  ;;  %v892_v55 = vmul.f32 -1.442695, %v451_v52 }
 0x103   :  { %1050 = vpow2.f32 %v891_v53 }
 0x104   :  { %1052 = vpow2.f32 %v890_v54 }
 0x105   :  { %1054 = vpow2.f32 %v892_v55 }
 0x106   :  { %v1041_v56 = vpop.eup %1040 }
 0x107   :  { %v1043_v57 = vpop.eup %1042 }
 0x108   :  { %v1045_v58 = vpop.eup %1044  ;;  %v849_v59 = vcombine.low %v1041_v56, %v1043_v57 }
 0x109   :  { %v1047_v60 = vpop.eup %1046 }
 0x10a   :  { %865 = vst [vmem:[%s1627_s3] sm:$0xff] %v849_v59  ;;  %v850_v61 = vcombine.low %v1045_v58, %v1047_v60 }
 0x10c   :  { %v1049_v62 = vpop.eup %1048  ;;  %866 = vst [vmem:[%s1627_s3 + $0x8] sm:$0xff] %v850_v61 }
 0x10d   :  { %v1051_v63 = vpop.eup %1050  ;;  %v789_v1 = vadd.f32 1.0, %v1049_v62 }
 0x10e   :  { %v1053_v2 = vpop.eup %1052  ;;  %v791_v4 = vadd.f32 1.0, %v1051_v63 }
 0x10f   :  { %v1055_v5 = vpop.eup %1054  ;;  %1056 = vrcp.f32 %v789_v1  ;;  %v790_v6 = vadd.f32 1.0, %v1053_v2 }
 0x110   :  { %1058 = vrcp.f32 %v791_v4  ;;  %v792_v7 = vadd.f32 1.0, %v1055_v5  ;;  %v519_v8 = vpop.f32.mrb[4].mxu0 }
 0x111   :  { %1060 = vrcp.f32 %v790_v6  ;;  %v520_v9 = vadd.f32 %v519_v8, %v1582_v24  ;;  %v590_v10 = vpop.f32.mrb[4].mxu1  ;;  %v521_v11 = vpop.f32.mrb[5].mxu0 }
 0x112   :  { %1062 = vrcp.f32 %v792_v7  ;;  %v591_v12 = vadd.f32 %v590_v10, %v1582_v24  ;;  %v522_v13 = vadd.f32 %v521_v11, %v1582_v24  ;;  %v592_v14 = vpop.f32.mrb[5].mxu1 }
 0x113   :  { %v893_v15 = vmul.f32 -1.442695, %v520_v9  ;;  %v593_v16 = vadd.f32 %v592_v14, %v1582_v24 }
 0x114   :  { %v895_v3 = vmul.f32 -1.442695, %v591_v12  ;;  %v894_v17 = vmul.f32 -1.442695, %v522_v13 }
 0x115   :  { %1064 = vpow2.f32 %v893_v15  ;;  %v896_v18 = vmul.f32 -1.442695, %v593_v16 }
 0x116   :  { %1066 = vpow2.f32 %v895_v3 }
 0x117   :  { %1068 = vpow2.f32 %v894_v17 }
 0x118   :  { %1070 = vpow2.f32 %v896_v18 }
 0x119   :  { %v1057_v19 = vpop.eup %1056 }
 0x11a   :  { %v1059_v20 = vpop.eup %1058 }
 0x11b   :  { %v1061_v21 = vpop.eup %1060 }
 0x11c   :  { %v1063_v22 = vpop.eup %1062  ;;  %v851_v23 = vcombine.low %v1057_v19, %v1061_v21 }
 0x11d   :  { %v852_v25 = vcombine.low %v1059_v20, %v1063_v22 }
 0x11e   :  { %867 = vst [vmem:[%s1627_s3 + $0x10] sm:$0xff] %v851_v23 }
 0x11f   :  { %v1065_v26 = vpop.eup %1064  ;;  %868 = vst [vmem:[%s1627_s3 + $0x18] sm:$0xff] %v852_v25 }
 0x120   :  { %v1067_v27 = vpop.eup %1066  ;;  %v793_v28 = vadd.f32 1.0, %v1065_v26 }
 0x121   :  { %v1069_v29 = vpop.eup %1068  ;;  %v795_v30 = vadd.f32 1.0, %v1067_v27 }
 0x122   :  { %v1071_v31 = vpop.eup %1070  ;;  %1072 = vrcp.f32 %v793_v28  ;;  %v794_v32 = vadd.f32 1.0, %v1069_v29 }
 0x123   :  { %1074 = vrcp.f32 %v795_v30  ;;  %v796_v33 = vadd.f32 1.0, %v1071_v31  ;;  %v661_v34 = vpop.f32.mrb[6].mxu0 }
 0x124   :  { %1076 = vrcp.f32 %v794_v32  ;;  %v662_v35 = vadd.f32 %v661_v34, %v1582_v24  ;;  %v732_v36 = vpop.f32.mrb[6].mxu1  ;;  %v663_v0 = vpop.f32.mrb[7].mxu0 }
 0x125   :  { %1078 = vrcp.f32 %v796_v33  ;;  %v733_v37 = vadd.f32 %v732_v36, %v1582_v24  ;;  %v664_v38 = vadd.f32 %v663_v0, %v1582_v24  ;;  %v734_v39 = vpop.f32.mrb[7].mxu1 }
 0x126   :  { %v897_v40 = vmul.f32 -1.442695, %v662_v35  ;;  %v735_v41 = vadd.f32 %v734_v39, %v1582_v24 }
 0x127   :  { %v899_v42 = vmul.f32 -1.442695, %v733_v37  ;;  %v898_v43 = vmul.f32 -1.442695, %v664_v38 }
 0x128   :  { %1080 = vpow2.f32 %v897_v40  ;;  %v900_v44 = vmul.f32 -1.442695, %v735_v41 }
 0x129   :  { %1082 = vpow2.f32 %v899_v42 }
 0x12a   :  { %1084 = vpow2.f32 %v898_v43 }
 0x12b   :  { %1086 = vpow2.f32 %v900_v44 }
 0x12c   :  { %v1073_v45 = vpop.eup %1072 }
 0x12d   :  { %v1075_v46 = vpop.eup %1074 }
 0x12e   :  { %v1077_v47 = vpop.eup %1076 }
 0x12f   :  { %v1079_v48 = vpop.eup %1078  ;;  %v853_v49 = vcombine.low %v1073_v45, %v1077_v47 }
 0x130   :  { %v854_v50 = vcombine.low %v1075_v46, %v1079_v48 }
 0x131   :  { %869 = vst [vmem:[%s1627_s3 + $0x20] sm:$0xff] %v853_v49 }
 0x132   :  { %v1081_v51 = vpop.eup %1080  ;;  %870 = vst [vmem:[%s1627_s3 + $0x28] sm:$0xff] %v854_v50 }
 0x133   :  { %v1083_v24 = vpop.eup %1082  ;;  %v797_v52 = vadd.f32 1.0, %v1081_v51 }
 0x134   :  { %v1085_v53 = vpop.eup %1084  ;;  %v799_v54 = vadd.f32 1.0, %v1083_v24 }
 0x135   :  { %v1087_v55 = vpop.eup %1086  ;;  %1088 = vrcp.f32 %v797_v52  ;;  %v798_v56 = vadd.f32 1.0, %v1085_v53 }
 0x136   :  { %1090 = vrcp.f32 %v799_v54  ;;  %v800_v57 = vadd.f32 1.0, %v1087_v55 }
 0x137   :  { %1092 = vrcp.f32 %v798_v56 }
 0x138   :  { %1094 = vrcp.f32 %v800_v57 }
 0x13f   :  { %v1089_v58 = vpop.eup %1088 }
 0x140   :  { %v1091_v59 = vpop.eup %1090 }
 0x141   :  { %v1093_v60 = vpop.eup %1092 }
 0x142   :  { %v1095_v61 = vpop.eup %1094  ;;  %v855_v62 = vcombine.low %v1089_v58, %v1093_v60 }
 0x143   :  { %v856_v63 = vcombine.low %v1091_v59, %v1095_v61 }
 0x144   :  { %871 = vst [vmem:[%s1627_s3 + $0x30] sm:$0xff] %v855_v62 }
 0x145   :  { %872 = vst [vmem:[%s1627_s3 + $0x38] sm:$0xff] %v856_v63 }

// kernel: vaegan_forward.25
= control target key start
LH: loop header
LB: loop body
LE: loop exit
PB: predicated region body
PF: predicated region fallthrough
CT: control target
= control target key end

     0   :  { %s1087_s12 = smov 0   ;;  %s1089_s13 = smov 0   ;;  %s1291_s0 = inlined_call_operand.vmem [shape: f32[8,16], index: 0, kind: input, shape index: {}]   ;;  %s1292_s1 = inlined_call_operand.vmem [shape: f32[16,4096], index: 1, kind: input, shape index: {}]   ;;  %s1293_s2 = inlined_call_operand.vmem [shape: f32[8,1], index: 2, kind: input, shape index: {}]   ;;  %s1294_s3 = inlined_call_operand.vmem [shape: f32[8,4096], index: 3, kind: output, shape index: {}]  }
   0x1   :  { %s1091_s14 = smov 0  }
   0x2 LB: > { %s960_s15 = sadd.s32 4294967295, %s1063_s14   ;;  %s1104_s16 = sadd.s32 1, %s1063_s14   ;;  %s1063_s14 = sphi %s1091_s14, %s1297_s14   ;;  %s1059_s13 = sphi %s1089_s13, %s1296_s13   ;;  %s1055_s12 = sphi %s1087_s12, %s1295_s12  }
   0x3   : > { %s38_s17 = ssub.s32 %s1063_s14, %s1104_s16  ;;  %s41_s18 = sadd.s32 1, %s1059_s13 }
   0x4   : > { %p39_p0 = scmp.eq.s32.totalorder %s38_s17, 0  ;;  %p48_p1 = scmp.ne.s32.totalorder %s1059_s13, %s1055_s12 }
   0x5   : > { %p49_p2 = scmp.eq.s32.totalorder %s1063_s14, 0  ;;  %p963_p4 = scmp.ge.s32.totalorder %s1063_s14, 2 }
   0x6   : > { %s1113_s19 = scalar_select %p39_p0, %s1059_s13, %s41_s18  }
   0x7   : > { %p50_p3 = por %p49_p2, %p48_p1  ;;  %127 = sbr.rel (%p963_p4) target bundleno = 34 (0x22), region = 24 }
   0xe   : > { %130 = sbr.rel (!%p50_p3) target bundleno = 34 (0x22), region = 28  ;;  %s132_s20 = sand.u32 (%p50_p3), 1, %s1059_s13  }
   0xf   : > { %s981_s21 = sshll.u32 (%p50_p3), %s1063_s14, 7  ;;  %s964_s22 = sshll.u32 (%p50_p3), %s132_s20, 8 }
  0x10   : > { %s1121_s25 = scalar_lea.vmem (%p50_p3), %s1292_s1, %s981_s21  ;;  %s1126_s26 = scalar_lea.vmem (%p50_p3), [#allocation2], %s964_s22 }
  0x11   : > { %v150_v0 = vld [vmem:[%s1121_s25] sm:$0xff] (%p50_p3)  ;;  %v152_v1 = vld [vmem:[%s1121_s25 + $0x8] sm:$0xff] (%p50_p3)  ;;  %v154_v2 = vld [vmem:[%s1121_s25 + $0x10] sm:$0xff] (%p50_p3) }
  0x12   : > { %151 = vst [vmem:[%s1126_s26] sm:$0xff] (%p50_p3), %v150_v0  ;;  %153 = vst [vmem:[%s1126_s26 + $0x8] sm:$0xff] (%p50_p3), %v152_v1  ;;  %v156_v3 = vld [vmem:[%s1121_s25 + $0x18] sm:$0xff] (%p50_p3)  ;;  %v158_v4 = vld [vmem:[%s1121_s25 + $0x20] sm:$0xff] (%p50_p3) }
  0x13   : > { %155 = vst [vmem:[%s1126_s26 + $0x10] sm:$0xff] (%p50_p3), %v154_v2  ;;  %v160_v5 = vld [vmem:[%s1121_s25 + $0x28] sm:$0xff] (%p50_p3)  ;;  %157 = vst [vmem:[%s1126_s26 + $0x18] sm:$0xff] (%p50_p3), %v156_v3  ;;  %v162_v6 = vld [vmem:[%s1121_s25 + $0x30] sm:$0xff] (%p50_p3) }
  0x14   : > { %159 = vst [vmem:[%s1126_s26 + $0x20] sm:$0xff] (%p50_p3), %v158_v4  ;;  %161 = vst [vmem:[%s1126_s26 + $0x28] sm:$0xff] (%p50_p3), %v160_v5  ;;  %v164_v7 = vld [vmem:[%s1121_s25 + $0x38] sm:$0xff] (%p50_p3)  ;;  %v166_v8 = vld [vmem:[%s1121_s25 + $0x40] sm:$0xff] (%p50_p3) }
  0x15   : > { %163 = vst [vmem:[%s1126_s26 + $0x30] sm:$0xff] %v162_v6  ;;  %165 = vst [vmem:[%s1126_s26 + $0x38] sm:$0xff] %v164_v7  ;;  %v168_v9 = vld [vmem:[%s1121_s25 + $0x48] sm:$0xff]  ;;  %v170_v10 = vld [vmem:[%s1121_s25 + $0x50] sm:$0xff] }
  0x16   : > { %167 = vst [vmem:[%s1126_s26 + $0x40] sm:$0xff] %v166_v8  ;;  %v172_v11 = vld [vmem:[%s1121_s25 + $0x58] sm:$0xff]  ;;  %169 = vst [vmem:[%s1126_s26 + $0x48] sm:$0xff] %v168_v9  ;;  %v174_v12 = vld [vmem:[%s1121_s25 + $0x60] sm:$0xff] }
  0x17   : > { %171 = vst [vmem:[%s1126_s26 + $0x50] sm:$0xff] %v170_v10  ;;  %173 = vst [vmem:[%s1126_s26 + $0x58] sm:$0xff] %v172_v11  ;;  %v176_v13 = vld [vmem:[%s1121_s25 + $0x68] sm:$0xff]  ;;  %v178_v14 = vld [vmem:[%s1121_s25 + $0x70] sm:$0xff] }
  0x18   : > { %175 = vst [vmem:[%s1126_s26 + $0x60] sm:$0xff] %v174_v12  ;;  %177 = vst [vmem:[%s1126_s26 + $0x68] sm:$0xff] %v176_v13  ;;  %v180_v15 = vld [vmem:[%s1121_s25 + $0x78] sm:$0xff]  ;;  %v182_v16 = vld [vmem:[%s1121_s25 + $0x100] sm:$0xff] }
  0x19   : > { %179 = vst [vmem:[%s1126_s26 + $0x70] sm:$0xff] %v178_v14  ;;  %v184_v17 = vld [vmem:[%s1121_s25 + $0x108] sm:$0xff]  ;;  %181 = vst [vmem:[%s1126_s26 + $0x78] sm:$0xff] %v180_v15  ;;  %v186_v18 = vld [vmem:[%s1121_s25 + $0x110] sm:$0xff] }
  0x1a   : > { %183 = vst [vmem:[%s1126_s26 + $0x80] sm:$0xff] %v182_v16  ;;  %185 = vst [vmem:[%s1126_s26 + $0x88] sm:$0xff] %v184_v17  ;;  %v188_v19 = vld [vmem:[%s1121_s25 + $0x118] sm:$0xff]  ;;  %v190_v20 = vld [vmem:[%s1121_s25 + $0x120] sm:$0xff] }
  0x1b   : > { %187 = vst [vmem:[%s1126_s26 + $0x90] sm:$0xff] %v186_v18  ;;  %189 = vst [vmem:[%s1126_s26 + $0x98] sm:$0xff] %v188_v19  ;;  %v192_v21 = vld [vmem:[%s1121_s25 + $0x128] sm:$0xff]  ;;  %v194_v22 = vld [vmem:[%s1121_s25 + $0x130] sm:$0xff] }
  0x1c   : > { %191 = vst [vmem:[%s1126_s26 + $0xa0] sm:$0xff] %v190_v20  ;;  %v196_v23 = vld [vmem:[%s1121_s25 + $0x138] sm:$0xff]  ;;  %193 = vst [vmem:[%s1126_s26 + $0xa8] sm:$0xff] %v192_v21  ;;  %v198_v24 = vld [vmem:[%s1121_s25 + $0x140] sm:$0xff] }
  0x1d   : > { %195 = vst [vmem:[%s1126_s26 + $0xb0] sm:$0xff] %v194_v22  ;;  %197 = vst [vmem:[%s1126_s26 + $0xb8] sm:$0xff] %v196_v23  ;;  %v200_v25 = vld [vmem:[%s1121_s25 + $0x148] sm:$0xff]  ;;  %v202_v26 = vld [vmem:[%s1121_s25 + $0x150] sm:$0xff] }
  0x1e   : > { %199 = vst [vmem:[%s1126_s26 + $0xc0] sm:$0xff] %v198_v24  ;;  %201 = vst [vmem:[%s1126_s26 + $0xc8] sm:$0xff] %v200_v25  ;;  %v204_v27 = vld [vmem:[%s1121_s25 + $0x158] sm:$0xff]  ;;  %v206_v28 = vld [vmem:[%s1121_s25 + $0x160] sm:$0xff] }
  0x1f   : > { %203 = vst [vmem:[%s1126_s26 + $0xd0] sm:$0xff] %v202_v26  ;;  %v208_v29 = vld [vmem:[%s1121_s25 + $0x168] sm:$0xff]  ;;  %205 = vst [vmem:[%s1126_s26 + $0xd8] sm:$0xff] %v204_v27  ;;  %v210_v30 = vld [vmem:[%s1121_s25 + $0x170] sm:$0xff] }
  0x20   : > { %207 = vst [vmem:[%s1126_s26 + $0xe0] sm:$0xff] %v206_v28  ;;  %209 = vst [vmem:[%s1126_s26 + $0xe8] sm:$0xff] %v208_v29  ;;  %v212_v31 = vld [vmem:[%s1121_s25 + $0x178] sm:$0xff] }
  0x21   : > { %211 = vst [vmem:[%s1126_s26 + $0xf0] sm:$0xff] %v210_v30  ;;  %213 = vst [vmem:[%s1126_s26 + $0xf8] sm:$0xff] %v212_v31 }
  0x22 PF: > { %p967_p5 = scmp.ge.s32.totalorder %s1063_s14, 1  ;;  %p218_p6 = scmp.lt.s32.totalorder %s1063_s14, 3 }
  0x24   : > { %p219_p7 = pnand %p967_p5, %p218_p6 }
  0x25   : > { %s225_s27 = sand.u32 (!%p219_p7), 1, %s1055_s12   ;;  %v288_v32 = vld [vmem:[%s1293_s2] sm:$0xff] (!%p219_p7)  ;;  %v1065_v33 = vmov (!%p219_p7), 0.0   ;;  %v1066_v34 = vmov (!%p219_p7), 0   ;;  %vm294_vm0 = vcmask (!%p219_p7), 130048   ;;  %s969_s7 = sshll.u32 (!%p219_p7), %s960_s15, 4 }
  0x26   : > { %222 = sbr.rel (%p219_p7) target bundleno = 279 (0x117), region = 51  ;;  %s968_s30 = sshll.u32 (!%p219_p7), %s225_s27, 8  ;;  %362 = vmatprep.mubr.f32.mxu0 (!%p219_p7), %v1065_v33  ;;  %433 = vmatprep.mubr.f32.mxu1 (!%p219_p7), %v1065_v33  ;;  %v1210_v46 = vld [vmem:[%s1291_s0] sm:$0xff] (!%p219_p7) }
  0x27   : > { %1040 = vset.pattern.permute.xlu0 (!%p219_p7), %v1066_v34  ;;  %s1197_s4 = scalar_lea.vmem (!%p219_p7), [#allocation2], %s968_s30  ;;  %p250_p8 = scmp.lt.s32.totalorder (!%p219_p7), %s969_s7, 31 }
  0x28   : > { %v257_v35 = vld [vmem:[%s1197_s4 + $0x8] sm:$0xff] (!%p219_p7)  ;;  %v259_v37 = vld [vmem:[%s1197_s4 + $0x18] sm:$0xff] (!%p219_p7)  ;;  %291 = vperm.xlu0 (!%p219_p7), %1040, %v288_v32   ;;  %v256_v40 = vld [vmem:[%s1197_s4] sm:$0xff] (!%p219_p7) }
  0x29   : > { %v273_v36 = vld [vmem:[%s1197_s4 + $0x88] sm:$0xff] (!%p219_p7)  ;;  %v275_v39 = vld [vmem:[%s1197_s4 + $0x98] sm:$0xff] (!%p219_p7)  ;;  %v272_v41 = vld [vmem:[%s1197_s4 + $0x80] sm:$0xff] (!%p219_p7) }
  0x2a   : > { %v982_v38 = vpack.c.bf16 (!%p219_p7), %v273_v36, %v257_v35  ;;  %v986_v42 = vpack.c.bf16 (!%p219_p7), %v275_v39, %v259_v37  ;;  %v984_v43 = vpack.c.bf16 (!%p219_p7), %v272_v41, %v256_v40  ;;  %v258_v44 = vld [vmem:[%s1197_s4 + $0x10] sm:$0xff] (!%p219_p7)  ;;  %v261_v47 = vld [vmem:[%s1197_s4 + $0x28] sm:$0xff] (!%p219_p7)  ;;  %v263_v50 = vld [vmem:[%s1197_s4 + $0x38] sm:$0xff] (!%p219_p7) }
  0x2b   : > { %v274_v45 = vld [vmem:[%s1197_s4 + $0x90] sm:$0xff] (!%p219_p7)  ;;  %v277_v49 = vld [vmem:[%s1197_s4 + $0xa8] sm:$0xff] (!%p219_p7)  ;;  %v279_v51 = vld [vmem:[%s1197_s4 + $0xb8] sm:$0xff] (!%p219_p7) }
  0x2c   : > { %983 = vmatprep.subr.bf16.mxu0 (!%p219_p7), %v982_v38  ;;  %v988_v48 = vpack.c.bf16 (!%p219_p7), %v274_v45, %v258_v44  ;;  %987 = vmatprep.subr.bf16.mxu1 (!%p219_p7), %v986_v42  ;;  %v990_v52 = vpack.c.bf16 (!%p219_p7), %v277_v49, %v261_v47  ;;  %v994_v53 = vpack.c.bf16 (!%p219_p7), %v279_v51, %v263_v50  ;;  %v260_v54 = vld [vmem:[%s1197_s4 + $0x20] sm:$0xff] (!%p219_p7)  ;;  %v262_v56 = vld [vmem:[%s1197_s4 + $0x30] sm:$0xff] (!%p219_p7)  ;;  %v265_v59 = vld [vmem:[%s1197_s4 + $0x48] sm:$0xff] (!%p219_p7) }
  0x2d   : > { %985 = vmatpush1.bf16.msra.mxu0 %v984_v43  ;;  %v276_v55 = vld [vmem:[%s1197_s4 + $0xa0] sm:$0xff]  ;;  %v278_v58 = vld [vmem:[%s1197_s4 + $0xb0] sm:$0xff]  ;;  %v281_v60 = vld [vmem:[%s1197_s4 + $0xc8] sm:$0xff]  ;;  %s1299_s7 = smov (!%p250_p8, %s969_s7), 31 }
  0x2e   : > { %989 = vmatpush1.bf16.msra.mxu1 %v988_v48  ;;  %v992_v57 = vpack.c.bf16 %v276_v55, %v260_v54  ;;  %991 = vmatprep.subr.bf16.mxu0 %v990_v52  ;;  %v996_v61 = vpack.c.bf16 %v278_v58, %v262_v56  ;;  %v998_v62 = vpack.c.bf16 %v281_v60, %v265_v59  ;;  %v267_v63 = vld [vmem:[%s1197_s4 + $0x58] sm:$0xff]  ;;  %v264_v1 = vld [vmem:[%s1197_s4 + $0x40] sm:$0xff]  ;;  %v266_v4 = vld [vmem:[%s1197_s4 + $0x50] sm:$0xff]  ;;  %s970_s8 = sshll.u32 %s1299_s7, 3 }
  0x2f   : > { %995 = vmatprep.subr.bf16.mxu1 %v994_v53  ;;  %v283_v0 = vld [vmem:[%s1197_s4 + $0xd8] sm:$0xff]  ;;  %v280_v3 = vld [vmem:[%s1197_s4 + $0xc0] sm:$0xff]  ;;  %v282_v5 = vld [vmem:[%s1197_s4 + $0xd0] sm:$0xff]  ;;  %s1263_s11 = scalar_lea.vmem %s1294_s3, %s970_s8 }
  0x30   : > { %971 = vmatmul.mubr.msk.f32.vlgmr.msra.gmra.mrb[0].mxu0 %vm294_vm0, %v1210_v46  ;;  %v1002_v2 = vpack.c.bf16 %v283_v0, %v267_v63  ;;  %v1000_v6 = vpack.c.bf16 %v280_v3, %v264_v1  ;;  %v269_v7 = vld [vmem:[%s1197_s4 + $0x68] sm:$0xff]  ;;  %v271_v9 = vld [vmem:[%s1197_s4 + $0x78] sm:$0xff]  ;;  %v1004_v10 = vpack.c.bf16 %v282_v5, %v266_v4  ;;  %v268_v12 = vld [vmem:[%s1197_s4 + $0x60] sm:$0xff] }
  0x31   : > { %972 = vmatmul.mubr.msk.f32.vlgmr.msra.gmra.mrb[0].mxu1 %vm294_vm0, %v1210_v46  ;;  %993 = vmatpush1.bf16.msra.mxu0 %v992_v57  ;;  %v285_v8 = vld [vmem:[%s1197_s4 + $0xe8] sm:$0xff]  ;;  %v287_v11 = vld [vmem:[%s1197_s4 + $0xf8] sm:$0xff]  ;;  %v284_v13 = vld [vmem:[%s1197_s4 + $0xe0] sm:$0xff] }
  0x32   : > { %997 = vmatpush1.bf16.msra.mxu1 %v996_v61  ;;  %504 = vmatprep.mubr.f32.mxu0 %v1065_v33  ;;  %v1006_v14 = vpack.c.bf16 %v285_v8, %v269_v7  ;;  %v270_v15 = vld [vmem:[%s1197_s4 + $0x70] sm:$0xff]  ;;  %v1010_v17 = vpack.c.bf16 %v287_v11, %v271_v9  ;;  %v1008_v18 = vpack.c.bf16 %v284_v13, %v268_v12 }
  0x33   : > { %575 = vmatprep.mubr.f32.mxu1 %v1065_v33  ;;  %999 = vmatprep.subr.bf16.mxu0 %v998_v62  ;;  %v286_v16 = vld [vmem:[%s1197_s4 + $0xf0] sm:$0xff] }
  0x34   : > { %973 = vmatmul.mubr.msk.f32.vlgmr.msra.gmra.mrb[2].mxu0 %vm294_vm0, %v1210_v46  ;;  %1003 = vmatprep.subr.bf16.mxu1 %v1002_v2  ;;  %v1012_v19 = vpack.c.bf16 %v286_v16, %v270_v15 }
  0x35   : > { %974 = vmatmul.mubr.msk.f32.vlgmr.msra.gmra.mrb[2].mxu1 %vm294_vm0, %v1210_v46  ;;  %1001 = vmatpush1.bf16.msra.mxu0 %v1000_v6 }
  0x36   : > { %1005 = vmatpush1.bf16.msra.mxu1 %v1004_v10  ;;  %646 = vmatprep.mubr.f32.mxu0 %v1065_v33 }
  0x37   : > { %717 = vmatprep.mubr.f32.mxu1 %v1065_v33  ;;  %1007 = vmatprep.subr.bf16.mxu0 %v1006_v14 }
  0x38   : > { %975 = vmatmul.mubr.msk.f32.vlgmr.msra.gmra.mrb[4].mxu0 %vm294_vm0, %v1210_v46  ;;  %1011 = vmatprep.subr.bf16.mxu1 %v1010_v17 }
  0x39   : > { %976 = vmatmul.mubr.msk.f32.vlgmr.msra.gmra.mrb[4].mxu1 %vm294_vm0, %v1210_v46  ;;  %1009 = vmatpush1.bf16.msra.mxu0 %v1008_v18 }
  0x3a   : > { %1013 = vmatpush1.bf16.msra.mxu1 %v1012_v19  ;;  %788 = vmatprep.mubr.f32.mxu0 %v1065_v33 }
  0x3b   : > { %859 = vmatprep.mubr.f32.mxu1 %v1065_v33 }
  0x3c   : > { %977 = vmatmul.mubr.msk.f32.vlgmr.msra.gmra.mrb[6].mxu0 %vm294_vm0, %v1210_v46 }
  0x3d   : > { %978 = vmatmul.mubr.msk.f32.vlgmr.msra.gmra.mrb[6].mxu1 %vm294_vm0, %v1210_v46 }
  0xa7   : > { %v292_v20 = vpop.permute.xlu0 %291 }
 0x103   : > { %v364_v21 = vpop.f32.mrb[0].mxu0 }
 0x104   : > { %v435_v22 = vpop.f32.mrb[0].mxu1  ;;  %v365_v23 = vadd.f32 %v364_v21, %v292_v20  ;;  %v366_v24 = vpop.f32.mrb[1].mxu0 }
 0x105   : > { %v436_v25 = vadd.f32 %v435_v22, %v292_v20  ;;  %v367_v26 = vadd.f32 %v366_v24, %v292_v20  ;;  %v437_v27 = vpop.f32.mrb[1].mxu1 }
 0x106   : > { %v866_v28 = vmax.f32 %v365_v23, 0.0  ;;  %v438_v29 = vadd.f32 %v437_v27, %v292_v20 }
 0x107   : > { %v868_v30 = vmax.f32 %v436_v25, 0.0  ;;  %v867_v31 = vmax.f32 %v367_v26, 0.0  ;;  %v506_v32 = vpop.f32.mrb[2].mxu0 }
 0x108   : > { %882 = vst [vmem:[%s1263_s11] sm:$0xff] %v866_v28  ;;  %v869_v33 = vmax.f32 %v438_v29, 0.0  ;;  %v507_v34 = vadd.f32 %v506_v32, %v292_v20  ;;  %v577_v35 = vpop.f32.mrb[2].mxu1  ;;  %v508_v36 = vpop.f32.mrb[3].mxu0 }
 0x109   : > { %884 = vst [vmem:[%s1263_s11 + $0x10] sm:$0xff] %v868_v30  ;;  %883 = vst [vmem:[%s1263_s11 + $0x8] sm:$0xff] %v867_v31  ;;  %v578_v37 = vadd.f32 %v577_v35, %v292_v20  ;;  %v509_v38 = vadd.f32 %v508_v36, %v292_v20  ;;  %v579_v39 = vpop.f32.mrb[3].mxu1 }
 0x10a   : > { %885 = vst [vmem:[%s1263_s11 + $0x18] sm:$0xff] %v869_v33  ;;  %v870_v40 = vmax.f32 %v507_v34, 0.0  ;;  %v580_v41 = vadd.f32 %v579_v39, %v292_v20 }
 0x10b   : > { %v872_v42 = vmax.f32 %v578_v37, 0.0  ;;  %v871_v43 = vmax.f32 %v509_v38, 0.0  ;;  %v648_v44 = vpop.f32.mrb[4].mxu0 }
 0x10c   : > { %886 = vst [vmem:[%s1263_s11 + $0x20] sm:$0xff] %v870_v40  ;;  %v873_v45 = vmax.f32 %v580_v41, 0.0  ;;  %v649_v46 = vadd.f32 %v648_v44, %v292_v20  ;;  %v719_v47 = vpop.f32.mrb[4].mxu1  ;;  %v650_v48 = vpop.f32.mrb[5].mxu0 }
 0x10d   : > { %888 = vst [vmem:[%s1263_s11 + $0x30] sm:$0xff] %v872_v42  ;;  %887 = vst [vmem:[%s1263_s11 + $0x28] sm:$0xff] %v871_v43  ;;  %v720_v49 = vadd.f32 %v719_v47, %v292_v20  ;;  %v651_v50 = vadd.f32 %v650_v48, %v292_v20  ;;  %v721_v51 = vpop.f32.mrb[5].mxu1 }
 0x10e   : > { %889 = vst [vmem:[%s1263_s11 + $0x38] sm:$0xff] %v873_v45  ;;  %v874_v52 = vmax.f32 %v649_v46, 0.0  ;;  %v722_v53 = vadd.f32 %v721_v51, %v292_v20 }
 0x10f   : > { %v876_v54 = vmax.f32 %v720_v49, 0.0  ;;  %v875_v55 = vmax.f32 %v651_v50, 0.0  ;;  %v790_v56 = vpop.f32.mrb[6].mxu0 }
 0x110   : > { %890 = vst [vmem:[%s1263_s11 + $0x40] sm:$0xff] %v874_v52  ;;  %v877_v57 = vmax.f32 %v722_v53, 0.0  ;;  %v791_v58 = vadd.f32 %v790_v56, %v292_v20  ;;  %v861_v59 = vpop.f32.mrb[6].mxu1  ;;  %v792_v60 = vpop.f32.mrb[7].mxu0 }
 0x111   : > { %892 = vst [vmem:[%s1263_s11 + $0x50] sm:$0xff] %v876_v54  ;;  %891 = vst [vmem:[%s1263_s11 + $0x48] sm:$0xff] %v875_v55  ;;  %v862_v61 = vadd.f32 %v861_v59, %v292_v20  ;;  %v793_v62 = vadd.f32 %v792_v60, %v292_v20  ;;  %v863_v63 = vpop.f32.mrb[7].mxu1 }
 0x112   : > { %893 = vst [vmem:[%s1263_s11 + $0x58] sm:$0xff] %v877_v57  ;;  %v878_v0 = vmax.f32 %v791_v58, 0.0  ;;  %v864_v1 = vadd.f32 %v863_v63, %v292_v20 }
 0x113   : > { %v880_v2 = vmax.f32 %v862_v61, 0.0  ;;  %v879_v3 = vmax.f32 %v793_v62, 0.0 }
 0x114   : > { %894 = vst [vmem:[%s1263_s11 + $0x60] sm:$0xff] %v878_v0  ;;  %v881_v4 = vmax.f32 %v864_v1, 0.0 }
 0x115   : > { %896 = vst [vmem:[%s1263_s11 + $0x70] sm:$0xff] %v880_v2  ;;  %895 = vst [vmem:[%s1263_s11 + $0x68] sm:$0xff] %v879_v3 }
 0x116   : > { %897 = vst [vmem:[%s1263_s11 + $0x78] sm:$0xff] %v881_v4 }
 0x117 PF: > { %p10_p9 = scmp.ge.s32.totalorder %s1104_s16, 4   ;;  %s1295_s12 = smov %s1059_s13 }
 0x118   : > { %s1296_s13 = smov %s1113_s19  ;;  %s1297_s14 = smov %s1104_s16 }
 0x119   :  { %12 = sbr.rel (!%p10_p9) target bundleno = 2 (0x2), region = 90 }

// kernel: vaegan_forward.26
= control target key start
LH: loop header
LB: loop body
LE: loop exit
PB: predicated region body
PF: predicated region fallthrough
CT: control target
= control target key end

     0   :  { %v584_v3 = vmov 0.0   ;;  %v585_v8 = vmov 0   ;;  %s1030_s1 = inlined_call_operand.vmem [shape: f32[128,1024], index: 1, kind: input, shape index: {}]   ;;  %s1031_s0 = inlined_call_operand.vmem [shape: f32[8,128], index: 0, kind: input, shape index: {}]   ;;  %s1032_s2 = inlined_call_operand.vmem [shape: f32[8,1], index: 2, kind: input, shape index: {}]   ;;  %s1033_s3 = inlined_call_operand.vmem [shape: f32[8,1024], index: 3, kind: output, shape index: {}]  }
   0x1   :  { %v16_v0 = vld [vmem:[%s1030_s1 + $0x8] sm:$0xff]  ;;  %v18_v2 = vld [vmem:[%s1030_s1 + $0x18] sm:$0xff]  ;;  %213 = vmatprep.mubr.f32.mxu0 %v584_v3  ;;  %284 = vmatprep.mubr.f32.mxu1 %v584_v3  ;;  %v15_v6 = vld [vmem:[%s1030_s1] sm:$0xff] }
   0x2   :  { %v24_v1 = vld [vmem:[%s1030_s1 + $0x48] sm:$0xff]  ;;  %v26_v5 = vld [vmem:[%s1030_s1 + $0x58] sm:$0xff]  ;;  %v23_v7 = vld [vmem:[%s1030_s1 + $0x40] sm:$0xff]  ;;  %583 = vset.pattern.permute.xlu0 %v585_v8 }
   0x3   :  { %v453_v4 = vpack.c.bf16 %v24_v1, %v16_v0  ;;  %v485_v9 = vpack.c.bf16 %v26_v5, %v18_v2  ;;  %v455_v10 = vpack.c.bf16 %v23_v7, %v15_v6  ;;  %v17_v11 = vld [vmem:[%s1030_s1 + $0x10] sm:$0xff]  ;;  %v32_v13 = vld [vmem:[%s1030_s1 + $0x88] sm:$0xff]  ;;  %v34_v16 = vld [vmem:[%s1030_s1 + $0x98] sm:$0xff] }
   0x4   :  { %v25_v12 = vld [vmem:[%s1030_s1 + $0x50] sm:$0xff]  ;;  %v40_v15 = vld [vmem:[%s1030_s1 + $0xc8] sm:$0xff]  ;;  %v42_v17 = vld [vmem:[%s1030_s1 + $0xd8] sm:$0xff] }
   0x5   :  { %454 = vmatprep.subr.bf16.mxu0 %v453_v4  ;;  %v487_v14 = vpack.c.bf16 %v25_v12, %v17_v11  ;;  %486 = vmatprep.subr.bf16.mxu1 %v485_v9  ;;  %v457_v18 = vpack.c.bf16 %v40_v15, %v32_v13  ;;  %v489_v19 = vpack.c.bf16 %v42_v17, %v34_v16  ;;  %v31_v20 = vld [vmem:[%s1030_s1 + $0x80] sm:$0xff]  ;;  %v33_v22 = vld [vmem:[%s1030_s1 + $0x90] sm:$0xff]  ;;  %v48_v25 = vld [vmem:[%s1030_s1 + $0x108] sm:$0xff] }
   0x6   :  { %456 = vmatpush1.bf16.msra.mxu0 %v455_v10  ;;  %v39_v21 = vld [vmem:[%s1030_s1 + $0xc0] sm:$0xff]  ;;  %v41_v24 = vld [vmem:[%s1030_s1 + $0xd0] sm:$0xff]  ;;  %v56_v26 = vld [vmem:[%s1030_s1 + $0x148] sm:$0xff] }
   0x7   :  { %488 = vmatpush1.bf16.msra.mxu1 %v487_v14  ;;  %v459_v23 = vpack.c.bf16 %v39_v21, %v31_v20  ;;  %458 = vmatprep.subr.bf16.mxu0 %v457_v18  ;;  %v491_v27 = vpack.c.bf16 %v41_v24, %v33_v22  ;;  %v461_v28 = vpack.c.bf16 %v56_v26, %v48_v25  ;;  %v50_v29 = vld [vmem:[%s1030_s1 + $0x118] sm:$0xff]  ;;  %v47_v31 = vld [vmem:[%s1030_s1 + $0x100] sm:$0xff]  ;;  %v49_v34 = vld [vmem:[%s1030_s1 + $0x110] sm:$0xff] }
   0x8   :  { %490 = vmatprep.subr.bf16.mxu1 %v489_v19  ;;  %v58_v30 = vld [vmem:[%s1030_s1 + $0x158] sm:$0xff]  ;;  %v55_v33 = vld [vmem:[%s1030_s1 + $0x140] sm:$0xff]  ;;  %v57_v35 = vld [vmem:[%s1030_s1 + $0x150] sm:$0xff] }
   0x9   :  { %v493_v32 = vpack.c.bf16 %v58_v30, %v50_v29  ;;  %v463_v36 = vpack.c.bf16 %v55_v33, %v47_v31  ;;  %v64_v37 = vld [vmem:[%s1030_s1 + $0x188] sm:$0xff]  ;;  %v66_v39 = vld [vmem:[%s1030_s1 + $0x198] sm:$0xff]  ;;  %v495_v40 = vpack.c.bf16 %v57_v35, %v49_v34  ;;  %v63_v43 = vld [vmem:[%s1030_s1 + $0x180] sm:$0xff] }
   0xa   :  { %460 = vmatpush1.bf16.msra.mxu0 %v459_v23  ;;  %v72_v38 = vld [vmem:[%s1030_s1 + $0x1c8] sm:$0xff]  ;;  %v74_v42 = vld [vmem:[%s1030_s1 + $0x1d8] sm:$0xff]  ;;  %v71_v44 = vld [vmem:[%s1030_s1 + $0x1c0] sm:$0xff] }
   0xb   :  { %492 = vmatpush1.bf16.msra.mxu1 %v491_v27  ;;  %462 = vmatprep.subr.bf16.mxu0 %v461_v28  ;;  %v465_v41 = vpack.c.bf16 %v72_v38, %v64_v37  ;;  %v497_v45 = vpack.c.bf16 %v74_v42, %v66_v39  ;;  %v65_v46 = vld [vmem:[%s1030_s1 + $0x190] sm:$0xff]  ;;  %v80_v48 = vld [vmem:[%s1030_s1 + $0x208] sm:$0xff]  ;;  %v82_v50 = vld [vmem:[%s1030_s1 + $0x218] sm:$0xff]  ;;  %v467_v52 = vpack.c.bf16 %v71_v44, %v63_v43 }
   0xc   :  { %494 = vmatprep.subr.bf16.mxu1 %v493_v32  ;;  %v73_v47 = vld [vmem:[%s1030_s1 + $0x1d0] sm:$0xff]  ;;  %v88_v49 = vld [vmem:[%s1030_s1 + $0x248] sm:$0xff]  ;;  %v90_v51 = vld [vmem:[%s1030_s1 + $0x258] sm:$0xff] }
   0xd   :  { %v499_v53 = vpack.c.bf16 %v73_v47, %v65_v46  ;;  %v469_v54 = vpack.c.bf16 %v88_v49, %v80_v48  ;;  %v79_v55 = vld [vmem:[%s1030_s1 + $0x200] sm:$0xff]  ;;  %v81_v57 = vld [vmem:[%s1030_s1 + $0x210] sm:$0xff]  ;;  %v501_v58 = vpack.c.bf16 %v90_v51, %v82_v50  ;;  %v96_v60 = vld [vmem:[%s1030_s1 + $0x288] sm:$0xff] }
   0xe   :  { %464 = vmatpush1.bf16.msra.mxu0 %v463_v36  ;;  %v87_v56 = vld [vmem:[%s1030_s1 + $0x240] sm:$0xff]  ;;  %v89_v59 = vld [vmem:[%s1030_s1 + $0x250] sm:$0xff]  ;;  %v104_v61 = vld [vmem:[%s1030_s1 + $0x2c8] sm:$0xff] }
   0xf   :  { %496 = vmatpush1.bf16.msra.mxu1 %v495_v40  ;;  %466 = vmatprep.subr.bf16.mxu0 %v465_v41  ;;  %v98_v62 = vld [vmem:[%s1030_s1 + $0x298] sm:$0xff]  ;;  %v471_v0 = vpack.c.bf16 %v87_v56, %v79_v55  ;;  %v503_v1 = vpack.c.bf16 %v89_v59, %v81_v57  ;;  %v473_v2 = vpack.c.bf16 %v104_v61, %v96_v60  ;;  %v95_v4 = vld [vmem:[%s1030_s1 + $0x280] sm:$0xff]  ;;  %v97_v6 = vld [vmem:[%s1030_s1 + $0x290] sm:$0xff] }
  0x10   :  { %498 = vmatprep.subr.bf16.mxu1 %v497_v45  ;;  %v106_v63 = vld [vmem:[%s1030_s1 + $0x2d8] sm:$0xff]  ;;  %v103_v5 = vld [vmem:[%s1030_s1 + $0x2c0] sm:$0xff]  ;;  %v105_v8 = vld [vmem:[%s1030_s1 + $0x2d0] sm:$0xff] }
  0x11   :  { %v505_v7 = vpack.c.bf16 %v106_v63, %v98_v62  ;;  %v112_v9 = vld [vmem:[%s1030_s1 + $0x308] sm:$0xff]  ;;  %v114_v11 = vld [vmem:[%s1030_s1 + $0x318] sm:$0xff]  ;;  %v475_v13 = vpack.c.bf16 %v103_v5, %v95_v4  ;;  %v507_v14 = vpack.c.bf16 %v105_v8, %v97_v6  ;;  %v111_v16 = vld [vmem:[%s1030_s1 + $0x300] sm:$0xff] }
  0x12   :  { %468 = vmatpush1.bf16.msra.mxu0 %v467_v52  ;;  %v120_v10 = vld [vmem:[%s1030_s1 + $0x348] sm:$0xff]  ;;  %v122_v12 = vld [vmem:[%s1030_s1 + $0x358] sm:$0xff]  ;;  %v119_v17 = vld [vmem:[%s1030_s1 + $0x340] sm:$0xff] }
  0x13   :  { %500 = vmatpush1.bf16.msra.mxu1 %v499_v53  ;;  %470 = vmatprep.subr.bf16.mxu0 %v469_v54  ;;  %v477_v15 = vpack.c.bf16 %v120_v10, %v112_v9  ;;  %v113_v18 = vld [vmem:[%s1030_s1 + $0x310] sm:$0xff]  ;;  %v509_v19 = vpack.c.bf16 %v122_v12, %v114_v11  ;;  %v128_v21 = vld [vmem:[%s1030_s1 + $0x388] sm:$0xff]  ;;  %v130_v23 = vld [vmem:[%s1030_s1 + $0x398] sm:$0xff]  ;;  %v479_v25 = vpack.c.bf16 %v119_v17, %v111_v16 }
  0x14   :  { %502 = vmatprep.subr.bf16.mxu1 %v501_v58  ;;  %v121_v20 = vld [vmem:[%s1030_s1 + $0x350] sm:$0xff]  ;;  %v136_v22 = vld [vmem:[%s1030_s1 + $0x3c8] sm:$0xff]  ;;  %v138_v24 = vld [vmem:[%s1030_s1 + $0x3d8] sm:$0xff] }
  0x15   :  { %v511_v26 = vpack.c.bf16 %v121_v20, %v113_v18  ;;  %v481_v27 = vpack.c.bf16 %v136_v22, %v128_v21  ;;  %v127_v28 = vld [vmem:[%s1030_s1 + $0x380] sm:$0xff]  ;;  %v129_v30 = vld [vmem:[%s1030_s1 + $0x390] sm:$0xff]  ;;  %v513_v31 = vpack.c.bf16 %v138_v24, %v130_v23  ;;  %v20_v33 = vld [vmem:[%s1030_s1 + $0x28] sm:$0xff] }
  0x16   :  { %472 = vmatpush1.bf16.msra.mxu0 %v471_v0  ;;  %v135_v29 = vld [vmem:[%s1030_s1 + $0x3c0] sm:$0xff]  ;;  %v137_v32 = vld [vmem:[%s1030_s1 + $0x3d0] sm:$0xff]  ;;  %v28_v34 = vld [vmem:[%s1030_s1 + $0x68] sm:$0xff] }
  0x17   :  { %504 = vmatpush1.bf16.msra.mxu1 %v503_v1  ;;  %474 = vmatprep.subr.bf16.mxu0 %v473_v2  ;;  %v22_v35 = vld [vmem:[%s1030_s1 + $0x38] sm:$0xff]  ;;  %v483_v37 = vpack.c.bf16 %v135_v29, %v127_v28  ;;  %v515_v38 = vpack.c.bf16 %v137_v32, %v129_v30  ;;  %v517_v39 = vpack.c.bf16 %v28_v34, %v20_v33  ;;  %v19_v40 = vld [vmem:[%s1030_s1 + $0x20] sm:$0xff]  ;;  %v21_v42 = vld [vmem:[%s1030_s1 + $0x30] sm:$0xff] }
  0x18   :  { %506 = vmatprep.subr.bf16.mxu1 %v505_v7  ;;  %v30_v36 = vld [vmem:[%s1030_s1 + $0x78] sm:$0xff]  ;;  %v27_v41 = vld [vmem:[%s1030_s1 + $0x60] sm:$0xff]  ;;  %v29_v44 = vld [vmem:[%s1030_s1 + $0x70] sm:$0xff] }
  0x19   :  { %v549_v43 = vpack.c.bf16 %v30_v36, %v22_v35  ;;  %v36_v45 = vld [vmem:[%s1030_s1 + $0xa8] sm:$0xff]  ;;  %v38_v47 = vld [vmem:[%s1030_s1 + $0xb8] sm:$0xff]  ;;  %v839_v49 = vld [vmem:[%s1031_s0] sm:$0xff]  ;;  %v519_v50 = vpack.c.bf16 %v27_v41, %v19_v40  ;;  %v551_v51 = vpack.c.bf16 %v29_v44, %v21_v42 }
  0x1a   :  { %476 = vmatpush1.bf16.msra.mxu0 %v475_v13  ;;  %v44_v46 = vld [vmem:[%s1030_s1 + $0xe8] sm:$0xff]  ;;  %v46_v48 = vld [vmem:[%s1030_s1 + $0xf8] sm:$0xff]  ;;  %v35_v53 = vld [vmem:[%s1030_s1 + $0xa0] sm:$0xff] }
  0x1b   :  { %508 = vmatpush1.bf16.msra.mxu1 %v507_v14  ;;  %478 = vmatprep.subr.bf16.mxu0 %v477_v15  ;;  %v521_v52 = vpack.c.bf16 %v44_v46, %v36_v45  ;;  %v43_v54 = vld [vmem:[%s1030_s1 + $0xe0] sm:$0xff]  ;;  %v37_v55 = vld [vmem:[%s1030_s1 + $0xb0] sm:$0xff]  ;;  %v553_v56 = vpack.c.bf16 %v46_v48, %v38_v47  ;;  %v52_v58 = vld [vmem:[%s1030_s1 + $0x128] sm:$0xff] }
  0x1c   :  { %510 = vmatprep.subr.bf16.mxu1 %v509_v19  ;;  %v45_v57 = vld [vmem:[%s1030_s1 + $0xf0] sm:$0xff]  ;;  %v60_v59 = vld [vmem:[%s1030_s1 + $0x168] sm:$0xff]  ;;  %v54_v60 = vld [vmem:[%s1030_s1 + $0x138] sm:$0xff]  ;;  %v523_v62 = vpack.c.bf16 %v43_v54, %v35_v53 }
  0x1d   :  { %v62_v61 = vld [vmem:[%s1030_s1 + $0x178] sm:$0xff]  ;;  %v555_v63 = vpack.c.bf16 %v45_v57, %v37_v55  ;;  %v525_v0 = vpack.c.bf16 %v60_v59, %v52_v58  ;;  %v51_v1 = vld [vmem:[%s1030_s1 + $0x120] sm:$0xff]  ;;  %v53_v4 = vld [vmem:[%s1030_s1 + $0x130] sm:$0xff] }
  0x1e   :  { %480 = vmatpush1.bf16.msra.mxu0 %v479_v25  ;;  %v59_v2 = vld [vmem:[%s1030_s1 + $0x160] sm:$0xff]  ;;  %v557_v5 = vpack.c.bf16 %v62_v61, %v54_v60  ;;  %v61_v6 = vld [vmem:[%s1030_s1 + $0x170] sm:$0xff]  ;;  %v68_v7 = vld [vmem:[%s1030_s1 + $0x1a8] sm:$0xff] }
  0x1f   :  { %512 = vmatpush1.bf16.msra.mxu1 %v511_v26  ;;  %482 = vmatprep.subr.bf16.mxu0 %v481_v27  ;;  %v76_v8 = vld [vmem:[%s1030_s1 + $0x1e8] sm:$0xff]  ;;  %v70_v9 = vld [vmem:[%s1030_s1 + $0x1b8] sm:$0xff]  ;;  %v527_v11 = vpack.c.bf16 %v59_v2, %v51_v1  ;;  %v559_v12 = vpack.c.bf16 %v61_v6, %v53_v4  ;;  %v67_v14 = vld [vmem:[%s1030_s1 + $0x1a0] sm:$0xff] }
  0x20   :  { %514 = vmatprep.subr.bf16.mxu1 %v513_v31  ;;  %v78_v10 = vld [vmem:[%s1030_s1 + $0x1f8] sm:$0xff]  ;;  %v529_v13 = vpack.c.bf16 %v76_v8, %v68_v7  ;;  %v75_v15 = vld [vmem:[%s1030_s1 + $0x1e0] sm:$0xff]  ;;  %v69_v16 = vld [vmem:[%s1030_s1 + $0x1b0] sm:$0xff] }
  0x21   :  { %v77_v17 = vld [vmem:[%s1030_s1 + $0x1f0] sm:$0xff]  ;;  %v84_v18 = vld [vmem:[%s1030_s1 + $0x228] sm:$0xff]  ;;  %v86_v20 = vld [vmem:[%s1030_s1 + $0x238] sm:$0xff]  ;;  %v531_v23 = vpack.c.bf16 %v75_v15, %v67_v14 }
  0x22   :  { %484 = vmatpush1.bf16.msra.mxu0 %v483_v37  ;;  %v92_v19 = vld [vmem:[%s1030_s1 + $0x268] sm:$0xff]  ;;  %v94_v21 = vld [vmem:[%s1030_s1 + $0x278] sm:$0xff]  ;;  %v143_v22 = vld [vmem:[%s1032_s2] sm:$0xff]  ;;  %v563_v24 = vpack.c.bf16 %v77_v17, %v69_v16 }
  0x23   :  { %516 = vmatpush1.bf16.msra.mxu1 %v515_v38  ;;  %518 = vmatprep.subr.bf16.mxu0 %v517_v39  ;;  %v533_v25 = vpack.c.bf16 %v92_v19, %v84_v18  ;;  %v83_v26 = vld [vmem:[%s1030_s1 + $0x220] sm:$0xff]  ;;  %v85_v28 = vld [vmem:[%s1030_s1 + $0x230] sm:$0xff]  ;;  %v565_v29 = vpack.c.bf16 %v94_v21, %v86_v20  ;;  %v100_v31 = vld [vmem:[%s1030_s1 + $0x2a8] sm:$0xff] }
  0x24   :  { %550 = vmatprep.subr.bf16.mxu1 %v549_v43  ;;  %146 = vperm.xlu0 %583, %v143_v22   ;;  %v91_v27 = vld [vmem:[%s1030_s1 + $0x260] sm:$0xff]  ;;  %v93_v30 = vld [vmem:[%s1030_s1 + $0x270] sm:$0xff]  ;;  %v108_v32 = vld [vmem:[%s1030_s1 + $0x2e8] sm:$0xff] }
  0x25   :  { %214 = vmatmul.mubr.f32.vlgmr.msra.gmra.mrb[0].mxu0 %v839_v49  ;;  %v102_v33 = vld [vmem:[%s1030_s1 + $0x2b8] sm:$0xff]  ;;  %v535_v35 = vpack.c.bf16 %v91_v27, %v83_v26  ;;  %v567_v36 = vpack.c.bf16 %v93_v30, %v85_v28  ;;  %v537_v37 = vpack.c.bf16 %v108_v32, %v100_v31  ;;  %v99_v38 = vld [vmem:[%s1030_s1 + $0x2a0] sm:$0xff]  ;;  %v101_v40 = vld [vmem:[%s1030_s1 + $0x2b0] sm:$0xff] }
  0x26   :  { %285 = vmatmul.mubr.f32.vlgmr.msra.gmra.mrb[0].mxu1 %v839_v49  ;;  %520 = vmatpush1.bf16.msra.mxu0 %v519_v50  ;;  %v110_v34 = vld [vmem:[%s1030_s1 + $0x2f8] sm:$0xff]  ;;  %v107_v39 = vld [vmem:[%s1030_s1 + $0x2e0] sm:$0xff]  ;;  %v109_v42 = vld [vmem:[%s1030_s1 + $0x2f0] sm:$0xff] }
  0x27   :  { %552 = vmatpush1.bf16.msra.mxu1 %v551_v51  ;;  %522 = vmatprep.subr.bf16.mxu0 %v521_v52  ;;  %v569_v41 = vpack.c.bf16 %v110_v34, %v102_v33  ;;  %v116_v43 = vld [vmem:[%s1030_s1 + $0x328] sm:$0xff]  ;;  %v118_v45 = vld [vmem:[%s1030_s1 + $0x338] sm:$0xff]  ;;  %v539_v47 = vpack.c.bf16 %v107_v39, %v99_v38  ;;  %v571_v48 = vpack.c.bf16 %v109_v42, %v101_v40  ;;  %v115_v51 = vld [vmem:[%s1030_s1 + $0x320] sm:$0xff] }
  0x28   :  { %554 = vmatprep.subr.bf16.mxu1 %v553_v56  ;;  %355 = vmatprep.mubr.f32.mxu0 %v584_v3  ;;  %v124_v44 = vld [vmem:[%s1030_s1 + $0x368] sm:$0xff]  ;;  %v126_v46 = vld [vmem:[%s1030_s1 + $0x378] sm:$0xff]  ;;  %v123_v52 = vld [vmem:[%s1030_s1 + $0x360] sm:$0xff] }
  0x29   :  { %426 = vmatprep.mubr.f32.mxu1 %v584_v3  ;;  %v561_v3 = vpack.c.bf16 %v78_v10, %v70_v9  ;;  %v541_v50 = vpack.c.bf16 %v124_v44, %v116_v43  ;;  %v117_v53 = vld [vmem:[%s1030_s1 + $0x330] sm:$0xff]  ;;  %v573_v54 = vpack.c.bf16 %v126_v46, %v118_v45  ;;  %v132_v56 = vld [vmem:[%s1030_s1 + $0x3a8] sm:$0xff]  ;;  %v134_v58 = vld [vmem:[%s1030_s1 + $0x3b8] sm:$0xff]  ;;  %v543_v60 = vpack.c.bf16 %v123_v52, %v115_v51 }
  0x2a   :  { %524 = vmatpush1.bf16.msra.mxu0 %v523_v62  ;;  %v125_v55 = vld [vmem:[%s1030_s1 + $0x370] sm:$0xff]  ;;  %v140_v57 = vld [vmem:[%s1030_s1 + $0x3e8] sm:$0xff]  ;;  %v142_v59 = vld [vmem:[%s1030_s1 + $0x3f8] sm:$0xff] }
  0x2b   :  { %556 = vmatpush1.bf16.msra.mxu1 %v555_v63  ;;  %526 = vmatprep.subr.bf16.mxu0 %v525_v0  ;;  %v575_v61 = vpack.c.bf16 %v125_v55, %v117_v53  ;;  %v545_v62 = vpack.c.bf16 %v140_v57, %v132_v56  ;;  %v131_v63 = vld [vmem:[%s1030_s1 + $0x3a0] sm:$0xff]  ;;  %v577_v1 = vpack.c.bf16 %v142_v59, %v134_v58  ;;  %v133_v2 = vld [vmem:[%s1030_s1 + $0x3b0] sm:$0xff] }
  0x2c   :  { %558 = vmatprep.subr.bf16.mxu1 %v557_v5  ;;  %v139_v0 = vld [vmem:[%s1030_s1 + $0x3e0] sm:$0xff]  ;;  %v141_v4 = vld [vmem:[%s1030_s1 + $0x3f0] sm:$0xff] }
  0x2d   :  { %v547_v5 = vpack.c.bf16 %v139_v0, %v131_v63  ;;  %v579_v6 = vpack.c.bf16 %v141_v4, %v133_v2 }
  0x2e   :  { %528 = vmatpush1.bf16.msra.mxu0 %v527_v11 }
  0x2f   :  { %560 = vmatpush1.bf16.msra.mxu1 %v559_v12  ;;  %530 = vmatprep.subr.bf16.mxu0 %v529_v13 }
  0x30   :  { %562 = vmatprep.subr.bf16.mxu1 %v561_v3 }
  0x32   :  { %532 = vmatpush1.bf16.msra.mxu0 %v531_v23 }
  0x33   :  { %564 = vmatpush1.bf16.msra.mxu1 %v563_v24  ;;  %534 = vmatprep.subr.bf16.mxu0 %v533_v25 }
  0x34   :  { %566 = vmatprep.subr.bf16.mxu1 %v565_v29 }
  0x36   :  { %536 = vmatpush1.bf16.msra.mxu0 %v535_v35 }
  0x37   :  { %568 = vmatpush1.bf16.msra.mxu1 %v567_v36  ;;  %538 = vmatprep.subr.bf16.mxu0 %v537_v37 }
  0x38   :  { %570 = vmatprep.subr.bf16.mxu1 %v569_v41 }
  0x3a   :  { %540 = vmatpush1.bf16.msra.mxu0 %v539_v47 }
  0x3b   :  { %572 = vmatpush1.bf16.msra.mxu1 %v571_v48  ;;  %542 = vmatprep.subr.bf16.mxu0 %v541_v50 }
  0x3c   :  { %574 = vmatprep.subr.bf16.mxu1 %v573_v54 }
  0x3e   :  { %544 = vmatpush1.bf16.msra.mxu0 %v543_v60 }
  0x3f   :  { %576 = vmatpush1.bf16.msra.mxu1 %v575_v61  ;;  %546 = vmatprep.subr.bf16.mxu0 %v545_v62 }
  0x40   :  { %578 = vmatprep.subr.bf16.mxu1 %v577_v1 }
  0x42   :  { %548 = vmatpush1.bf16.msra.mxu0 %v547_v5 }
  0x43   :  { %580 = vmatpush1.bf16.msra.mxu1 %v579_v6 }
  0x45   :  { %356 = vmatmul.mubr.f32.vlgmr.msra.gmra.mrb[2].mxu0 %v839_v49 }
  0x46   :  { %427 = vmatmul.mubr.f32.vlgmr.msra.gmra.mrb[2].mxu1 %v839_v49 }
  0xa3   :  { %v147_v7 = vpop.permute.xlu0 %146 }
  0xf8   :  { %v215_v8 = vpop.f32.mrb[0].mxu0 }
  0xf9   :  { %v286_v9 = vpop.f32.mrb[0].mxu1  ;;  %v216_v10 = vadd.f32 %v215_v8, %v147_v7  ;;  %v217_v11 = vpop.f32.mrb[1].mxu0 }
  0xfa   :  { %v287_v12 = vadd.f32 %v286_v9, %v147_v7  ;;  %v218_v13 = vadd.f32 %v217_v11, %v147_v7  ;;  %v288_v14 = vpop.f32.mrb[1].mxu1 }
  0xfb   :  { %v433_v15 = vmax.f32 %v216_v10, 0.0  ;;  %v289_v16 = vadd.f32 %v288_v14, %v147_v7 }
  0xfc   :  { %v435_v3 = vmax.f32 %v287_v12, 0.0  ;;  %v434_v17 = vmax.f32 %v218_v13, 0.0 }
  0xfd   :  { %441 = vst [vmem:[%s1033_s3] sm:$0xff] %v433_v15  ;;  %v436_v18 = vmax.f32 %v289_v16, 0.0 }
  0xfe   :  { %443 = vst [vmem:[%s1033_s3 + $0x10] sm:$0xff] %v435_v3  ;;  %442 = vst [vmem:[%s1033_s3 + $0x8] sm:$0xff] %v434_v17 }
  0xff   :  { %444 = vst [vmem:[%s1033_s3 + $0x18] sm:$0xff] %v436_v18 }
 0x118   :  { %v357_v49 = vpop.f32.mrb[2].mxu0 }
 0x119   :  { %v358_v19 = vadd.f32 %v357_v49, %v147_v7  ;;  %v428_v20 = vpop.f32.mrb[2].mxu1  ;;  %v359_v21 = vpop.f32.mrb[3].mxu0 }
 0x11a   :  { %v429_v22 = vadd.f32 %v428_v20, %v147_v7  ;;  %v360_v23 = vadd.f32 %v359_v21, %v147_v7  ;;  %v430_v24 = vpop.f32.mrb[3].mxu1 }
 0x11b   :  { %v437_v25 = vmax.f32 %v358_v19, 0.0  ;;  %v431_v26 = vadd.f32 %v430_v24, %v147_v7 }
 0x11c   :  { %v439_v27 = vmax.f32 %v429_v22, 0.0  ;;  %v438_v28 = vmax.f32 %v360_v23, 0.0 }
 0x11d   :  { %445 = vst [vmem:[%s1033_s3 + $0x20] sm:$0xff] %v437_v25  ;;  %v440_v29 = vmax.f32 %v431_v26, 0.0 }
 0x11e   :  { %447 = vst [vmem:[%s1033_s3 + $0x30] sm:$0xff] %v439_v27  ;;  %446 = vst [vmem:[%s1033_s3 + $0x28] sm:$0xff] %v438_v28 }
 0x11f   :  { %448 = vst [vmem:[%s1033_s3 + $0x38] sm:$0xff] %v440_v29 }

// kernel: vaegan_forward.27
= control target key start
LH: loop header
LB: loop body
LE: loop exit
PB: predicated region body
PF: predicated region fallthrough
CT: control target
= control target key end

     0   :  { %v167_v3 = vmov 0.0   ;;  %v168_v4 = vmov 0   ;;  %s297_s1 = inlined_call_operand.vmem [shape: f32[128,256], index: 1, kind: input, shape index: {}]   ;;  %s298_s2 = inlined_call_operand.vmem [shape: f32[8,1], index: 2, kind: input, shape index: {}]   ;;  %s299_s0 = inlined_call_operand.vmem [shape: f32[8,128], index: 0, kind: input, shape index: {}]   ;;  %s300_s3 = inlined_call_operand.vmem [shape: f32[8,256], index: 3, kind: output, shape index: {}]  }
   0x1   :  { %v16_v0 = vld [vmem:[%s297_s1 + $0x8] sm:$0xff]  ;;  %v18_v1 = vld [vmem:[%s297_s1 + $0x18] sm:$0xff]  ;;  %v15_v2 = vld [vmem:[%s297_s1] sm:$0xff]  ;;  %117 = vmatprep.mubr.f32.mxu0 %v167_v3  ;;  %166 = vset.pattern.permute.xlu0 %v168_v4 }
   0x2   :  { %v132_v5 = vpack.c.bf16 %v18_v1, %v16_v0  ;;  %v17_v6 = vld [vmem:[%s297_s1 + $0x10] sm:$0xff]  ;;  %v20_v7 = vld [vmem:[%s297_s1 + $0x28] sm:$0xff]  ;;  %v22_v8 = vld [vmem:[%s297_s1 + $0x38] sm:$0xff] }
   0x3   :  { %v134_v9 = vpack.c.bf16 %v17_v6, %v15_v2  ;;  %v136_v10 = vpack.c.bf16 %v22_v8, %v20_v7  ;;  %v19_v11 = vld [vmem:[%s297_s1 + $0x20] sm:$0xff]  ;;  %v21_v12 = vld [vmem:[%s297_s1 + $0x30] sm:$0xff]  ;;  %v24_v13 = vld [vmem:[%s297_s1 + $0x48] sm:$0xff] }
   0x4   :  { %133 = vmatprep.subr.bf16.mxu0 %v132_v5  ;;  %v26_v14 = vld [vmem:[%s297_s1 + $0x58] sm:$0xff]  ;;  %v138_v15 = vpack.c.bf16 %v21_v12, %v19_v11  ;;  %v23_v17 = vld [vmem:[%s297_s1 + $0x40] sm:$0xff]  ;;  %v25_v18 = vld [vmem:[%s297_s1 + $0x50] sm:$0xff] }
   0x5   :  { %135 = vmatpush1.bf16.msra.mxu0 %v134_v9  ;;  %v140_v16 = vpack.c.bf16 %v26_v14, %v24_v13  ;;  %v28_v19 = vld [vmem:[%s297_s1 + $0x68] sm:$0xff]  ;;  %v30_v20 = vld [vmem:[%s297_s1 + $0x78] sm:$0xff]  ;;  %v142_v21 = vpack.c.bf16 %v25_v18, %v23_v17  ;;  %v27_v23 = vld [vmem:[%s297_s1 + $0x60] sm:$0xff] }
   0x6   :  { %137 = vmatprep.subr.bf16.mxu0 %v136_v10  ;;  %v144_v22 = vpack.c.bf16 %v30_v20, %v28_v19  ;;  %v29_v24 = vld [vmem:[%s297_s1 + $0x70] sm:$0xff]  ;;  %v32_v25 = vld [vmem:[%s297_s1 + $0x88] sm:$0xff]  ;;  %v34_v26 = vld [vmem:[%s297_s1 + $0x98] sm:$0xff] }
   0x7   :  { %v47_v27 = vld [vmem:[%s298_s2] sm:$0xff]  ;;  %v146_v28 = vpack.c.bf16 %v29_v24, %v27_v23  ;;  %v148_v29 = vpack.c.bf16 %v34_v26, %v32_v25  ;;  %v33_v31 = vld [vmem:[%s297_s1 + $0x90] sm:$0xff]  ;;  %v36_v32 = vld [vmem:[%s297_s1 + $0xa8] sm:$0xff] }
   0x8   :  { %50 = vperm.xlu0 %166, %v47_v27   ;;  %v31_v30 = vld [vmem:[%s297_s1 + $0x80] sm:$0xff]  ;;  %v38_v33 = vld [vmem:[%s297_s1 + $0xb8] sm:$0xff]  ;;  %v37_v37 = vld [vmem:[%s297_s1 + $0xb0] sm:$0xff] }
   0x9   :  { %139 = vmatpush1.bf16.msra.mxu0 %v138_v15  ;;  %v150_v34 = vpack.c.bf16 %v33_v31, %v31_v30  ;;  %v152_v35 = vpack.c.bf16 %v38_v33, %v36_v32  ;;  %v35_v36 = vld [vmem:[%s297_s1 + $0xa0] sm:$0xff]  ;;  %v40_v38 = vld [vmem:[%s297_s1 + $0xc8] sm:$0xff]  ;;  %v42_v39 = vld [vmem:[%s297_s1 + $0xd8] sm:$0xff] }
   0xa   :  { %141 = vmatprep.subr.bf16.mxu0 %v140_v16  ;;  %v154_v40 = vpack.c.bf16 %v37_v37, %v35_v36  ;;  %v156_v41 = vpack.c.bf16 %v42_v39, %v40_v38  ;;  %v39_v42 = vld [vmem:[%s297_s1 + $0xc0] sm:$0xff]  ;;  %v41_v43 = vld [vmem:[%s297_s1 + $0xd0] sm:$0xff]  ;;  %v44_v44 = vld [vmem:[%s297_s1 + $0xe8] sm:$0xff] }
   0xb   :  { %v46_v45 = vld [vmem:[%s297_s1 + $0xf8] sm:$0xff]  ;;  %v158_v46 = vpack.c.bf16 %v41_v43, %v39_v42  ;;  %v43_v48 = vld [vmem:[%s297_s1 + $0xe0] sm:$0xff]  ;;  %v45_v49 = vld [vmem:[%s297_s1 + $0xf0] sm:$0xff] }
   0xc   :  { %v160_v47 = vpack.c.bf16 %v46_v45, %v44_v44  ;;  %v162_v50 = vpack.c.bf16 %v45_v49, %v43_v48  ;;  %v14_v51 = vld [vmem:[%s299_s0] sm:$0xff] }
   0xd   :  { %143 = vmatpush1.bf16.msra.mxu0 %v142_v21 }
   0xe   :  { %145 = vmatprep.subr.bf16.mxu0 %v144_v22 }
  0x11   :  { %147 = vmatpush1.bf16.msra.mxu0 %v146_v28 }
  0x12   :  { %149 = vmatprep.subr.bf16.mxu0 %v148_v29 }
  0x15   :  { %151 = vmatpush1.bf16.msra.mxu0 %v150_v34 }
  0x16   :  { %153 = vmatprep.subr.bf16.mxu0 %v152_v35 }
  0x19   :  { %155 = vmatpush1.bf16.msra.mxu0 %v154_v40 }
  0x1a   :  { %157 = vmatprep.subr.bf16.mxu0 %v156_v41 }
  0x1d   :  { %159 = vmatpush1.bf16.msra.mxu0 %v158_v46 }
  0x1e   :  { %161 = vmatprep.subr.bf16.mxu0 %v160_v47 }
  0x21   :  { %163 = vmatpush1.bf16.msra.mxu0 %v162_v50 }
  0x24   :  { %118 = vmatmul.mubr.f32.vlgmr.msra.gmra.mrb[0].mxu0 %v14_v51 }
  0x87   :  { %v51_v52 = vpop.permute.xlu0 %50 }
  0xf7   :  { %v119_v53 = vpop.f32.mrb[0].mxu0 }
  0xf8   :  { %v120_v54 = vadd.f32 %v119_v53, %v51_v52  ;;  %v121_v55 = vpop.f32.mrb[1].mxu0 }
  0xf9   :  { %v122_v56 = vadd.f32 %v121_v55, %v51_v52 }
  0xfa   :  { %v124_v57 = vmax.f32 %v120_v54, 0.0 }
  0xfb   :  { %v125_v58 = vmax.f32 %v122_v56, 0.0 }
  0xfc   :  { %126 = vst [vmem:[%s300_s3] sm:$0xff] %v124_v57 }
  0xfd   :  { %127 = vst [vmem:[%s300_s3 + $0x8] sm:$0xff] %v125_v58 }

// kernel: vaegan_forward.28
= control target key start
LH: loop header
LB: loop body
LE: loop exit
PB: predicated region body
PF: predicated region fallthrough
CT: control target
= control target key end

     0   :  { %v195_v0 = vmov 0.0|0.0   ;;  %vm196_vm0 = vmmov 0   ;;  %v197_v4 = vmov 0.0   ;;  %v198_v7 = vmov 0   ;;  %s276_s1 = inlined_call_operand.vmem [shape: f32[128,64], index: 1, kind: input, shape index: {}]   ;;  %s277_s2 = inlined_call_operand.vmem [shape: f32[8,1], index: 2, kind: input, shape index: {}]   ;;  %s278_s0 = inlined_call_operand.vmem [shape: f32[8,128], index: 0, kind: input, shape index: {}]   ;;  %s279_s3 = inlined_call_operand.vmem [shape: f32[8,64], index: 3, kind: output, shape index: {}]  }
   0x1   :  { %166 = vmatprep.subr.bf16.mxu0 %v195_v0  ;;  %v15_v1 = vld [vmem:[%s276_s1] sm:$0xff]  ;;  %v16_v2 = vld [vmem:[%s276_s1 + $0x8] sm:$0xff]  ;;  %v17_v3 = vld [vmem:[%s276_s1 + $0x10] sm:$0xff]  ;;  %163 = vmatprep.mubr.msk.f32.mxu0 %vm196_vm0, %v197_v4  ;;  %vm108_vm1 = vcmask 523264  }
   0x2   :  { %v167_v5 = vpack.c.bf16 %v16_v2, %v15_v1  ;;  %v18_v6 = vld [vmem:[%s276_s1 + $0x18] sm:$0xff]  ;;  %194 = vset.pattern.permute.xlu0 %v198_v7  ;;  %v19_v9 = vld [vmem:[%s276_s1 + $0x20] sm:$0xff]  ;;  %v20_v10 = vld [vmem:[%s276_s1 + $0x28] sm:$0xff] }
   0x3   :  { %v170_v8 = vpack.c.bf16 %v18_v6, %v17_v3  ;;  %v31_v11 = vld [vmem:[%s277_s2] sm:$0xff]  ;;  %v173_v12 = vpack.c.bf16 %v20_v10, %v19_v9  ;;  %v21_v13 = vld [vmem:[%s276_s1 + $0x30] sm:$0xff]  ;;  %v22_v14 = vld [vmem:[%s276_s1 + $0x38] sm:$0xff] }
   0x4   :  { %168 = vmatpush3.bf16.msra.mxu0 %v167_v5  ;;  %34 = vperm.xlu0 %194, %v31_v11   ;;  %v176_v15 = vpack.c.bf16 %v22_v14, %v21_v13  ;;  %v23_v16 = vld [vmem:[%s276_s1 + $0x40] sm:$0xff]  ;;  %v24_v17 = vld [vmem:[%s276_s1 + $0x48] sm:$0xff]  ;;  %v25_v19 = vld [vmem:[%s276_s1 + $0x50] sm:$0xff] }
   0x5   :  { %169 = vmatprep.subr.bf16.mxu0 %v195_v0  ;;  %v179_v18 = vpack.c.bf16 %v24_v17, %v23_v16  ;;  %v26_v20 = vld [vmem:[%s276_s1 + $0x58] sm:$0xff]  ;;  %v27_v22 = vld [vmem:[%s276_s1 + $0x60] sm:$0xff]  ;;  %v28_v23 = vld [vmem:[%s276_s1 + $0x68] sm:$0xff] }
   0x6   :  { %v182_v21 = vpack.c.bf16 %v26_v20, %v25_v19  ;;  %v185_v24 = vpack.c.bf16 %v28_v23, %v27_v22  ;;  %v29_v25 = vld [vmem:[%s276_s1 + $0x70] sm:$0xff]  ;;  %v30_v26 = vld [vmem:[%s276_s1 + $0x78] sm:$0xff]  ;;  %v14_v28 = vld [vmem:[%s278_s0] sm:$0xff] }
   0x7   :  { %v188_v27 = vpack.c.bf16 %v30_v26, %v29_v25 }
   0x8   :  { %171 = vmatpush3.bf16.msra.mxu0 %v170_v8 }
   0x9   :  { %172 = vmatprep.subr.bf16.mxu0 %v195_v0 }
   0xc   :  { %174 = vmatpush3.bf16.msra.mxu0 %v173_v12 }
   0xd   :  { %175 = vmatprep.subr.bf16.mxu0 %v195_v0 }
  0x10   :  { %177 = vmatpush3.bf16.msra.mxu0 %v176_v15 }
  0x11   :  { %178 = vmatprep.subr.bf16.mxu0 %v195_v0 }
  0x14   :  { %180 = vmatpush3.bf16.msra.mxu0 %v179_v18 }
  0x15   :  { %181 = vmatprep.subr.bf16.mxu0 %v195_v0 }
  0x18   :  { %183 = vmatpush3.bf16.msra.mxu0 %v182_v21 }
  0x19   :  { %184 = vmatprep.subr.bf16.mxu0 %v195_v0 }
  0x1c   :  { %186 = vmatpush3.bf16.msra.mxu0 %v185_v24 }
  0x1d   :  { %187 = vmatprep.subr.bf16.mxu0 %v195_v0 }
  0x20   :  { %189 = vmatpush3.bf16.msra.mxu0 %v188_v27 }
  0x23   :  { %164 = vmatmul.mubr.f32.vlgmr.msra.gmra.mrb[0].mxu0 %v14_v28 }
  0x83   :  { %v35_v29 = vpop.permute.xlu0 %34 }
  0xf6   :  { %v103_v30 = vpop.f32.mrb[0].mxu0 }
  0xf7   :  { %v104_v31 = vadd.f32 %v103_v30, %v35_v29  ;;  %v165_v32 = vpop.f32.mrb[1].mxu0 }
  0xf9   :  { %v107_v33 = vmax.f32 %v104_v31, 0.0 }
  0xfb   :  { %109 = vst.msk [vmem:[%s279_s3] sm:$0xff] %vm108_vm1, %v107_v33 }

// kernel: vaegan_forward.29
= control target key start
LH: loop header
LB: loop body
LE: loop exit
PB: predicated region body
PF: predicated region fallthrough
CT: control target
= control target key end

     0   :  { %v207_v0 = vmov 0.0|0.0   ;;  %vm208_vm0 = vmmov 0   ;;  %v209_v4 = vmov 0.0   ;;  %vm116_vm1 = vcmask 3072   ;;  %s287_s1 = inlined_call_operand.vmem [shape: f32[128,1], index: 1, kind: input, shape index: {}]   ;;  %s288_s2 = inlined_call_operand.<no memory space> [shape: f32[1,1], index: 2, kind: input, shape index: {}]   ;;  %s289_s0 = inlined_call_operand.vmem [shape: f32[4,128], index: 0, kind: input, shape index: {}]   ;;  %s290_s3 = inlined_call_operand.vmem [shape: f32[4,1], index: 3, kind: output, shape index: {}]  }
   0x1   :  { %176 = vmatprep.subr.bf16.mxu0 %v207_v0  ;;  %v17_v1 = vld [vmem:[%s287_s1] sm:$0xff]  ;;  %v18_v2 = vld [vmem:[%s287_s1 + $0x8] sm:$0xff]  ;;  %v19_v3 = vld [vmem:[%s287_s1 + $0x10] sm:$0xff]  ;;  %173 = vmatprep.mubr.msk.f32.mxu0 %vm208_vm0, %v209_v4  ;;  %v8_v5 = vstv %s288_s2 }
   0x2   :  { %v177_v6 = vpack.c.bf16 %v18_v2, %v17_v1  ;;  %v20_v7 = vld [vmem:[%s287_s1 + $0x18] sm:$0xff]  ;;  %9 = vst [vmem:[#allocation2] sm:$0x1] %v8_v5  ;;  %v21_v9 = vld [vmem:[%s287_s1 + $0x20] sm:$0xff]  ;;  %v22_v10 = vld [vmem:[%s287_s1 + $0x28] sm:$0xff] }
   0x3   :  { %v180_v8 = vpack.c.bf16 %v20_v7, %v19_v3  ;;  %v183_v11 = vpack.c.bf16 %v22_v10, %v21_v9  ;;  %v23_v12 = vld [vmem:[%s287_s1 + $0x30] sm:$0xff]  ;;  %v24_v13 = vld [vmem:[%s287_s1 + $0x38] sm:$0xff]  ;;  %v25_v15 = vld [vmem:[%s287_s1 + $0x40] sm:$0xff] }
   0x4   :  { %178 = vmatpush3.bf16.msra.mxu0 %v177_v6  ;;  %v186_v14 = vpack.c.bf16 %v24_v13, %v23_v12  ;;  %v26_v16 = vld [vmem:[%s287_s1 + $0x48] sm:$0xff]  ;;  %v27_v18 = vld [vmem:[%s287_s1 + $0x50] sm:$0xff]  ;;  %v28_v19 = vld [vmem:[%s287_s1 + $0x58] sm:$0xff] }
   0x5   :  { %179 = vmatprep.subr.bf16.mxu0 %v207_v0  ;;  %v189_v17 = vpack.c.bf16 %v26_v16, %v25_v15  ;;  %v192_v20 = vpack.c.bf16 %v28_v19, %v27_v18  ;;  %v29_v21 = vld [vmem:[%s287_s1 + $0x60] sm:$0xff]  ;;  %v30_v22 = vld [vmem:[%s287_s1 + $0x68] sm:$0xff]  ;;  %v31_v24 = vld [vmem:[%s287_s1 + $0x70] sm:$0xff] }
   0x6   :  { %v195_v23 = vpack.c.bf16 %v30_v22, %v29_v21  ;;  %v32_v25 = vld [vmem:[%s287_s1 + $0x78] sm:$0xff]  ;;  %v16_v27 = vld [vmem:[%s289_s0] sm:$0xf] }
   0x7   :  { %v198_v26 = vpack.c.bf16 %v32_v25, %v31_v24 }
   0x8   :  { %181 = vmatpush3.bf16.msra.mxu0 %v180_v8 }
   0x9   :  { %182 = vmatprep.subr.bf16.mxu0 %v207_v0  ;;  %v122_v28 = vld [vmem:[#allocation2] ss:$0 sm:$0xff] }
   0xc   :  { %184 = vmatpush3.bf16.msra.mxu0 %v183_v11 }
   0xd   :  { %185 = vmatprep.subr.bf16.mxu0 %v207_v0 }
  0x10   :  { %187 = vmatpush3.bf16.msra.mxu0 %v186_v14 }
  0x11   :  { %188 = vmatprep.subr.bf16.mxu0 %v207_v0 }
  0x14   :  { %190 = vmatpush3.bf16.msra.mxu0 %v189_v17 }
  0x15   :  { %191 = vmatprep.subr.bf16.mxu0 %v207_v0 }
  0x18   :  { %193 = vmatpush3.bf16.msra.mxu0 %v192_v20 }
  0x19   :  { %194 = vmatprep.subr.bf16.mxu0 %v207_v0 }
  0x1c   :  { %196 = vmatpush3.bf16.msra.mxu0 %v195_v23 }
  0x1d   :  { %197 = vmatprep.subr.bf16.mxu0 %v207_v0 }
  0x20   :  { %199 = vmatpush3.bf16.msra.mxu0 %v198_v26 }
  0x23   :  { %174 = vmatmul.mubr.f32.vlgmr.msra.gmra.mrb[0].mxu0 %v16_v27 }
  0xf6   :  { %v106_v29 = vpop.f32.mrb[0].mxu0 }
  0xf7   :  { %v107_v30 = vadd.f32 %v122_v28, %v106_v29  ;;  %v175_v31 = vpop.f32.mrb[1].mxu0 }
  0xf9   :  { %v123_v32 = vmul.f32 -1.442695, %v107_v30 }
  0xfb   :  { %203 = vpow2.f32 %v123_v32 }
 0x105   :  { %v204_v33 = vpop.eup %203 }
 0x106   :  { %v113_v34 = vadd.f32 1.0, %v204_v33 }
 0x108   :  { %205 = vrcp.f32 %v113_v34 }
 0x112   :  { %v206_v35 = vpop.eup %205 }
 0x113   :  { %117 = vst.msk [vmem:[%s290_s3] sm:$0xf] %vm116_vm1, %v206_v35 }

</bundles_post_ra>
